<compile_context>
chip_gen: v7x
topology: tpu7x:2x2x1
jax: 0.10.0
libtpu: 0.0.40
codegen_flags: <defaults>
</compile_context>

<pallas_src>
import jax
import jax.numpy as jnp
from jax.experimental import pallas as pl
from jax.experimental.pallas import tpu as pltpu

# ---------------- model hyper-parameters (match the PyTorch __init__) --------
NUM_STATES = 4
D_MODEL = 32
NUM_LAYERS = 2
NHEAD = 4
HEAD_DIM = D_MODEL // NHEAD
DIM_FF = 2048          # torch.nn.TransformerEncoderLayer default dim_feedforward
POS_ENC_DIM = 8
LN_EPS = 1e-5
MASK_NEG = -1e9        # finite "-inf": NaN-safe if a row were ever fully masked
# TODO(synk): dropout (p=0.1) inside the Transformer layer is implemented as
# identity (eval-mode semantics); training-mode RNG dropout is not reproduced.


# --------------------------- kernel helpers ----------------------------------
def _layernorm(x, gamma, beta):
    mu = jnp.mean(x, axis=-1, keepdims=True)
    var = jnp.mean((x - mu) ** 2, axis=-1, keepdims=True)
    return (x - mu) * jax.lax.rsqrt(var + LN_EPS) * gamma + beta


def _replicated_spec(shape):
    nd = len(shape)
    return pl.BlockSpec(tuple(shape), lambda i, nd=nd: (0,) * nd)


def _pick_block_batch(B, L):
    """Largest divisor BB of B with BB*L <= 128 rows, keeping >=2 grid steps."""
    best = 1
    for bb in range(1, B + 1):
        if bb * L > 128:
            break
        if B % bb:
            continue
        if B >= 2 and B // bb < 2:     # keep both v7x TensorCores busy
            continue
        best = bb
    return best


# --------------------------- fused forward kernel ----------------------------
def _graph_encoder_kernel(tok_ref, mask_ref,
                          wqkv_ref, bqkv_ref, wo_ref, bo_ref, g1_ref, b1_ref,
                          wf1_ref, bf1_ref, wf2_ref, bf2_ref, g2_ref, b2_ref,
                          out_ref):
    BB, L, _ = tok_ref.shape
    R = BB * L
    x = tok_ref[...].reshape(R, D_MODEL)          # (BB*L, d) f32, sublane-dense

    for l in range(NUM_LAYERS):
        # ---- joint QKV projection for every token in the block (1 MXU push) -
        # (scale 1/sqrt(head_dim) already folded into the Q columns of wqkv.)
        qkv = jnp.dot(x.astype(jnp.bfloat16), wqkv_ref[l],
                      preferred_element_type=jnp.float32) + bqkv_ref[l]      # (R, 3d)

        pv_rows = []
        for b in range(BB):                       # static unroll over block batch
            rows = qkv[b * L:(b + 1) * L]         # (L, 3d)

            # per-head scores, sublane-stacked -> ONE fused softmax for 4 heads
            s_parts = []
            for h in range(NHEAD):
                q = rows[:, h * HEAD_DIM:(h + 1) * HEAD_DIM].astype(jnp.bfloat16)
                k = rows[:, D_MODEL + h * HEAD_DIM:
                         D_MODEL + (h + 1) * HEAD_DIM].astype(jnp.bfloat16)
                s_parts.append(jax.lax.dot_general(
                    q, k, (((1,), (1,)), ((), ())),
                    preferred_element_type=jnp.float32))
            s = jnp.concatenate(s_parts, axis=0) + mask_ref[b]               # (NHEAD*L, L)
            m = jnp.max(s, axis=-1, keepdims=True)
            p = jnp.exp(s - m)
            p = p * pl.reciprocal(jnp.sum(p, axis=-1, keepdims=True), approx=True)
            p = p.astype(jnp.bfloat16)

            # per-head p@v, lane-stacked back to (L, d)
            pv_parts = []
            for h in range(NHEAD):
                v = rows[:, 2 * D_MODEL + h * HEAD_DIM:
                         2 * D_MODEL + (h + 1) * HEAD_DIM].astype(jnp.bfloat16)
                pv_parts.append(jnp.dot(p[h * L:(h + 1) * L], v,
                                        preferred_element_type=jnp.float32))
            pv_rows.append(jnp.concatenate(pv_parts, axis=-1))               # (L, d)

        pv = jnp.concatenate(pv_rows, axis=0)                                # (R, d)
        # single output projection for all heads & all block batch elements
        attn = jnp.dot(pv.astype(jnp.bfloat16), wo_ref[l],
                       preferred_element_type=jnp.float32) + bo_ref[l]
        h1 = _layernorm(x + attn, g1_ref[l], b1_ref[l])

        # ---- un-chunked 2048-wide ReLU FFN: two wide MXU pushes --------------
        t = jnp.dot(h1.astype(jnp.bfloat16), wf1_ref[l],
                    preferred_element_type=jnp.float32) + bf1_ref[l]         # (R, 2048)
        t = jnp.maximum(t, 0.0)
        ff = jnp.dot(t.astype(jnp.bfloat16), wf2_ref[l],
                     preferred_element_type=jnp.float32) + bf2_ref[l]        # (R, d)
        x = _layernorm(h1 + ff, g2_ref[l], b2_ref[l])

    # per-batch-element sequence sum — emitted once, from the last layer only
    out_ref[...] = jnp.sum(x.reshape(BB, L, D_MODEL), axis=1, keepdims=True)  # (BB,1,d)


# --------------------------- full forward pass --------------------------------
def graph_encoder_forward(A, x, params):
    B, N, _ = A.shape
    L = N + 1
    A1 = A + jnp.eye(N, dtype=A.dtype)

    # --- positional_encoding(A): Laplacian eigendecomposition (plain JAX glue;
    #     L is symmetric for symmetric A, so eigh is used).
    deg_inv_sqrt = jnp.sum(A1, axis=-1) ** (-0.5)   # finite thanks to self-loops
    Lap = jnp.eye(N, dtype=jnp.float32) - \
        deg_inv_sqrt[:, :, None] * A1 * deg_inv_sqrt[:, None, :]
    eigval, eigvec = jnp.linalg.eigh(Lap)
    sorted_idx = jnp.argsort(eigval, axis=-1)
    sorted_val = jnp.take_along_axis(eigval, sorted_idx, axis=-1)
    # Reproduces the as-written torch.gather (index broadcast over the last
    # axis -> each row's gathered eigenvector component broadcast across
    # columns), matching the reference code up to eig() output ordering.
    gathered = jnp.take_along_axis(
        eigvec, jnp.broadcast_to(sorted_idx[..., None], eigvec.shape), axis=-1)
    pe = gathered[:, :, 1:POS_ENC_DIM + 1].astype(jnp.float32)               # (B, N, 8)
    ev = sorted_val[:, 1:POS_ENC_DIM + 1].astype(jnp.float32)                # (B, 8)

    # --- token-embedding assembly, hoisted out of the kernel (plain JAX) -----
    emb_x = jnp.take(params['emb'], x, axis=0)                               # (B, N, d/2)
    pos = pe @ params['wp'] + params['bp']                                   # (B, N, d/2)
    node = jnp.concatenate([emb_x, pos], axis=-1)                            # (B, N, d)
    hcls = jnp.maximum(ev @ params['wc1'] + params['bc1'], 0.0)              # (B, d)
    cls_enc = hcls @ params['wc2'] + params['bc2']                           # (B, d/2)
    cls_emb = jnp.broadcast_to(params['emb'][NUM_STATES], (B, D_MODEL // 2))
    cls_row = jnp.concatenate([cls_emb, cls_enc], axis=-1)[:, None, :]       # (B, 1, d)
    tokens = jnp.concatenate([node, cls_row], axis=1)                        # (B, L, d)

    # --- per-(batch, head) additive mask, precomputed (mask.repeat(4,1,1)) ---
    A_ext = jnp.concatenate([A1, jnp.ones((B, N, 1), jnp.float32)], axis=2)
    A_ext = jnp.concatenate(
        [A_ext, jnp.ones((B, 1, L), jnp.float32)], axis=1)                   # (B, L, L)
    mask_add = jnp.where(A_ext == 0.0,
                         jnp.float32(MASK_NEG), jnp.float32(0.0))            # (B, L, L)
    # head (b, h) sees mask[(b*NHEAD + h) % B]  (torch `mask.repeat(4,1,1)`)
    head_idx = (jnp.arange(B)[:, None] * NHEAD + jnp.arange(NHEAD)[None, :]) % B
    mask_bh = mask_add[head_idx].reshape(B, NHEAD * L, L)                    # (B, 4L, L)

    # --- stack per-layer weights; heavy matmul weights in bf16 ---------------
    def stack(name, dtype=jnp.float32):
        return jnp.stack([lp[name] for lp in params['layers']], axis=0).astype(dtype)

    scale = 1.0 / (HEAD_DIM ** 0.5)
    wqkv = stack('wqkv'); bqkv = stack('bqkv')
    # fold the softmax scale into the Q columns (saves a per-step VPU multiply)
    wqkv = wqkv.at[:, :, :D_MODEL].multiply(scale).astype(jnp.bfloat16)
    bqkv = bqkv.at[:, :, :D_MODEL].multiply(scale)
    wo = stack('wo', jnp.bfloat16); bo = stack('bo')
    g1 = stack('g1'); b1 = stack('b1')
    wf1 = stack('wf1', jnp.bfloat16); bf1 = stack('bf1')
    wf2 = stack('wf2', jnp.bfloat16); bf2 = stack('bf2')
    g2 = stack('g2'); b2 = stack('b2')

    # --- batch-blocked grid ----------------------------------------------------
    BB = _pick_block_batch(B, L)
    grid = (B // BB,)
    batched_in = [tokens, mask_bh]
    repl_in = [wqkv, bqkv, wo, bo, g1, b1, wf1, bf1, wf2, bf2, g2, b2]
    in_specs = ([pl.BlockSpec((BB, L, D_MODEL), lambda i: (i, 0, 0)),
                 pl.BlockSpec((BB, NHEAD * L, L), lambda i: (i, 0, 0))] +
                [_replicated_spec(a.shape) for a in repl_in])

    out = pl.pallas_call(
        _graph_encoder_kernel,
        out_shape=jax.ShapeDtypeStruct((B, 1, D_MODEL), jnp.float32),
        grid=grid,
        in_specs=in_specs,
        out_specs=pl.BlockSpec((BB, 1, D_MODEL), lambda i: (i, 0, 0)),
        compiler_params=pltpu.CompilerParams(
            dimension_semantics=("parallel",),          # v7x: 2 TCs share the grid
            vmem_limit_bytes=16 * 1024 * 1024),
    )(*batched_in, *repl_in)
    return out[:, 0, :]                                                      # (B, d)


# --------------------------- deterministic parameter init ---------------------
def init_params(key):
    keys = jax.random.split(key, 4 + NUM_LAYERS)

    def lin(k, fan_in, fan_out):
        kw, kb = jax.random.split(k)
        bound = 1.0 / (fan_in ** 0.5)
        w = jax.random.uniform(kw, (fan_in, fan_out), jnp.float32, -bound, bound)
        b = jax.random.uniform(kb, (1, fan_out), jnp.float32, -bound, bound)
        return w, b

    params = {}
    params['emb'] = 0.1 * jax.random.normal(
        keys[0], (NUM_STATES + 1, D_MODEL // 2), jnp.float32)
    params['wp'], params['bp'] = lin(keys[1], POS_ENC_DIM, D_MODEL // 2)
    params['wc1'], params['bc1'] = lin(keys[2], POS_ENC_DIM, D_MODEL)
    params['wc2'], params['bc2'] = lin(keys[3], D_MODEL, D_MODEL // 2)

    layers = []
    for i in range(NUM_LAYERS):
        ks = jax.random.split(keys[4 + i], 4)
        wqkv, bqkv = lin(ks[0], D_MODEL, 3 * D_MODEL)
        wo, bo = lin(ks[1], D_MODEL, D_MODEL)
        wf1, bf1 = lin(ks[2], D_MODEL, DIM_FF)
        wf2, bf2 = lin(ks[3], DIM_FF, D_MODEL)
        layers.append(dict(
            wqkv=wqkv, bqkv=bqkv, wo=wo, bo=bo,
            g1=jnp.ones((1, D_MODEL), jnp.float32),
            b1=jnp.zeros((1, D_MODEL), jnp.float32),
            wf1=wf1, bf1=bf1, wf2=wf2, bf2=bf2,
            g2=jnp.ones((1, D_MODEL), jnp.float32),
            b2=jnp.zeros((1, D_MODEL), jnp.float32)))
    params['layers'] = layers
    return params


# --------------------------- demo ---------------------------------------------
if __name__ == "__main__":
    key = jax.random.PRNGKey(0)
    kp, ka, kx = jax.random.split(key, 3)
    params = init_params(kp)

    B, N = 2, 15  # num_nodes must be > POS_ENC_DIM for the [1:9] slices
    r = jax.random.bernoulli(ka, 0.4, (B, N, N)).astype(jnp.float32)
    A = jnp.triu(r, 1)
    A = A + jnp.transpose(A, (0, 2, 1))          # symmetric 0/1 adjacency, no self-loops
    x = jax.random.randint(kx, (B, N), 0, NUM_STATES)   # node-state indices

    fwd = jax.jit(graph_encoder_forward)
    out = fwd(A, x, params)
    jax.block_until_ready(out)
    assert out.shape == (B, D_MODEL) and out.dtype == jnp.float32
    assert bool(jnp.all(jnp.isfinite(out)))
    print("KERNEL_OK")
</pallas_src>

<mosaic_0001>
module attributes {stable_mosaic.version = 11 : i64} {
  func.func @_graph_encoder_kernel(%arg0: i32, %arg1: memref<1x16x32xf32, #tpu.memory_space<vmem>>, %arg2: memref<1x64x16xf32, #tpu.memory_space<vmem>>, %arg3: memref<2x32x96xbf16, #tpu.memory_space<vmem>>, %arg4: memref<2x1x96xf32, #tpu.memory_space<vmem>>, %arg5: memref<2x32x32xbf16, #tpu.memory_space<vmem>>, %arg6: memref<2x1x32xf32, #tpu.memory_space<vmem>>, %arg7: memref<2x1x32xf32, #tpu.memory_space<vmem>>, %arg8: memref<2x1x32xf32, #tpu.memory_space<vmem>>, %arg9: memref<2x32x2048xbf16, #tpu.memory_space<vmem>>, %arg10: memref<2x1x2048xf32, #tpu.memory_space<vmem>>, %arg11: memref<2x2048x32xbf16, #tpu.memory_space<vmem>>, %arg12: memref<2x1x32xf32, #tpu.memory_space<vmem>>, %arg13: memref<2x1x32xf32, #tpu.memory_space<vmem>>, %arg14: memref<2x1x32xf32, #tpu.memory_space<vmem>>, %arg15: memref<1x1x32xf32, #tpu.memory_space<vmem>>) attributes {dimension_semantics = [#tpu.dimension_semantics<parallel>], iteration_bounds = array<i64: 2>, scalar_prefetch = 0 : i64, scratch_operands = 0 : i64, tpu.core_type = #tpu.core_type<tc>, window_params = [{transform_indices = @transform_0, window_bounds = array<i64: 1, 16, 32>}, {transform_indices = @transform_1, window_bounds = array<i64: 1, 64, 16>}, {pipeline_mode = #tpu.pipeline_mode<synchronous>, transform_indices = @transform_2, window_bounds = array<i64: 2, 32, 96>}, {pipeline_mode = #tpu.pipeline_mode<synchronous>, transform_indices = @transform_3, window_bounds = array<i64: 2, 1, 96>}, {pipeline_mode = #tpu.pipeline_mode<synchronous>, transform_indices = @transform_4, window_bounds = array<i64: 2, 32, 32>}, {pipeline_mode = #tpu.pipeline_mode<synchronous>, transform_indices = @transform_5, window_bounds = array<i64: 2, 1, 32>}, {pipeline_mode = #tpu.pipeline_mode<synchronous>, transform_indices = @transform_6, window_bounds = array<i64: 2, 1, 32>}, {pipeline_mode = #tpu.pipeline_mode<synchronous>, transform_indices = @transform_7, window_bounds = array<i64: 2, 1, 32>}, {pipeline_mode = #tpu.pipeline_mode<synchronous>, transform_indices = @transform_8, window_bounds = array<i64: 2, 32, 2048>}, {pipeline_mode = #tpu.pipeline_mode<synchronous>, transform_indices = @transform_9, window_bounds = array<i64: 2, 1, 2048>}, {pipeline_mode = #tpu.pipeline_mode<synchronous>, transform_indices = @transform_10, window_bounds = array<i64: 2, 2048, 32>}, {pipeline_mode = #tpu.pipeline_mode<synchronous>, transform_indices = @transform_11, window_bounds = array<i64: 2, 1, 32>}, {pipeline_mode = #tpu.pipeline_mode<synchronous>, transform_indices = @transform_12, window_bounds = array<i64: 2, 1, 32>}, {pipeline_mode = #tpu.pipeline_mode<synchronous>, transform_indices = @transform_13, window_bounds = array<i64: 2, 1, 32>}, {transform_indices = @transform_14, window_bounds = array<i64: 1, 1, 32>}]} {
    %c0 = arith.constant 0 : index
    %c0_0 = arith.constant 0 : index
    %c0_1 = arith.constant 0 : index
    %0 = vector.load %arg1[%c0, %c0_0, %c0_1] : memref<1x16x32xf32, #tpu.memory_space<vmem>>, vector<1x16x32xf32>
    %1 = vector.shape_cast %0 : vector<1x16x32xf32> to vector<16x32xf32>
    %2 = arith.truncf %1 : vector<16x32xf32> to vector<16x32xbf16>
    %c0_2 = arith.constant 0 : index
    %c0_3 = arith.constant 0 : index
    %c0_4 = arith.constant 0 : index
    %3 = vector.load %arg3[%c0_2, %c0_3, %c0_4] : memref<2x32x96xbf16, #tpu.memory_space<vmem>>, vector<1x32x96xbf16>
    %4 = vector.shape_cast %3 : vector<1x32x96xbf16> to vector<32x96xbf16>
    %cst = arith.constant dense<0.000000e+00> : vector<16x96xf32>
    %5 = tpu.matmul %2, %4, %cst {dimension_numbers = #tpu.dot_dimension_numbers<[1], [0], [0], [1], [0, 0, 1, 1], [], []>} : vector<16x32xbf16>, vector<32x96xbf16>, vector<16x96xf32> -> vector<16x96xf32>
    %c0_5 = arith.constant 0 : index
    %c0_6 = arith.constant 0 : index
    %c0_7 = arith.constant 0 : index
    %6 = vector.load %arg4[%c0_5, %c0_6, %c0_7] : memref<2x1x96xf32, #tpu.memory_space<vmem>>, vector<1x1x96xf32>
    %7 = vector.shape_cast %6 : vector<1x1x96xf32> to vector<1x96xf32>
    %8 = vector.broadcast %7 : vector<1x96xf32> to vector<16x96xf32>
    %9 = arith.addf %5, %8 : vector<16x96xf32>
    %10 = vector.extract_strided_slice %9 {offsets = [0, 0], sizes = [16, 8], strides = [1, 1]} : vector<16x96xf32> to vector<16x8xf32>
    %11 = arith.truncf %10 : vector<16x8xf32> to vector<16x8xbf16>
    %12 = vector.extract_strided_slice %9 {offsets = [0, 32], sizes = [16, 8], strides = [1, 1]} : vector<16x96xf32> to vector<16x8xf32>
    %13 = arith.truncf %12 : vector<16x8xf32> to vector<16x8xbf16>
    %cst_8 = arith.constant dense<0.000000e+00> : vector<16x16xf32>
    %14 = tpu.matmul %11, %13, %cst_8 {dimension_numbers = #tpu.dot_dimension_numbers<[1], [1], [0], [0], [0, 0, 1, 0], [], []>} : vector<16x8xbf16>, vector<16x8xbf16>, vector<16x16xf32> -> vector<16x16xf32>
    %15 = vector.extract_strided_slice %9 {offsets = [0, 8], sizes = [16, 8], strides = [1, 1]} : vector<16x96xf32> to vector<16x8xf32>
    %16 = arith.truncf %15 : vector<16x8xf32> to vector<16x8xbf16>
    %17 = vector.extract_strided_slice %9 {offsets = [0, 40], sizes = [16, 8], strides = [1, 1]} : vector<16x96xf32> to vector<16x8xf32>
    %18 = arith.truncf %17 : vector<16x8xf32> to vector<16x8xbf16>
    %cst_9 = arith.constant dense<0.000000e+00> : vector<16x16xf32>
    %19 = tpu.matmul %16, %18, %cst_9 {dimension_numbers = #tpu.dot_dimension_numbers<[1], [1], [0], [0], [0, 0, 1, 0], [], []>} : vector<16x8xbf16>, vector<16x8xbf16>, vector<16x16xf32> -> vector<16x16xf32>
    %20 = vector.extract_strided_slice %9 {offsets = [0, 16], sizes = [16, 8], strides = [1, 1]} : vector<16x96xf32> to vector<16x8xf32>
    %21 = arith.truncf %20 : vector<16x8xf32> to vector<16x8xbf16>
    %22 = vector.extract_strided_slice %9 {offsets = [0, 48], sizes = [16, 8], strides = [1, 1]} : vector<16x96xf32> to vector<16x8xf32>
    %23 = arith.truncf %22 : vector<16x8xf32> to vector<16x8xbf16>
    %cst_10 = arith.constant dense<0.000000e+00> : vector<16x16xf32>
    %24 = tpu.matmul %21, %23, %cst_10 {dimension_numbers = #tpu.dot_dimension_numbers<[1], [1], [0], [0], [0, 0, 1, 0], [], []>} : vector<16x8xbf16>, vector<16x8xbf16>, vector<16x16xf32> -> vector<16x16xf32>
    %25 = vector.extract_strided_slice %9 {offsets = [0, 24], sizes = [16, 8], strides = [1, 1]} : vector<16x96xf32> to vector<16x8xf32>
    %26 = arith.truncf %25 : vector<16x8xf32> to vector<16x8xbf16>
    %27 = vector.extract_strided_slice %9 {offsets = [0, 56], sizes = [16, 8], strides = [1, 1]} : vector<16x96xf32> to vector<16x8xf32>
    %28 = arith.truncf %27 : vector<16x8xf32> to vector<16x8xbf16>
    %cst_11 = arith.constant dense<0.000000e+00> : vector<16x16xf32>
    %29 = tpu.matmul %26, %28, %cst_11 {dimension_numbers = #tpu.dot_dimension_numbers<[1], [1], [0], [0], [0, 0, 1, 0], [], []>} : vector<16x8xbf16>, vector<16x8xbf16>, vector<16x16xf32> -> vector<16x16xf32>
    %30 = tpu.concatenate %14, %19, %24, %29 in 0 : vector<16x16xf32>, vector<16x16xf32>, vector<16x16xf32>, vector<16x16xf32> -> vector<64x16xf32>
    %c0_12 = arith.constant 0 : index
    %c0_13 = arith.constant 0 : index
    %c0_14 = arith.constant 0 : index
    %31 = vector.load %arg2[%c0_12, %c0_13, %c0_14] : memref<1x64x16xf32, #tpu.memory_space<vmem>>, vector<1x64x16xf32>
    %32 = vector.shape_cast %31 : vector<1x64x16xf32> to vector<64x16xf32>
    %33 = arith.addf %30, %32 : vector<64x16xf32>
    %cst_15 = arith.constant dense<0xFF800000> : vector<64xf32>
    %34 = vector.multi_reduction <maximumf>, %33, %cst_15 [1] : vector<64x16xf32> to vector<64xf32>
    %35 = vector.shape_cast %34 : vector<64xf32> to vector<64x1xf32>
    %36 = vector.broadcast %35 : vector<64x1xf32> to vector<64x16xf32>
    %37 = arith.subf %33, %36 : vector<64x16xf32>
    %38 = math.exp %37 : vector<64x16xf32>
    %cst_16 = arith.constant dense<0.000000e+00> : vector<64xf32>
    %39 = vector.multi_reduction <add>, %38, %cst_16 [1] : vector<64x16xf32> to vector<64xf32>
    %40 = vector.shape_cast %39 : vector<64xf32> to vector<64x1xf32>
    %41 = tpu.reciprocal %40 {approx = true} : vector<64x1xf32> -> vector<64x1xf32>
    %42 = vector.broadcast %41 : vector<64x1xf32> to vector<64x16xf32>
    %43 = arith.mulf %38, %42 : vector<64x16xf32>
    %44 = arith.truncf %43 : vector<64x16xf32> to vector<64x16xbf16>
    %45 = vector.extract_strided_slice %9 {offsets = [0, 64], sizes = [16, 8], strides = [1, 1]} : vector<16x96xf32> to vector<16x8xf32>
    %46 = arith.truncf %45 : vector<16x8xf32> to vector<16x8xbf16>
    %47 = vector.extract_strided_slice %44 {offsets = [0, 0], sizes = [16, 16], strides = [1, 1]} : vector<64x16xbf16> to vector<16x16xbf16>
    %cst_17 = arith.constant dense<0.000000e+00> : vector<16x8xf32>
    %48 = tpu.matmul %47, %46, %cst_17 {dimension_numbers = #tpu.dot_dimension_numbers<[1], [0], [0], [1], [0, 0, 1, 1], [], []>} : vector<16x16xbf16>, vector<16x8xbf16>, vector<16x8xf32> -> vector<16x8xf32>
    %49 = vector.extract_strided_slice %9 {offsets = [0, 72], sizes = [16, 8], strides = [1, 1]} : vector<16x96xf32> to vector<16x8xf32>
    %50 = arith.truncf %49 : vector<16x8xf32> to vector<16x8xbf16>
    %51 = vector.extract_strided_slice %44 {offsets = [16, 0], sizes = [16, 16], strides = [1, 1]} : vector<64x16xbf16> to vector<16x16xbf16>
    %cst_18 = arith.constant dense<0.000000e+00> : vector<16x8xf32>
    %52 = tpu.matmul %51, %50, %cst_18 {dimension_numbers = #tpu.dot_dimension_numbers<[1], [0], [0], [1], [0, 0, 1, 1], [], []>} : vector<16x16xbf16>, vector<16x8xbf16>, vector<16x8xf32> -> vector<16x8xf32>
    %53 = vector.extract_strided_slice %9 {offsets = [0, 80], sizes = [16, 8], strides = [1, 1]} : vector<16x96xf32> to vector<16x8xf32>
    %54 = arith.truncf %53 : vector<16x8xf32> to vector<16x8xbf16>
    %55 = vector.extract_strided_slice %44 {offsets = [32, 0], sizes = [16, 16], strides = [1, 1]} : vector<64x16xbf16> to vector<16x16xbf16>
    %cst_19 = arith.constant dense<0.000000e+00> : vector<16x8xf32>
    %56 = tpu.matmul %55, %54, %cst_19 {dimension_numbers = #tpu.dot_dimension_numbers<[1], [0], [0], [1], [0, 0, 1, 1], [], []>} : vector<16x16xbf16>, vector<16x8xbf16>, vector<16x8xf32> -> vector<16x8xf32>
    %57 = vector.extract_strided_slice %9 {offsets = [0, 88], sizes = [16, 8], strides = [1, 1]} : vector<16x96xf32> to vector<16x8xf32>
    %58 = arith.truncf %57 : vector<16x8xf32> to vector<16x8xbf16>
    %59 = vector.extract_strided_slice %44 {offsets = [48, 0], sizes = [16, 16], strides = [1, 1]} : vector<64x16xbf16> to vector<16x16xbf16>
    %cst_20 = arith.constant dense<0.000000e+00> : vector<16x8xf32>
    %60 = tpu.matmul %59, %58, %cst_20 {dimension_numbers = #tpu.dot_dimension_numbers<[1], [0], [0], [1], [0, 0, 1, 1], [], []>} : vector<16x16xbf16>, vector<16x8xbf16>, vector<16x8xf32> -> vector<16x8xf32>
    %61 = tpu.concatenate %48, %52, %56, %60 in 1 : vector<16x8xf32>, vector<16x8xf32>, vector<16x8xf32>, vector<16x8xf32> -> vector<16x32xf32>
    %62 = arith.truncf %61 : vector<16x32xf32> to vector<16x32xbf16>
    %c0_21 = arith.constant 0 : index
    %c0_22 = arith.constant 0 : index
    %c0_23 = arith.constant 0 : index
    %63 = vector.load %arg5[%c0_21, %c0_22, %c0_23] : memref<2x32x32xbf16, #tpu.memory_space<vmem>>, vector<1x32x32xbf16>
    %64 = vector.shape_cast %63 : vector<1x32x32xbf16> to vector<32x32xbf16>
    %cst_24 = arith.constant dense<0.000000e+00> : vector<16x32xf32>
    %65 = tpu.matmul %62, %64, %cst_24 {dimension_numbers = #tpu.dot_dimension_numbers<[1], [0], [0], [1], [0, 0, 1, 1], [], []>} : vector<16x32xbf16>, vector<32x32xbf16>, vector<16x32xf32> -> vector<16x32xf32>
    %c0_25 = arith.constant 0 : index
    %c0_26 = arith.constant 0 : index
    %c0_27 = arith.constant 0 : index
    %66 = vector.load %arg6[%c0_25, %c0_26, %c0_27] : memref<2x1x32xf32, #tpu.memory_space<vmem>>, vector<1x1x32xf32>
    %67 = vector.shape_cast %66 : vector<1x1x32xf32> to vector<1x32xf32>
    %68 = vector.broadcast %67 : vector<1x32xf32> to vector<16x32xf32>
    %69 = arith.addf %65, %68 : vector<16x32xf32>
    %70 = arith.addf %1, %69 : vector<16x32xf32>
    %c0_28 = arith.constant 0 : index
    %c0_29 = arith.constant 0 : index
    %c0_30 = arith.constant 0 : index
    %71 = vector.load %arg7[%c0_28, %c0_29, %c0_30] : memref<2x1x32xf32, #tpu.memory_space<vmem>>, vector<1x1x32xf32>
    %72 = vector.shape_cast %71 : vector<1x1x32xf32> to vector<1x32xf32>
    %c0_31 = arith.constant 0 : index
    %c0_32 = arith.constant 0 : index
    %c0_33 = arith.constant 0 : index
    %73 = vector.load %arg8[%c0_31, %c0_32, %c0_33] : memref<2x1x32xf32, #tpu.memory_space<vmem>>, vector<1x1x32xf32>
    %74 = vector.shape_cast %73 : vector<1x1x32xf32> to vector<1x32xf32>
    %cst_34 = arith.constant dense<0.000000e+00> : vector<16xf32>
    %75 = vector.multi_reduction <add>, %70, %cst_34 [1] : vector<16x32xf32> to vector<16xf32>
    %76 = vector.shape_cast %75 : vector<16xf32> to vector<16x1xf32>
    %cst_35 = arith.constant 3.200000e+01 : f32
    %77 = vector.broadcast %cst_35 : f32 to vector<16x1xf32>
    %78 = arith.divf %76, %77 : vector<16x1xf32>
    %79 = vector.broadcast %78 : vector<16x1xf32> to vector<16x32xf32>
    %80 = arith.subf %70, %79 : vector<16x32xf32>
    %81 = arith.mulf %80, %80 : vector<16x32xf32>
    %cst_36 = arith.constant dense<0.000000e+00> : vector<16xf32>
    %82 = vector.multi_reduction <add>, %81, %cst_36 [1] : vector<16x32xf32> to vector<16xf32>
    %83 = vector.shape_cast %82 : vector<16xf32> to vector<16x1xf32>
    %cst_37 = arith.constant 3.200000e+01 : f32
    %84 = vector.broadcast %cst_37 : f32 to vector<16x1xf32>
    %85 = arith.divf %83, %84 : vector<16x1xf32>
    %86 = vector.broadcast %78 : vector<16x1xf32> to vector<16x32xf32>
    %87 = arith.subf %70, %86 : vector<16x32xf32>
    %cst_38 = arith.constant 9.99999974E-6 : f32
    %88 = vector.broadcast %cst_38 : f32 to vector<16x1xf32>
    %89 = arith.addf %85, %88 : vector<16x1xf32>
    %90 = math.rsqrt %89 : vector<16x1xf32>
    %91 = vector.broadcast %90 : vector<16x1xf32> to vector<16x32xf32>
    %92 = arith.mulf %87, %91 : vector<16x32xf32>
    %93 = vector.broadcast %72 : vector<1x32xf32> to vector<16x32xf32>
    %94 = arith.mulf %92, %93 : vector<16x32xf32>
    %95 = vector.broadcast %74 : vector<1x32xf32> to vector<16x32xf32>
    %96 = arith.addf %94, %95 : vector<16x32xf32>
    %97 = arith.truncf %96 : vector<16x32xf32> to vector<16x32xbf16>
    %c0_39 = arith.constant 0 : index
    %c0_40 = arith.constant 0 : index
    %c0_41 = arith.constant 0 : index
    %98 = vector.load %arg9[%c0_39, %c0_40, %c0_41] : memref<2x32x2048xbf16, #tpu.memory_space<vmem>>, vector<1x32x2048xbf16>
    %99 = vector.shape_cast %98 : vector<1x32x2048xbf16> to vector<32x2048xbf16>
    %cst_42 = arith.constant dense<0.000000e+00> : vector<16x2048xf32>
    %100 = tpu.matmul %97, %99, %cst_42 {dimension_numbers = #tpu.dot_dimension_numbers<[1], [0], [0], [1], [0, 0, 1, 1], [], []>} : vector<16x32xbf16>, vector<32x2048xbf16>, vector<16x2048xf32> -> vector<16x2048xf32>
    %c0_43 = arith.constant 0 : index
    %c0_44 = arith.constant 0 : index
    %c0_45 = arith.constant 0 : index
    %101 = vector.load %arg10[%c0_43, %c0_44, %c0_45] : memref<2x1x2048xf32, #tpu.memory_space<vmem>>, vector<1x1x2048xf32>
    %102 = vector.shape_cast %101 : vector<1x1x2048xf32> to vector<1x2048xf32>
    %103 = vector.broadcast %102 : vector<1x2048xf32> to vector<16x2048xf32>
    %104 = arith.addf %100, %103 : vector<16x2048xf32>
    %cst_46 = arith.constant 0.000000e+00 : f32
    %105 = vector.broadcast %cst_46 : f32 to vector<16x2048xf32>
    %106 = arith.maximumf %104, %105 : vector<16x2048xf32>
    %107 = arith.truncf %106 : vector<16x2048xf32> to vector<16x2048xbf16>
    %c0_47 = arith.constant 0 : index
    %c0_48 = arith.constant 0 : index
    %c0_49 = arith.constant 0 : index
    %108 = vector.load %arg11[%c0_47, %c0_48, %c0_49] : memref<2x2048x32xbf16, #tpu.memory_space<vmem>>, vector<1x2048x32xbf16>
    %109 = vector.shape_cast %108 : vector<1x2048x32xbf16> to vector<2048x32xbf16>
    %cst_50 = arith.constant dense<0.000000e+00> : vector<16x32xf32>
    %110 = tpu.matmul %107, %109, %cst_50 {dimension_numbers = #tpu.dot_dimension_numbers<[1], [0], [0], [1], [0, 0, 1, 1], [], []>} : vector<16x2048xbf16>, vector<2048x32xbf16>, vector<16x32xf32> -> vector<16x32xf32>
    %c0_51 = arith.constant 0 : index
    %c0_52 = arith.constant 0 : index
    %c0_53 = arith.constant 0 : index
    %111 = vector.load %arg12[%c0_51, %c0_52, %c0_53] : memref<2x1x32xf32, #tpu.memory_space<vmem>>, vector<1x1x32xf32>
    %112 = vector.shape_cast %111 : vector<1x1x32xf32> to vector<1x32xf32>
    %113 = vector.broadcast %112 : vector<1x32xf32> to vector<16x32xf32>
    %114 = arith.addf %110, %113 : vector<16x32xf32>
    %115 = arith.addf %96, %114 : vector<16x32xf32>
    %c0_54 = arith.constant 0 : index
    %c0_55 = arith.constant 0 : index
    %c0_56 = arith.constant 0 : index
    %116 = vector.load %arg13[%c0_54, %c0_55, %c0_56] : memref<2x1x32xf32, #tpu.memory_space<vmem>>, vector<1x1x32xf32>
    %117 = vector.shape_cast %116 : vector<1x1x32xf32> to vector<1x32xf32>
    %c0_57 = arith.constant 0 : index
    %c0_58 = arith.constant 0 : index
    %c0_59 = arith.constant 0 : index
    %118 = vector.load %arg14[%c0_57, %c0_58, %c0_59] : memref<2x1x32xf32, #tpu.memory_space<vmem>>, vector<1x1x32xf32>
    %119 = vector.shape_cast %118 : vector<1x1x32xf32> to vector<1x32xf32>
    %cst_60 = arith.constant dense<0.000000e+00> : vector<16xf32>
    %120 = vector.multi_reduction <add>, %115, %cst_60 [1] : vector<16x32xf32> to vector<16xf32>
    %121 = vector.shape_cast %120 : vector<16xf32> to vector<16x1xf32>
    %cst_61 = arith.constant 3.200000e+01 : f32
    %122 = vector.broadcast %cst_61 : f32 to vector<16x1xf32>
    %123 = arith.divf %121, %122 : vector<16x1xf32>
    %124 = vector.broadcast %123 : vector<16x1xf32> to vector<16x32xf32>
    %125 = arith.subf %115, %124 : vector<16x32xf32>
    %126 = arith.mulf %125, %125 : vector<16x32xf32>
    %cst_62 = arith.constant dense<0.000000e+00> : vector<16xf32>
    %127 = vector.multi_reduction <add>, %126, %cst_62 [1] : vector<16x32xf32> to vector<16xf32>
    %128 = vector.shape_cast %127 : vector<16xf32> to vector<16x1xf32>
    %cst_63 = arith.constant 3.200000e+01 : f32
    %129 = vector.broadcast %cst_63 : f32 to vector<16x1xf32>
    %130 = arith.divf %128, %129 : vector<16x1xf32>
    %131 = vector.broadcast %123 : vector<16x1xf32> to vector<16x32xf32>
    %132 = arith.subf %115, %131 : vector<16x32xf32>
    %cst_64 = arith.constant 9.99999974E-6 : f32
    %133 = vector.broadcast %cst_64 : f32 to vector<16x1xf32>
    %134 = arith.addf %130, %133 : vector<16x1xf32>
    %135 = math.rsqrt %134 : vector<16x1xf32>
    %136 = vector.broadcast %135 : vector<16x1xf32> to vector<16x32xf32>
    %137 = arith.mulf %132, %136 : vector<16x32xf32>
    %138 = vector.broadcast %117 : vector<1x32xf32> to vector<16x32xf32>
    %139 = arith.mulf %137, %138 : vector<16x32xf32>
    %140 = vector.broadcast %119 : vector<1x32xf32> to vector<16x32xf32>
    %141 = arith.addf %139, %140 : vector<16x32xf32>
    %142 = arith.truncf %141 : vector<16x32xf32> to vector<16x32xbf16>
    %c1 = arith.constant 1 : index
    %c0_65 = arith.constant 0 : index
    %c0_66 = arith.constant 0 : index
    %143 = vector.load %arg3[%c1, %c0_65, %c0_66] : memref<2x32x96xbf16, #tpu.memory_space<vmem>>, vector<1x32x96xbf16>
    %144 = vector.shape_cast %143 : vector<1x32x96xbf16> to vector<32x96xbf16>
    %cst_67 = arith.constant dense<0.000000e+00> : vector<16x96xf32>
    %145 = tpu.matmul %142, %144, %cst_67 {dimension_numbers = #tpu.dot_dimension_numbers<[1], [0], [0], [1], [0, 0, 1, 1], [], []>} : vector<16x32xbf16>, vector<32x96xbf16>, vector<16x96xf32> -> vector<16x96xf32>
    %c1_68 = arith.constant 1 : index
    %c0_69 = arith.constant 0 : index
    %c0_70 = arith.constant 0 : index
    %146 = vector.load %arg4[%c1_68, %c0_69, %c0_70] : memref<2x1x96xf32, #tpu.memory_space<vmem>>, vector<1x1x96xf32>
    %147 = vector.shape_cast %146 : vector<1x1x96xf32> to vector<1x96xf32>
    %148 = vector.broadcast %147 : vector<1x96xf32> to vector<16x96xf32>
    %149 = arith.addf %145, %148 : vector<16x96xf32>
    %150 = vector.extract_strided_slice %149 {offsets = [0, 0], sizes = [16, 8], strides = [1, 1]} : vector<16x96xf32> to vector<16x8xf32>
    %151 = arith.truncf %150 : vector<16x8xf32> to vector<16x8xbf16>
    %152 = vector.extract_strided_slice %149 {offsets = [0, 32], sizes = [16, 8], strides = [1, 1]} : vector<16x96xf32> to vector<16x8xf32>
    %153 = arith.truncf %152 : vector<16x8xf32> to vector<16x8xbf16>
    %cst_71 = arith.constant dense<0.000000e+00> : vector<16x16xf32>
    %154 = tpu.matmul %151, %153, %cst_71 {dimension_numbers = #tpu.dot_dimension_numbers<[1], [1], [0], [0], [0, 0, 1, 0], [], []>} : vector<16x8xbf16>, vector<16x8xbf16>, vector<16x16xf32> -> vector<16x16xf32>
    %155 = vector.extract_strided_slice %149 {offsets = [0, 8], sizes = [16, 8], strides = [1, 1]} : vector<16x96xf32> to vector<16x8xf32>
    %156 = arith.truncf %155 : vector<16x8xf32> to vector<16x8xbf16>
    %157 = vector.extract_strided_slice %149 {offsets = [0, 40], sizes = [16, 8], strides = [1, 1]} : vector<16x96xf32> to vector<16x8xf32>
    %158 = arith.truncf %157 : vector<16x8xf32> to vector<16x8xbf16>
    %cst_72 = arith.constant dense<0.000000e+00> : vector<16x16xf32>
    %159 = tpu.matmul %156, %158, %cst_72 {dimension_numbers = #tpu.dot_dimension_numbers<[1], [1], [0], [0], [0, 0, 1, 0], [], []>} : vector<16x8xbf16>, vector<16x8xbf16>, vector<16x16xf32> -> vector<16x16xf32>
    %160 = vector.extract_strided_slice %149 {offsets = [0, 16], sizes = [16, 8], strides = [1, 1]} : vector<16x96xf32> to vector<16x8xf32>
    %161 = arith.truncf %160 : vector<16x8xf32> to vector<16x8xbf16>
    %162 = vector.extract_strided_slice %149 {offsets = [0, 48], sizes = [16, 8], strides = [1, 1]} : vector<16x96xf32> to vector<16x8xf32>
    %163 = arith.truncf %162 : vector<16x8xf32> to vector<16x8xbf16>
    %cst_73 = arith.constant dense<0.000000e+00> : vector<16x16xf32>
    %164 = tpu.matmul %161, %163, %cst_73 {dimension_numbers = #tpu.dot_dimension_numbers<[1], [1], [0], [0], [0, 0, 1, 0], [], []>} : vector<16x8xbf16>, vector<16x8xbf16>, vector<16x16xf32> -> vector<16x16xf32>
    %165 = vector.extract_strided_slice %149 {offsets = [0, 24], sizes = [16, 8], strides = [1, 1]} : vector<16x96xf32> to vector<16x8xf32>
    %166 = arith.truncf %165 : vector<16x8xf32> to vector<16x8xbf16>
    %167 = vector.extract_strided_slice %149 {offsets = [0, 56], sizes = [16, 8], strides = [1, 1]} : vector<16x96xf32> to vector<16x8xf32>
    %168 = arith.truncf %167 : vector<16x8xf32> to vector<16x8xbf16>
    %cst_74 = arith.constant dense<0.000000e+00> : vector<16x16xf32>
    %169 = tpu.matmul %166, %168, %cst_74 {dimension_numbers = #tpu.dot_dimension_numbers<[1], [1], [0], [0], [0, 0, 1, 0], [], []>} : vector<16x8xbf16>, vector<16x8xbf16>, vector<16x16xf32> -> vector<16x16xf32>
    %170 = tpu.concatenate %154, %159, %164, %169 in 0 : vector<16x16xf32>, vector<16x16xf32>, vector<16x16xf32>, vector<16x16xf32> -> vector<64x16xf32>
    %c0_75 = arith.constant 0 : index
    %c0_76 = arith.constant 0 : index
    %c0_77 = arith.constant 0 : index
    %171 = vector.load %arg2[%c0_75, %c0_76, %c0_77] : memref<1x64x16xf32, #tpu.memory_space<vmem>>, vector<1x64x16xf32>
    %172 = vector.shape_cast %171 : vector<1x64x16xf32> to vector<64x16xf32>
    %173 = arith.addf %170, %172 : vector<64x16xf32>
    %cst_78 = arith.constant dense<0xFF800000> : vector<64xf32>
    %174 = vector.multi_reduction <maximumf>, %173, %cst_78 [1] : vector<64x16xf32> to vector<64xf32>
    %175 = vector.shape_cast %174 : vector<64xf32> to vector<64x1xf32>
    %176 = vector.broadcast %175 : vector<64x1xf32> to vector<64x16xf32>
    %177 = arith.subf %173, %176 : vector<64x16xf32>
    %178 = math.exp %177 : vector<64x16xf32>
    %cst_79 = arith.constant dense<0.000000e+00> : vector<64xf32>
    %179 = vector.multi_reduction <add>, %178, %cst_79 [1] : vector<64x16xf32> to vector<64xf32>
    %180 = vector.shape_cast %179 : vector<64xf32> to vector<64x1xf32>
    %181 = tpu.reciprocal %180 {approx = true} : vector<64x1xf32> -> vector<64x1xf32>
    %182 = vector.broadcast %181 : vector<64x1xf32> to vector<64x16xf32>
    %183 = arith.mulf %178, %182 : vector<64x16xf32>
    %184 = arith.truncf %183 : vector<64x16xf32> to vector<64x16xbf16>
    %185 = vector.extract_strided_slice %149 {offsets = [0, 64], sizes = [16, 8], strides = [1, 1]} : vector<16x96xf32> to vector<16x8xf32>
    %186 = arith.truncf %185 : vector<16x8xf32> to vector<16x8xbf16>
    %187 = vector.extract_strided_slice %184 {offsets = [0, 0], sizes = [16, 16], strides = [1, 1]} : vector<64x16xbf16> to vector<16x16xbf16>
    %cst_80 = arith.constant dense<0.000000e+00> : vector<16x8xf32>
    %188 = tpu.matmul %187, %186, %cst_80 {dimension_numbers = #tpu.dot_dimension_numbers<[1], [0], [0], [1], [0, 0, 1, 1], [], []>} : vector<16x16xbf16>, vector<16x8xbf16>, vector<16x8xf32> -> vector<16x8xf32>
    %189 = vector.extract_strided_slice %149 {offsets = [0, 72], sizes = [16, 8], strides = [1, 1]} : vector<16x96xf32> to vector<16x8xf32>
    %190 = arith.truncf %189 : vector<16x8xf32> to vector<16x8xbf16>
    %191 = vector.extract_strided_slice %184 {offsets = [16, 0], sizes = [16, 16], strides = [1, 1]} : vector<64x16xbf16> to vector<16x16xbf16>
    %cst_81 = arith.constant dense<0.000000e+00> : vector<16x8xf32>
    %192 = tpu.matmul %191, %190, %cst_81 {dimension_numbers = #tpu.dot_dimension_numbers<[1], [0], [0], [1], [0, 0, 1, 1], [], []>} : vector<16x16xbf16>, vector<16x8xbf16>, vector<16x8xf32> -> vector<16x8xf32>
    %193 = vector.extract_strided_slice %149 {offsets = [0, 80], sizes = [16, 8], strides = [1, 1]} : vector<16x96xf32> to vector<16x8xf32>
    %194 = arith.truncf %193 : vector<16x8xf32> to vector<16x8xbf16>
    %195 = vector.extract_strided_slice %184 {offsets = [32, 0], sizes = [16, 16], strides = [1, 1]} : vector<64x16xbf16> to vector<16x16xbf16>
    %cst_82 = arith.constant dense<0.000000e+00> : vector<16x8xf32>
    %196 = tpu.matmul %195, %194, %cst_82 {dimension_numbers = #tpu.dot_dimension_numbers<[1], [0], [0], [1], [0, 0, 1, 1], [], []>} : vector<16x16xbf16>, vector<16x8xbf16>, vector<16x8xf32> -> vector<16x8xf32>
    %197 = vector.extract_strided_slice %149 {offsets = [0, 88], sizes = [16, 8], strides = [1, 1]} : vector<16x96xf32> to vector<16x8xf32>
    %198 = arith.truncf %197 : vector<16x8xf32> to vector<16x8xbf16>
    %199 = vector.extract_strided_slice %184 {offsets = [48, 0], sizes = [16, 16], strides = [1, 1]} : vector<64x16xbf16> to vector<16x16xbf16>
    %cst_83 = arith.constant dense<0.000000e+00> : vector<16x8xf32>
    %200 = tpu.matmul %199, %198, %cst_83 {dimension_numbers = #tpu.dot_dimension_numbers<[1], [0], [0], [1], [0, 0, 1, 1], [], []>} : vector<16x16xbf16>, vector<16x8xbf16>, vector<16x8xf32> -> vector<16x8xf32>
    %201 = tpu.concatenate %188, %192, %196, %200 in 1 : vector<16x8xf32>, vector<16x8xf32>, vector<16x8xf32>, vector<16x8xf32> -> vector<16x32xf32>
    %202 = arith.truncf %201 : vector<16x32xf32> to vector<16x32xbf16>
    %c1_84 = arith.constant 1 : index
    %c0_85 = arith.constant 0 : index
    %c0_86 = arith.constant 0 : index
    %203 = vector.load %arg5[%c1_84, %c0_85, %c0_86] : memref<2x32x32xbf16, #tpu.memory_space<vmem>>, vector<1x32x32xbf16>
    %204 = vector.shape_cast %203 : vector<1x32x32xbf16> to vector<32x32xbf16>
    %cst_87 = arith.constant dense<0.000000e+00> : vector<16x32xf32>
    %205 = tpu.matmul %202, %204, %cst_87 {dimension_numbers = #tpu.dot_dimension_numbers<[1], [0], [0], [1], [0, 0, 1, 1], [], []>} : vector<16x32xbf16>, vector<32x32xbf16>, vector<16x32xf32> -> vector<16x32xf32>
    %c1_88 = arith.constant 1 : index
    %c0_89 = arith.constant 0 : index
    %c0_90 = arith.constant 0 : index
    %206 = vector.load %arg6[%c1_88, %c0_89, %c0_90] : memref<2x1x32xf32, #tpu.memory_space<vmem>>, vector<1x1x32xf32>
    %207 = vector.shape_cast %206 : vector<1x1x32xf32> to vector<1x32xf32>
    %208 = vector.broadcast %207 : vector<1x32xf32> to vector<16x32xf32>
    %209 = arith.addf %205, %208 : vector<16x32xf32>
    %210 = arith.addf %141, %209 : vector<16x32xf32>
    %c1_91 = arith.constant 1 : index
    %c0_92 = arith.constant 0 : index
    %c0_93 = arith.constant 0 : index
    %211 = vector.load %arg7[%c1_91, %c0_92, %c0_93] : memref<2x1x32xf32, #tpu.memory_space<vmem>>, vector<1x1x32xf32>
    %212 = vector.shape_cast %211 : vector<1x1x32xf32> to vector<1x32xf32>
    %c1_94 = arith.constant 1 : index
    %c0_95 = arith.constant 0 : index
    %c0_96 = arith.constant 0 : index
    %213 = vector.load %arg8[%c1_94, %c0_95, %c0_96] : memref<2x1x32xf32, #tpu.memory_space<vmem>>, vector<1x1x32xf32>
    %214 = vector.shape_cast %213 : vector<1x1x32xf32> to vector<1x32xf32>
    %cst_97 = arith.constant dense<0.000000e+00> : vector<16xf32>
    %215 = vector.multi_reduction <add>, %210, %cst_97 [1] : vector<16x32xf32> to vector<16xf32>
    %216 = vector.shape_cast %215 : vector<16xf32> to vector<16x1xf32>
    %cst_98 = arith.constant 3.200000e+01 : f32
    %217 = vector.broadcast %cst_98 : f32 to vector<16x1xf32>
    %218 = arith.divf %216, %217 : vector<16x1xf32>
    %219 = vector.broadcast %218 : vector<16x1xf32> to vector<16x32xf32>
    %220 = arith.subf %210, %219 : vector<16x32xf32>
    %221 = arith.mulf %220, %220 : vector<16x32xf32>
    %cst_99 = arith.constant dense<0.000000e+00> : vector<16xf32>
    %222 = vector.multi_reduction <add>, %221, %cst_99 [1] : vector<16x32xf32> to vector<16xf32>
    %223 = vector.shape_cast %222 : vector<16xf32> to vector<16x1xf32>
    %cst_100 = arith.constant 3.200000e+01 : f32
    %224 = vector.broadcast %cst_100 : f32 to vector<16x1xf32>
    %225 = arith.divf %223, %224 : vector<16x1xf32>
    %226 = vector.broadcast %218 : vector<16x1xf32> to vector<16x32xf32>
    %227 = arith.subf %210, %226 : vector<16x32xf32>
    %cst_101 = arith.constant 9.99999974E-6 : f32
    %228 = vector.broadcast %cst_101 : f32 to vector<16x1xf32>
    %229 = arith.addf %225, %228 : vector<16x1xf32>
    %230 = math.rsqrt %229 : vector<16x1xf32>
    %231 = vector.broadcast %230 : vector<16x1xf32> to vector<16x32xf32>
    %232 = arith.mulf %227, %231 : vector<16x32xf32>
    %233 = vector.broadcast %212 : vector<1x32xf32> to vector<16x32xf32>
    %234 = arith.mulf %232, %233 : vector<16x32xf32>
    %235 = vector.broadcast %214 : vector<1x32xf32> to vector<16x32xf32>
    %236 = arith.addf %234, %235 : vector<16x32xf32>
    %237 = arith.truncf %236 : vector<16x32xf32> to vector<16x32xbf16>
    %c1_102 = arith.constant 1 : index
    %c0_103 = arith.constant 0 : index
    %c0_104 = arith.constant 0 : index
    %238 = vector.load %arg9[%c1_102, %c0_103, %c0_104] : memref<2x32x2048xbf16, #tpu.memory_space<vmem>>, vector<1x32x2048xbf16>
    %239 = vector.shape_cast %238 : vector<1x32x2048xbf16> to vector<32x2048xbf16>
    %cst_105 = arith.constant dense<0.000000e+00> : vector<16x2048xf32>
    %240 = tpu.matmul %237, %239, %cst_105 {dimension_numbers = #tpu.dot_dimension_numbers<[1], [0], [0], [1], [0, 0, 1, 1], [], []>} : vector<16x32xbf16>, vector<32x2048xbf16>, vector<16x2048xf32> -> vector<16x2048xf32>
    %c1_106 = arith.constant 1 : index
    %c0_107 = arith.constant 0 : index
    %c0_108 = arith.constant 0 : index
    %241 = vector.load %arg10[%c1_106, %c0_107, %c0_108] : memref<2x1x2048xf32, #tpu.memory_space<vmem>>, vector<1x1x2048xf32>
    %242 = vector.shape_cast %241 : vector<1x1x2048xf32> to vector<1x2048xf32>
    %243 = vector.broadcast %242 : vector<1x2048xf32> to vector<16x2048xf32>
    %244 = arith.addf %240, %243 : vector<16x2048xf32>
    %cst_109 = arith.constant 0.000000e+00 : f32
    %245 = vector.broadcast %cst_109 : f32 to vector<16x2048xf32>
    %246 = arith.maximumf %244, %245 : vector<16x2048xf32>
    %247 = arith.truncf %246 : vector<16x2048xf32> to vector<16x2048xbf16>
    %c1_110 = arith.constant 1 : index
    %c0_111 = arith.constant 0 : index
    %c0_112 = arith.constant 0 : index
    %248 = vector.load %arg11[%c1_110, %c0_111, %c0_112] : memref<2x2048x32xbf16, #tpu.memory_space<vmem>>, vector<1x2048x32xbf16>
    %249 = vector.shape_cast %248 : vector<1x2048x32xbf16> to vector<2048x32xbf16>
    %cst_113 = arith.constant dense<0.000000e+00> : vector<16x32xf32>
    %250 = tpu.matmul %247, %249, %cst_113 {dimension_numbers = #tpu.dot_dimension_numbers<[1], [0], [0], [1], [0, 0, 1, 1], [], []>} : vector<16x2048xbf16>, vector<2048x32xbf16>, vector<16x32xf32> -> vector<16x32xf32>
    %c1_114 = arith.constant 1 : index
    %c0_115 = arith.constant 0 : index
    %c0_116 = arith.constant 0 : index
    %251 = vector.load %arg12[%c1_114, %c0_115, %c0_116] : memref<2x1x32xf32, #tpu.memory_space<vmem>>, vector<1x1x32xf32>
    %252 = vector.shape_cast %251 : vector<1x1x32xf32> to vector<1x32xf32>
    %253 = vector.broadcast %252 : vector<1x32xf32> to vector<16x32xf32>
    %254 = arith.addf %250, %253 : vector<16x32xf32>
    %255 = arith.addf %236, %254 : vector<16x32xf32>
    %c1_117 = arith.constant 1 : index
    %c0_118 = arith.constant 0 : index
    %c0_119 = arith.constant 0 : index
    %256 = vector.load %arg13[%c1_117, %c0_118, %c0_119] : memref<2x1x32xf32, #tpu.memory_space<vmem>>, vector<1x1x32xf32>
    %257 = vector.shape_cast %256 : vector<1x1x32xf32> to vector<1x32xf32>
    %c1_120 = arith.constant 1 : index
    %c0_121 = arith.constant 0 : index
    %c0_122 = arith.constant 0 : index
    %258 = vector.load %arg14[%c1_120, %c0_121, %c0_122] : memref<2x1x32xf32, #tpu.memory_space<vmem>>, vector<1x1x32xf32>
    %259 = vector.shape_cast %258 : vector<1x1x32xf32> to vector<1x32xf32>
    %cst_123 = arith.constant dense<0.000000e+00> : vector<16xf32>
    %260 = vector.multi_reduction <add>, %255, %cst_123 [1] : vector<16x32xf32> to vector<16xf32>
    %261 = vector.shape_cast %260 : vector<16xf32> to vector<16x1xf32>
    %cst_124 = arith.constant 3.200000e+01 : f32
    %262 = vector.broadcast %cst_124 : f32 to vector<16x1xf32>
    %263 = arith.divf %261, %262 : vector<16x1xf32>
    %264 = vector.broadcast %263 : vector<16x1xf32> to vector<16x32xf32>
    %265 = arith.subf %255, %264 : vector<16x32xf32>
    %266 = arith.mulf %265, %265 : vector<16x32xf32>
    %cst_125 = arith.constant dense<0.000000e+00> : vector<16xf32>
    %267 = vector.multi_reduction <add>, %266, %cst_125 [1] : vector<16x32xf32> to vector<16xf32>
    %268 = vector.shape_cast %267 : vector<16xf32> to vector<16x1xf32>
    %cst_126 = arith.constant 3.200000e+01 : f32
    %269 = vector.broadcast %cst_126 : f32 to vector<16x1xf32>
    %270 = arith.divf %268, %269 : vector<16x1xf32>
    %271 = vector.broadcast %263 : vector<16x1xf32> to vector<16x32xf32>
    %272 = arith.subf %255, %271 : vector<16x32xf32>
    %cst_127 = arith.constant 9.99999974E-6 : f32
    %273 = vector.broadcast %cst_127 : f32 to vector<16x1xf32>
    %274 = arith.addf %270, %273 : vector<16x1xf32>
    %275 = math.rsqrt %274 : vector<16x1xf32>
    %276 = vector.broadcast %275 : vector<16x1xf32> to vector<16x32xf32>
    %277 = arith.mulf %272, %276 : vector<16x32xf32>
    %278 = vector.broadcast %257 : vector<1x32xf32> to vector<16x32xf32>
    %279 = arith.mulf %277, %278 : vector<16x32xf32>
    %280 = vector.broadcast %259 : vector<1x32xf32> to vector<16x32xf32>
    %281 = arith.addf %279, %280 : vector<16x32xf32>
    %282 = vector.shape_cast %281 : vector<16x32xf32> to vector<1x16x32xf32>
    %cst_128 = arith.constant dense<0.000000e+00> : vector<1x32xf32>
    %283 = vector.multi_reduction <add>, %282, %cst_128 [1] : vector<1x16x32xf32> to vector<1x32xf32>
    %284 = vector.shape_cast %283 : vector<1x32xf32> to vector<1x1x32xf32>
    %c0_129 = arith.constant 0 : index
    %c0_130 = arith.constant 0 : index
    %c0_131 = arith.constant 0 : index
    %285 = vector.load %arg15[%c0_129, %c0_130, %c0_131] : memref<1x1x32xf32, #tpu.memory_space<vmem>>, vector<1x1x32xf32>
    tpu.vector_store %arg15[%c0_129, %c0_130, %c0_131], %284 {strides = array<i32>} : memref<1x1x32xf32, #tpu.memory_space<vmem>>, vector<1x1x32xf32>,
    return
  }
  func.func @transform_0(%arg0: i32) -> (i32, i32, i32) {
    %c0_i32 = arith.constant 0 : i32
    %c0_i32_0 = arith.constant 0 : i32
    %c0_i32_1 = arith.constant 0 : i32
    return %arg0, %c0_i32, %c0_i32_0 : i32, i32, i32
  }
  func.func @transform_1(%arg0: i32) -> (i32, i32, i32) {
    %c0_i32 = arith.constant 0 : i32
    %c0_i32_0 = arith.constant 0 : i32
    %c0_i32_1 = arith.constant 0 : i32
    return %arg0, %c0_i32, %c0_i32_0 : i32, i32, i32
  }
  func.func @transform_2(%arg0: i32) -> (i32, i32, i32) {
    %c0_i32 = arith.constant 0 : i32
    %c0_i32_0 = arith.constant 0 : i32
    %c0_i32_1 = arith.constant 0 : i32
    %c0_i32_2 = arith.constant 0 : i32
    return %c0_i32, %c0_i32_0, %c0_i32_1 : i32, i32, i32
  }
  func.func @transform_3(%arg0: i32) -> (i32, i32, i32) {
    %c0_i32 = arith.constant 0 : i32
    %c0_i32_0 = arith.constant 0 : i32
    %c0_i32_1 = arith.constant 0 : i32
    %c0_i32_2 = arith.constant 0 : i32
    return %c0_i32, %c0_i32_0, %c0_i32_1 : i32, i32, i32
  }
  func.func @transform_4(%arg0: i32) -> (i32, i32, i32) {
    %c0_i32 = arith.constant 0 : i32
    %c0_i32_0 = arith.constant 0 : i32
    %c0_i32_1 = arith.constant 0 : i32
    %c0_i32_2 = arith.constant 0 : i32
    return %c0_i32, %c0_i32_0, %c0_i32_1 : i32, i32, i32
  }
  func.func @transform_5(%arg0: i32) -> (i32, i32, i32) {
    %c0_i32 = arith.constant 0 : i32
    %c0_i32_0 = arith.constant 0 : i32
    %c0_i32_1 = arith.constant 0 : i32
    %c0_i32_2 = arith.constant 0 : i32
    return %c0_i32, %c0_i32_0, %c0_i32_1 : i32, i32, i32
  }
  func.func @transform_6(%arg0: i32) -> (i32, i32, i32) {
    %c0_i32 = arith.constant 0 : i32
    %c0_i32_0 = arith.constant 0 : i32
    %c0_i32_1 = arith.constant 0 : i32
    %c0_i32_2 = arith.constant 0 : i32
    return %c0_i32, %c0_i32_0, %c0_i32_1 : i32, i32, i32
  }
  func.func @transform_7(%arg0: i32) -> (i32, i32, i32) {
    %c0_i32 = arith.constant 0 : i32
    %c0_i32_0 = arith.constant 0 : i32
    %c0_i32_1 = arith.constant 0 : i32
    %c0_i32_2 = arith.constant 0 : i32
    return %c0_i32, %c0_i32_0, %c0_i32_1 : i32, i32, i32
  }
  func.func @transform_8(%arg0: i32) -> (i32, i32, i32) {
    %c0_i32 = arith.constant 0 : i32
    %c0_i32_0 = arith.constant 0 : i32
    %c0_i32_1 = arith.constant 0 : i32
    %c0_i32_2 = arith.constant 0 : i32
    return %c0_i32, %c0_i32_0, %c0_i32_1 : i32, i32, i32
  }
  func.func @transform_9(%arg0: i32) -> (i32, i32, i32) {
    %c0_i32 = arith.constant 0 : i32
    %c0_i32_0 = arith.constant 0 : i32
    %c0_i32_1 = arith.constant 0 : i32
    %c0_i32_2 = arith.constant 0 : i32
    return %c0_i32, %c0_i32_0, %c0_i32_1 : i32, i32, i32
  }
  func.func @transform_10(%arg0: i32) -> (i32, i32, i32) {
    %c0_i32 = arith.constant 0 : i32
    %c0_i32_0 = arith.constant 0 : i32
    %c0_i32_1 = arith.constant 0 : i32
    %c0_i32_2 = arith.constant 0 : i32
    return %c0_i32, %c0_i32_0, %c0_i32_1 : i32, i32, i32
  }
  func.func @transform_11(%arg0: i32) -> (i32, i32, i32) {
    %c0_i32 = arith.constant 0 : i32
    %c0_i32_0 = arith.constant 0 : i32
    %c0_i32_1 = arith.constant 0 : i32
    %c0_i32_2 = arith.constant 0 : i32
    return %c0_i32, %c0_i32_0, %c0_i32_1 : i32, i32, i32
  }
  func.func @transform_12(%arg0: i32) -> (i32, i32, i32) {
    %c0_i32 = arith.constant 0 : i32
    %c0_i32_0 = arith.constant 0 : i32
    %c0_i32_1 = arith.constant 0 : i32
    %c0_i32_2 = arith.constant 0 : i32
    return %c0_i32, %c0_i32_0, %c0_i32_1 : i32, i32, i32
  }
  func.func @transform_13(%arg0: i32) -> (i32, i32, i32) {
    %c0_i32 = arith.constant 0 : i32
    %c0_i32_0 = arith.constant 0 : i32
    %c0_i32_1 = arith.constant 0 : i32
    %c0_i32_2 = arith.constant 0 : i32
    return %c0_i32, %c0_i32_0, %c0_i32_1 : i32, i32, i32
  }
  func.func @transform_14(%arg0: i32) -> (i32, i32, i32) {
    %c0_i32 = arith.constant 0 : i32
    %c0_i32_0 = arith.constant 0 : i32
    %c0_i32_1 = arith.constant 0 : i32
    return %arg0, %c0_i32, %c0_i32_0 : i32, i32, i32
  }
}

</mosaic_0001>

<bundles_post_ra>
// kernel: custom-call.2
= control target key start
LH: loop header
LB: loop body
LE: loop exit
PB: predicated region body
PF: predicated region fallthrough
CT: control target
= control target key end

     0   :  { %s1672_s30 = smov 0   ;;  %s1674_s10 = smov 0   ;;  %s1981_s0 = inlined_call_operand.vmem [shape: f32[2,8,8], index: 0, kind: input, shape index: {}]   ;;  %s1982_s1 = inlined_call_operand.vmem [shape: f32[2,8,8], index: 1, kind: input, shape index: {}]   ;;  %s1983_s2 = inlined_call_operand.vmem [shape: f32[2,8,8], index: 2, kind: input, shape index: {}]   ;;  %s1984_s3 = inlined_call_operand.vmem [shape: f32[2,8,8], index: 3, kind: input, shape index: {}]   ;;  %s1985_s4 = inlined_call_operand.vmem [shape: f32[2,8], index: 4, kind: output, shape index: {0}]   ;;  %s1986_s5 = inlined_call_operand.vmem [shape: f32[2,8], index: 5, kind: output, shape index: {1}]   ;;  %s1987_s6 = inlined_call_operand.vmem [shape: f32[2,8,8], index: 6, kind: output, shape index: {2}]   ;;  %s1988_s7 = inlined_call_operand.vmem [shape: f32[2,8,8], index: 7, kind: output, shape index: {3}]   ;;  %s1989_s8 = inlined_call_operand.vmem [shape: f32[2,8,8], index: 8, kind: output, shape index: {4}]   ;;  %s1990_s9 = inlined_call_operand.vmem [shape: f32[2,8,8], index: 9, kind: output, shape index: {5}]  }
   0x1   :  { %s1676_s11 = smov 0  }
   0x2 LB: > { %s1688_s12 = sadd.s32 4294967295, %s1609_s11   ;;  %s1691_s13 = sadd.s32 1, %s1609_s11   ;;  %s1609_s11 = sphi %s1676_s11, %s1999_s11   ;;  %s1605_s10 = sphi %s1674_s10, %s1998_s10   ;;  %s1601_s30 = sphi %s1672_s30, %s1997_s30  }
   0x3   : > { %s20_s14 = sshrl.u32 %s1609_s11, 3  ;;  %s21_s15 = sshrl.u32 %s1691_s13, 3 }
   0x4   : > { %s22_s16 = ssub.s32 %s20_s14, %s21_s15  ;;  %s25_s17 = sadd.s32 1, %s1605_s10 }
   0x5   : > { %p23_p0 = scmp.eq.s32.totalorder %s22_s16, 0  ;;  %p35_p1 = scmp.ne.s32.totalorder %s1605_s10, %s1601_s30 }
   0x6   : > { %p36_p2 = scmp.eq.s32.totalorder %s1688_s12, 1  ;;  %p1470_p4 = scmp.ge.s32.totalorder %s1609_s11, 2 }
   0x7   : > { %s1700_s18 = scalar_select %p23_p0, %s1605_s10, %s25_s17  }
   0x8   : > { %p1702_p3 = por %p36_p2, %p35_p1  ;;  %86 = sbr.rel (%p1470_p4) target bundleno = 17 (0x11), region = 16 }
   0x9   : > { %1991 = sst [smem:[#allocation25_spill]] %s1700_s18  ;;  %s88_s20 = sand.u32 (!%p1470_p4), 1, %s1609_s11  }
   0xa   : > { %s1472_s21 = sshll.u32 (!%p1470_p4), %s1609_s11, 3  ;;  %s1471_s22 = sshll.u32 (!%p1470_p4), %s88_s20, 3 }
   0xb   : > { %s92_s25 = scalar_lea.vmem (!%p1470_p4), %s1981_s0, %s1472_s21  ;;  %s90_s26 = scalar_lea.vmem (!%p1470_p4), [#allocation0], %s1471_s22 }
   0xc   : > { %v120_v0 = vld [vmem:[%s92_s25] sm:$0xff] (!%p1470_p4)  ;;  %s130_s29 = scalar_lea.vmem (!%p1470_p4), %s1982_s1, %s1472_s21  ;;  %s168_s16 = scalar_lea.vmem (!%p1470_p4), %s1983_s2, %s1472_s21 }
   0xd   : > { %121 = vst [vmem:[%s90_s26] sm:$0xff] (!%p1470_p4), %v120_v0  ;;  %v158_v1 = vld [vmem:[%s130_s29] sm:$0xff] (!%p1470_p4)  ;;  %s128_s17 = scalar_lea.vmem (!%p1470_p4), [#allocation1], %s1471_s22  ;;  %s206_s23 = scalar_lea.vmem (!%p1470_p4), %s1984_s3, %s1472_s21 }
   0xe   : > { %159 = vst [vmem:[%s128_s17] sm:$0xff] (!%p1470_p4), %v158_v1  ;;  %v196_v2 = vld [vmem:[%s168_s16] sm:$0xff] (!%p1470_p4)  ;;  %s166_s24 = scalar_lea.vmem (!%p1470_p4), [#allocation2], %s1471_s22  ;;  %s204_s25 = scalar_lea.vmem (!%p1470_p4), [#allocation3], %s1471_s22 }
   0xf   : > { %197 = vst [vmem:[%s166_s24] sm:$0xff] %v196_v2  ;;  %v234_v3 = vld [vmem:[%s206_s23] sm:$0xff] }
  0x10   : > { %235 = vst [vmem:[%s204_s25] sm:$0xff] %v234_v3 }
  0x11 PF: > { %p1479_p5 = scmp.ge.s32.totalorder %s1609_s11, 1  ;;  %p240_p6 = scmp.lt.s32.totalorder %s1609_s11, 3 }
  0x13   : > { %p241_p7 = pnand %p1479_p5, %p240_p6 }
  0x15   : > { %244 = sbr.rel (%p241_p7) target bundleno = 992 (0x3e0), region = 156 }
  0x1c   : > { %s247_s26 = sand.u32 1, %s1688_s12   ;;  %s281_s27 = sand.u32 1, %s1601_s30   ;;  %v325_v4 = vlaneseq  ;;  %v1619_v11 = vmov 0.0  }
  0x1d   : > { %s1480_s28 = sshll.u32 %s247_s26, 3  ;;  %s1725_s18 = sshll.u32 %s281_s27, 1 }
  0x1e   : > { %v1727_v5 = vand.u32 127, %v325_v4  ;;  %v1729_v6 = vshrl.u32 %v325_v4, 7  ;;  %s249_s21 = scalar_lea.vmem [#allocation0], %s1480_s28  ;;  %s253_s22 = scalar_lea.vmem [#allocation1], %s1480_s28 }
  0x1f   : > { %v309_v7 = vld [vmem:[%s249_s21] sm:$0xff]  ;;  %v312_v8 = vld [vmem:[%s253_s22] sm:$0xff]  ;;  %s257_s29 = scalar_lea.vmem [#allocation2], %s1480_s28  ;;  %s261_s11 = scalar_lea.vmem [#allocation3], %s1480_s28 }
  0x20   : > { %v315_v9 = vld [vmem:[%s257_s29] sm:$0xff]  ;;  %v318_v10 = vld [vmem:[%s261_s11] sm:$0xff]  ;;  %s1731_s14 = scalar_lea.vmem [#allocation8], %s1480_s28  ;;  %s1734_s30 = scalar_lea.vmem [#allocation9], %s1480_s28  ;;  %v327_v5 = vmov %v1727_v5  ;;  %v330_v6 = vmov %v1729_v6  ;;  %vm1359_vm2 = vcmp.lt.s32.totalorder %v1727_v5, 8 }
  0x21   : > { %320 = vst [vmem:[%s1731_s14] sm:$0xff] %v1619_v11  ;;  %321 = vst [vmem:[%s1734_s30] sm:$0xff] %v1619_v11  ;;  %s308_s15 = smov [#allocation12]  ;;  %s311_s16 = smov [#allocation13]  ;;  %v340_v5 = vmov %v1727_v5  ;;  %v343_v6 = vmov %v1729_v6  ;;  %vm334_vm0 = vcmp.eq.s32.totalorder %v330_v6, %v327_v5 }
  0x22   : > { %s1737_s17 = scalar_lea.vmem [#allocation10], %s1480_s28  ;;  %s1740_s20 = scalar_lea.vmem [#allocation11], %s1480_s28  ;;  %310 = vst [vmem:[%s308_s15] sm:$0xff] %v309_v7  ;;  %313 = vst [vmem:[%s311_s16] sm:$0xff] %v312_v8  ;;  %vm347_vm1 = vcmp.eq.s32.totalorder %v343_v6, %v340_v5  ;;  %v1351_v5 = vmov %v1727_v5  ;;  %v1354_v6 = vmov %v1729_v6 }
  0x23   : > { %322 = vst [vmem:[%s1737_s17] sm:$0xff] %v1619_v11  ;;  %323 = vst [vmem:[%s1740_s20] sm:$0xff] %v1619_v11  ;;  %s314_s23 = smov [#allocation14]  ;;  %s317_s24 = smov [#allocation15]  ;;  %vm1364_vm3 = vcmp.eq.s32.totalorder %v1354_v6, %v1351_v5  ;;  %v1402_v5 = vmov %v1727_v5  ;;  %v1371_v6 = vmov %v1729_v6 }
  0x24   : > { %316 = vst [vmem:[%s314_s23] sm:$0xff] %v315_v9  ;;  %319 = vst [vmem:[%s317_s24] sm:$0xff] %v318_v10  ;;  %s324_s14 = smov %s1731_s14  ;;  %s337_s20 = smov %s1740_s20  ;;  %v1368_v5 = vmov %v1727_v5  ;;  %v1405_v6 = vmov %v1729_v6 }
  0x25   : > { %s283_s25 = scalar_lea.vmem [#allocation5], %s1725_s18  ;;  %s1355_s27 = smov [#allocation12]  ;;  %v1385_v5 = vmov %v1727_v5  ;;  %v1388_v6 = vmov %v1729_v6  ;;  %vm1415_vm4 = vcmp.eq.s32.totalorder %v1405_v6, %v1402_v5 }
  0x26   : > { %s1372_s28 = smov [#allocation13]  ;;  %s1389_s21 = smov [#allocation14] }
  0x27   : > { %s1406_s22 = smov [#allocation15] }
  0x28   : > { %v331_v12 = vld [vmem:[%s324_s14] sm:$0xff] }
  0x29   : > { %v335_v13 = vsel %vm334_vm0, 1.0, %v331_v12  ;;  %v1361_v16 = vld [vmem:[%s1355_s27] sm:$0xff] }
  0x2a   : > { %v344_v14 = vld [vmem:[%s337_s20] sm:$0xff]  ;;  %336 = vst [vmem:[%s324_s14] sm:$0xff] %v335_v13  ;;  %v1362_v18 = vsel %vm1359_vm2, %v1361_v16, 0.0 }
  0x2b   : > { %v348_v15 = vsel %vm347_vm1, 1.0, %v344_v14  ;;  %v1378_v17 = vld [vmem:[%s1372_s28] sm:$0xff]  ;;  %v1363_v22 = vmul.f32 %v1362_v18, %v1362_v18 }
  0x2c   : > { %349 = vst [vmem:[%s337_s20] sm:$0xff] %v348_v15  ;;  %v1379_v19 = vsel %vm1359_vm2, %v1378_v17, 0.0  ;;  %v1395_v20 = vld [vmem:[%s1389_s21] sm:$0xff] }
  0x2d   : > { %v1412_v21 = vld [vmem:[%s1406_s22] sm:$0xff]  ;;  %v1380_v23 = vmul.f32 %v1379_v19, %v1379_v19  ;;  %v1396_v24 = vsel %vm1359_vm2, %v1395_v20, 0.0  ;;  %v1365_v29 = vsel %vm1364_vm3, 0.0, %v1363_v22 }
  0x2e   : > { %v1413_v25 = vsel %vm1359_vm2, %v1412_v21, 0.0  ;;  %v1397_v26 = vmul.f32 %v1396_v24, %v1396_v24 }
  0x2f   : > { %v1382_v27 = vadd.f32 %v1380_v23, %v1363_v22  ;;  %v1414_v28 = vmul.f32 %v1413_v25, %v1413_v25  ;;  %v1381_v30 = vadd.f32 %v1380_v23, %v1365_v29 }
  0x31   : > { %v1399_v31 = vadd.f32 %v1397_v26, %v1382_v27  ;;  %v1398_v32 = vadd.f32 %v1397_v26, %v1381_v30  ;;  %v1416_v33 = vsel %vm1415_vm4, 0.0, %v1414_v28 }
  0x33   : > { %v1418_v34 = vadd.f32 %v1414_v28, %v1399_v31  ;;  %v1417_v35 = vadd.f32 %v1416_v33, %v1398_v32 }
  0x35   : > { %1419 = vadd.xlane.f32.xlu0 %v1418_v34 }
  0x39   : > { %1427 = vadd.xlane.f32.xlu0 %v1417_v35 }
  0xc2   : > { %v1420_v36 = vpop.xlane.xlu0 %1419 }
  0xc3   : > { %v1421_v37 = vrot.slane %v1420_v36, 4 }
  0xc5   : > { %v1422_v38 = vadd.f32 %v1421_v37, %v1420_v36 }
  0xc6   : > { %v1428_v39 = vpop.xlane.xlu0 %1427 }
  0xc7   : > { %v1423_v40 = vrot.slane %v1422_v38, 2  ;;  %v1429_v41 = vrot.slane %v1428_v39, 4 }
  0xc9   : > { %v1430_v42 = vadd.f32 %v1429_v41, %v1428_v39  ;;  %v1424_v43 = vadd.f32 %v1423_v40, %v1422_v38 }
  0xcb   : > { %v1431_v44 = vrot.slane %v1430_v42, 2  ;;  %v1425_v46 = vrot.slane %v1424_v43, 1 }
  0xcd   : > { %v1432_v45 = vadd.f32 %v1431_v44, %v1430_v42  ;;  %v1426_v49 = vadd.f32 %v1425_v46, %v1424_v43 }
  0xcf   : > { %v1433_v47 = vrot.slane %v1432_v45, 1 }
  0xd1   : > { %v1434_v48 = vadd.f32 %v1433_v47, %v1432_v45 }
  0xd3   : > { %1520 = vpush %v1434_v48 }
  0xd4   : > { %1522 = vpush %v1426_v49 }
 0x104   : > { %s1521_s29 = spop %1520 }
 0x105   : > { %s1523_s11 = spop %1522 }
 0x106   : > { %s1437_s15 = smul.f32 1e-10, %s1523_s11 }
 0x108   : > { %p1438_p8 = scmp.le.f32.partialorder %s1521_s29, %s1437_s15 }
 0x109   : > { %s1769_s16 = smov (!%p1438_p8), 0  }
 0x10a   : > { %1441 = sbr.rel (%p1438_p8) target bundleno = 948 (0x3b4), region = 499 }
 0x111 LB: >> { %s1774_s23 = smov 0   ;;  %s1613_s16 = sphi %s1769_s16, %s1993_s16  }
 0x112 LB: >>> { %s454_s24 = smov [#allocation12]  ;;  %v458_v5 = vmov %v1727_v5  ;;  %v461_v6 = vmov %v1729_v6  ;;  %s474_s27 = smov [#allocation13]  ;;  %vm777_vm14 = vcmp.eq.s32.totalorder %v1729_v6, 0  ;;  %vm789_vm15 = vcmp.eq.s32.totalorder %v1729_v6, 7  ;;  %s1617_s23 = sphi %s1774_s23, %s453_s23  }
 0x113   : >>> { %v478_v5 = vmov %v1727_v5  ;;  %v481_v6 = vmov %v1729_v6  ;;  %v462_v50 = vld [vmem:[%s454_s24] sm:$0xff]  ;;  %vm465_vm5 = vcmp.eq.s32.totalorder %v461_v6, %v458_v5  ;;  %s494_s28 = smov [#allocation15]  ;;  %s455_s21 = smov [#allocation16] }
 0x114   : >>> { %vm485_vm6 = vcmp.eq.s32.totalorder %v481_v6, %v478_v5  ;;  %v498_v5 = vmov %v1727_v5  ;;  %v501_v6 = vmov %v1729_v6  ;;  %v466_v51 = vsel %vm465_vm5, %v462_v50, 0.0  ;;  %v482_v52 = vld [vmem:[%s474_s27] sm:$0xff]  ;;  %s475_s22 = smov [#allocation17]  ;;  %s495_s29 = smov [#allocation18] }
 0x115   : >>> { %vm505_vm7 = vcmp.eq.s32.totalorder %v501_v6, %v498_v5  ;;  %v467_v53 = vrot.slane %v466_v51, 4  ;;  %v486_v54 = vsel %vm485_vm6, %v482_v52, 0.0  ;;  %v502_v55 = vld [vmem:[%s494_s28] sm:$0xff]  ;;  %s518_s11 = smov [#allocation17]  ;;  %s516_s15 = smov [#allocation16]  ;;  %v567_v5 = vmov %v1727_v5 }
 0x116   : >>> { %v487_v56 = vrot.slane %v486_v54, 4  ;;  %v506_v57 = vsel %vm505_vm7, %v502_v55, 0.0  ;;  %s520_s24 = smov [#allocation18]  ;;  %s555_s27 = smov [#allocation19]  ;;  %v570_v6 = vmov %v1729_v6  ;;  %v582_v5 = vmov %v1727_v5 }
 0x117   : >>> { %v468_v58 = vadd.f32 %v467_v53, %v466_v51  ;;  %v507_v59 = vrot.slane %v506_v57, 4  ;;  %s557_s28 = smov [#allocation20]  ;;  %v585_v6 = vmov %v1729_v6  ;;  %vm572_vm12 = vcmp.eq.s32.totalorder %v570_v6, %v567_v5  ;;  %s1796_s14 = smov %s1731_s14 }
 0x118   : >>> { %v488_v60 = vadd.f32 %v487_v56, %v486_v54  ;;  %vm587_vm13 = vcmp.eq.s32.totalorder %v585_v6, %v582_v5  ;;  %s1799_s30 = smov %s1734_s30  ;;  %s1802_s17 = smov %s1737_s17  ;;  %v825_v52 = vld [vmem:[%s1796_s14] sm:$0xff]  ;;  %v680_v5 = vmov %v1727_v5  ;;  %v683_v6 = vmov %v1729_v6 }
 0x119   : >>> { %v469_v61 = vrot.slane %v468_v58, 2  ;;  %v508_v62 = vadd.f32 %v507_v59, %v506_v57  ;;  %s1806_s20 = smov %s1740_s20  ;;  %v826_v53 = vld [vmem:[%s1799_s30] sm:$0xff]  ;;  %s819_s26 = smov [#allocation24]  ;;  %v653_v5 = vmov %v1727_v5  ;;  %v656_v6 = vmov %v1729_v6 }
 0x11a   : >>> { %v489_v63 = vrot.slane %v488_v60, 2  ;;  %v827_v56 = vld [vmem:[%s1802_s17] sm:$0xff]  ;;  %v694_v5 = vmov %v1727_v5  ;;  %v697_v6 = vmov %v1729_v6  ;;  %vm687_vm0 = vcmp.eq.s32.totalorder %v683_v6, %v680_v5  ;;  %s453_s23 = sadd.s32 1, %s1617_s23  }
 0x11b   : >>> { %v470_v0 = vadd.f32 %v469_v61, %v468_v58  ;;  %v509_v1 = vrot.slane %v508_v62, 2  ;;  %v828_v57 = vld [vmem:[%s1806_s20] sm:$0xff]  ;;  %v667_v5 = vmov %v1727_v5  ;;  %v670_v6 = vmov %v1729_v6  ;;  %p450_p9 = scmp.ge.s32.totalorder %s453_s23, 15  }
 0x11c   : >>> { %v490_v2 = vadd.f32 %v489_v63, %v488_v60  ;;  %vm661_vm1 = vcmp.eq.s32.totalorder %v656_v6, %v653_v5  ;;  %vm702_vm3 = vcmp.eq.s32.totalorder %v697_v6, %v694_v5  ;;  %vm674_vm4 = vcmp.eq.s32.totalorder %v670_v6, %v667_v5 }
 0x11d   : >>> { %v471_v3 = vrot.slane %v470_v0, 1  ;;  %v510_v4 = vadd.f32 %v509_v1, %v508_v62  ;;  %vm716_vm5 = vcmp.eq.s32.totalorder %v1727_v5, 0  ;;  %vm720_vm6 = vcmp.eq.s32.totalorder %v1727_v5, 1 }
 0x11e   : >>> { %v491_v7 = vrot.slane %v490_v2, 1  ;;  %vm733_vm7 = vcmp.eq.s32.totalorder %v1727_v5, 7  ;;  %v354_v5 = vmov (%p450_p9), %v1727_v5  ;;  %v357_v6 = vmov (%p450_p9), %v1729_v6 }
 0x11f   : >>> { %v472_v8 = vadd.f32 %v471_v3, %v470_v0  ;;  %v511_v9 = vrot.slane %v510_v4, 1  ;;  %v407_v5 = vmov (%p450_p9), %v1727_v5 }
 0x120   : >>> { %v492_v10 = vadd.f32 %v491_v7, %v490_v2 }
 0x121   : >>> { %473 = vst [vmem:[%s455_s21] sm:$0x1] %v472_v8  ;;  %v512_v11 = vadd.f32 %v511_v9, %v510_v4  ;;  %s514_s21 = smov [#allocation21] }
 0x122   : >>> { %493 = vst [vmem:[%s475_s22] sm:$0x1] %v492_v10  ;;  %s515_s22 = smov [#allocation22]  ;;  %s559_s21 = smov %s514_s21 }
 0x123   : >>> { %513 = vst [vmem:[%s495_s29] sm:$0x1] %v512_v11  ;;  %s561_s22 = smov %s515_s22  ;;  %s563_s29 = smov [#allocation21] }
 0x128   : >>> { %v517_v14 = vld [vmem:[%s516_s15] sm:$0xff]  ;;  %s576_s15 = smov [#allocation23] }
 0x129   : >>> { %v519_v12 = vld [vmem:[%s518_s11] sm:$0xff]  ;;  %v540_v27 = vand.u32 2147483647, %v517_v14  ;;  %s578_s11 = smov [#allocation22] }
 0x12a   : >>> { %v523_v13 = vmul.f32 2.0, %v519_v12  ;;  %v521_v15 = vld [vmem:[%s520_s24] sm:$0xff]  ;;  %v541_v32 = vand.u32 2147483647, %v519_v12  ;;  %s593_s24 = smov [#allocation23] }
 0x12b   : >>> { %v522_v16 = vsub.f32 %v521_v15, %v517_v14  ;;  %v542_v28 = vand.u32 2147483647, %v521_v15 }
 0x12c   : >>> { %1571 = vrcp.f32 %v523_v13 }
 0x12d   : >>> { %v543_v31 = vmin.f32 %v540_v27, %v542_v28 }
 0x12f   : >>> { %v544_v33 = vmul.f32 1.1920929e-08, %v543_v31 }
 0x131   : >>> { %vm545_vm11 = vcmp.le.f32.partialorder %v541_v32, %v544_v33 }
 0x136   : >>> { %v1572_v17 = vpop.eup %1571 }
 0x137   : >>> { %v525_v18 = vmul.f32 %v1572_v17, %v522_v16 }
 0x139   : >>> { %v527_v19 = vmul.f32 %v525_v18, %v525_v18  ;;  %vm526_vm10 = vcmp.ge.f32.partialorder %v525_v18, 0.0 }
 0x13b   : >>> { %v528_v20 = vadd.f32 1.0, %v527_v19 }
 0x13d   : >>> { %1573 = vrsqrt.f32 %v528_v20  ;;  %vm531_vm8 = vcmp.eq.f32.partialorder %v528_v20, inf  ;;  %v534_v22 = vand.u32 2147483648, %v528_v20  ;;  %vm533_vm9 = vcmp.eq.f32.partialorder %v528_v20, 0.0 }
 0x147   : >>> { %v1574_v21 = vpop.eup %1573 }
 0x148   : >>> { %v530_v23 = vmul.f32 %v1574_v21, %v528_v20 }
 0x14a   : >>> { %v532_v24 = vsel %vm531_vm8, %v528_v20, %v530_v23  ;;  %vm369_vm8 = vcmp.eq.s32.totalorder (%p450_p9), %v357_v6, %v354_v5  ;;  %v410_v6 = vmov (%p450_p9), %v1729_v6  ;;  %v373_v5 = vmov (%p450_p9), %v1727_v5 }
 0x14b   : >>> { %v535_v25 = vsel %vm533_vm9, %v534_v22, %v532_v24  ;;  %v376_v6 = vmov (%p450_p9), %v1729_v6  ;;  %v390_v5 = vmov (%p450_p9), %v1727_v5  ;;  %vm422_vm9 = vcmp.eq.s32.totalorder (%p450_p9), %v410_v6, %v407_v5 }
 0x14c   : >>> { %v536_v26 = vxor.u32 2147483648, %v535_v25  ;;  %v393_v6 = vmov (%p450_p9), %v1729_v6 }
 0x14e   : >>> { %v537_v29 = vsel %vm526_vm10, %v535_v25, %v536_v26 }
 0x14f   : >>> { %v538_v30 = vadd.f32 %v537_v29, %v525_v18 }
 0x151   : >>> { %1575 = vrcp.f32 %v538_v30 }
 0x15b   : >>> { %v1576_v34 = vpop.eup %1575 }
 0x15c   : >>> { %v546_v35 = vsel %vm545_vm11, 0.0, %v1576_v34 }
 0x15d   : >>> { %v547_v36 = vmul.f32 %v546_v35, %v546_v35  ;;  %v551_v37 = vmul.f32 %v546_v35, %v519_v12 }
 0x15f   : >>> { %v548_v38 = vadd.f32 1.0, %v547_v36  ;;  %v552_v39 = vsub.f32 %v517_v14, %v551_v37  ;;  %v554_v40 = vadd.f32 %v551_v37, %v521_v15 }
 0x161   : >>> { %1577 = vrsqrt.f32 %v548_v38  ;;  %556 = vst [vmem:[%s555_s27] sm:$0xff] %v552_v39  ;;  %558 = vst [vmem:[%s557_s28] sm:$0xff] %v554_v40  ;;  %s1789_s27 = smov [#allocation12]  ;;  %s591_s28 = smov [#allocation24] }
 0x162   : >>> { %v601_v49 = vld [vmem:[%s1789_s27] sm:$0xff] }
 0x16b   : >>> { %v1578_v41 = vpop.eup %1577 }
 0x16c   : >>> { %560 = vst [vmem:[%s559_s21] sm:$0xff] %v1578_v41  ;;  %v550_v42 = vmul.f32 %v1578_v41, %v546_v35  ;;  %s1791_s21 = smov [#allocation13] }
 0x16d   : >>> { %v602_v50 = vld [vmem:[%s1791_s21] sm:$0xff] }
 0x16e   : >>> { %562 = vst [vmem:[%s561_s22] sm:$0xff] %v550_v42  ;;  %s1793_s22 = smov [#allocation15] }
 0x16f   : >>> { %v604_v51 = vld [vmem:[%s1793_s22] sm:$0xff] }
 0x173   : >>> { %v564_v43 = vld [vmem:[%s563_s29] ss:$0 sm:$0xff]  ;;  %s817_s29 = smov [#allocation23] }
 0x174   : >>> { %v573_v44 = vsel %vm572_vm12, %v564_v43, 0.0 }
 0x175   : >>> { %574 = vadd.xlane.f32.xlu0 %v573_v44  ;;  %v579_v45 = vld [vmem:[%s578_s11] ss:$0 sm:$0xff]  ;;  %s1808_s11 = smov [#allocation14] }
 0x176   : >>> { %v588_v46 = vsel %vm587_vm13, %v579_v45, 0.0  ;;  %v603_v58 = vld [vmem:[%s1808_s11] sm:$0xff] }
 0x179   : >>> { %589 = vadd.xlane.f32.xlu0 %v588_v46 }
 0x202   : >>> { %v575_v47 = vpop.xlane.xlu0 %574 }
 0x203   : >>> { %577 = vst [vmem:[%s576_s15] sm:$0xff] %v575_v47  ;;  %s595_s15 = smov [#allocation24] }
 0x206   : >>> { %v590_v48 = vpop.xlane.xlu0 %589 }
 0x207   : >>> { %592 = vst [vmem:[%s591_s28] sm:$0xff] %v590_v48  ;;  %s1835_s28 = smov [#allocation14] }
 0x20a   : >>> { %v594_v54 = vld [vmem:[%s593_s24] sm:$0xff]  ;;  %s623_s24 = smov [#allocation22] }
 0x20b   : >>> { %v818_v55 = vld [vmem:[%s817_s29] sm:$0xff]  ;;  %v605_v59 = vmul.f32 %v601_v49, %v594_v54  ;;  %v608_v60 = vmul.f32 %v602_v50, %v594_v54  ;;  %v615_v61 = vmul.f32 %v604_v51, %v594_v54  ;;  %v612_v4 = vmul.f32 %v603_v58, %v594_v54  ;;  %s650_s29 = smov [#allocation19] }
 0x20c   : >>> { %v829_v62 = vmul.f32 %v825_v52, %v818_v55  ;;  %v832_v63 = vmul.f32 %v826_v53, %v818_v55  ;;  %v836_v0 = vmul.f32 %v827_v56, %v818_v55  ;;  %v839_v1 = vmul.f32 %v828_v57, %v818_v55  ;;  %v624_v24 = vld [vmem:[%s623_s24] ss:$0 sm:$0xff]  ;;  %s690_s24 = smov [#allocation15] }
 0x20d   : >>> { %v657_v55 = vld [vmem:[%s650_s29] ss:$0 sm:$0xff]  ;;  %s706_s29 = smov [#allocation13] }
 0x20e   : >>> { %v596_v2 = vld [vmem:[%s595_s15] sm:$0xff]  ;;  %s677_s15 = smov [#allocation14] }
 0x20f   : >>> { %v820_v3 = vld [vmem:[%s819_s26] sm:$0xff]  ;;  %v609_v7 = vmul.f32 %v604_v51, %v596_v2  ;;  %v611_v8 = vmul.f32 %v601_v49, %v596_v2  ;;  %v614_v9 = vmul.f32 %v602_v50, %v596_v2  ;;  %v606_v14 = vmul.f32 %v603_v58, %v596_v2  ;;  %s621_s26 = smov [#allocation21] }
 0x210   : >>> { %v830_v10 = vmul.f32 %v827_v56, %v820_v3  ;;  %v833_v11 = vmul.f32 %v828_v57, %v820_v3  ;;  %v835_v12 = vmul.f32 %v825_v52, %v820_v3  ;;  %v838_v13 = vmul.f32 %v826_v53, %v820_v3  ;;  %v622_v23 = vld [vmem:[%s621_s26] ss:$0 sm:$0xff]  ;;  %s649_s26 = smov [#allocation12] }
 0x211   : >>> { %v610_v15 = vsub.f32 %v608_v60, %v609_v7  ;;  %v616_v16 = vadd.f32 %v615_v61, %v614_v9  ;;  %v613_v18 = vadd.f32 %v612_v4, %v611_v8  ;;  %v607_v22 = vsub.f32 %v605_v59, %v606_v14 }
 0x212   : >>> { %v831_v17 = vsub.f32 %v829_v62, %v830_v10  ;;  %v834_v19 = vsub.f32 %v832_v63, %v833_v11  ;;  %v837_v20 = vadd.f32 %v836_v0, %v835_v12  ;;  %v840_v21 = vadd.f32 %v839_v1, %v838_v13 }
 0x213   : >>> { %618 = vst [vmem:[%s1791_s21] sm:$0xff] %v610_v15  ;;  %620 = vst [vmem:[%s1793_s22] sm:$0xff] %v616_v16  ;;  %s1837_s21 = smov [#allocation15]  ;;  %s1841_s22 = smov [#allocation13] }
 0x214   : >>> { %841 = vst [vmem:[%s1796_s14] sm:$0xff] %v831_v17  ;;  %619 = vst [vmem:[%s1808_s11] sm:$0xff] %v613_v18  ;;  %s845_s14 = smov %s1731_s14  ;;  %s691_s11 = smov [#allocation20] }
 0x215   : >>> { %842 = vst [vmem:[%s1799_s30] sm:$0xff] %v834_v19  ;;  %843 = vst [vmem:[%s1802_s17] sm:$0xff] %v837_v20  ;;  %s846_s17 = smov %s1737_s17  ;;  %s1828_s30 = smov %s1734_s30  ;;  %v698_v56 = vld [vmem:[%s691_s11] ss:$0 sm:$0xff] }
 0x216   : >>> { %844 = vst [vmem:[%s1806_s20] sm:$0xff] %v840_v21  ;;  %617 = vst [vmem:[%s1789_s27] sm:$0xff] %v607_v22  ;;  %s1831_s20 = smov %s1740_s20  ;;  %s1839_s27 = smov [#allocation12] }
 0x217   : >>> { %s1621_s11 = smov 127  }
 0x21a   : >>> { %v632_v39 = vld [vmem:[%s1837_s21] sm:$0xff] }
 0x21b   : >>> { %v847_v25 = vld [vmem:[%s845_s14] ss:$0 sm:$0xff]  ;;  %v1499_v27 = vld [vmem:[%s845_s14 + $0x7] ss:$0 sm:$0xff]  ;;  %v640_v42 = vmul.f32 %v632_v39, %v624_v24  ;;  %v643_v46 = vmul.f32 %v632_v39, %v622_v23 }
 0x21c   : >>> { %v1498_v26 = vld [vmem:[%s845_s14 - $0x1] sm:$0xfe]  ;;  %v1503_v34 = vld [vmem:[%s1828_s30 + $0x7] ss:$0 sm:$0xff] }
 0x21d   : >>> { %v854_v28 = vsel %vm777_vm14, %v847_v25, %v1498_v26  ;;  %v858_v29 = vld [vmem:[%s846_s17] ss:$0 sm:$0xff]  ;;  %v1501_v30 = vld [vmem:[%s846_s17 + $0x1] sm:$0x7f] }
 0x21e   : >>> { %v871_v31 = vld [vmem:[%s1828_s30] ss:$0 sm:$0xff]  ;;  %857 = vst [vmem:[%s845_s14] sm:$0xff] %v854_v28  ;;  %v866_v32 = vsel %vm789_vm15, %v1499_v27, %v1501_v30  ;;  %v1505_v37 = vld [vmem:[%s1831_s20 + $0x1] sm:$0x7f] }
 0x21f   : >>> { %v1502_v33 = vld [vmem:[%s1828_s30 - $0x1] sm:$0xfe]  ;;  %1500 = vst [vmem:[%s845_s14 + $0x1] sm:$0x1] %v858_v29  ;;  %868 = vst [vmem:[%s846_s17] sm:$0xff] %v866_v32  ;;  %v890_v40 = vsel %vm789_vm15, %v1503_v34, %v1505_v37 }
 0x220   : >>> { %v882_v35 = vld [vmem:[%s1831_s20] ss:$0 sm:$0xff]  ;;  %v878_v36 = vsel %vm777_vm14, %v871_v31, %v1502_v33 }
 0x221   : >>> { %v631_v38 = vld [vmem:[%s1835_s28] sm:$0xff]  ;;  %881 = vst [vmem:[%s1828_s30] sm:$0xff] %v878_v36  ;;  %892 = vst [vmem:[%s1831_s20] sm:$0xff] %v890_v40 }
 0x222   : >>> { %v639_v41 = vmul.f32 %v631_v38, %v622_v23  ;;  %v642_v43 = vmul.f32 %v631_v38, %v624_v24  ;;  %v629_v44 = vld [vmem:[%s1839_s27] sm:$0xff]  ;;  %1504 = vst [vmem:[%s1828_s30 + $0x1] sm:$0x1] %v882_v35 }
 0x223   : >>> { %v630_v45 = vld [vmem:[%s1841_s22] sm:$0xff]  ;;  %v633_v47 = vmul.f32 %v629_v44, %v622_v23  ;;  %v636_v49 = vmul.f32 %v629_v44, %v624_v24 }
 0x224   : >>> { %v634_v48 = vmul.f32 %v630_v45, %v624_v24  ;;  %v641_v50 = vsub.f32 %v639_v41, %v640_v42  ;;  %v637_v51 = vmul.f32 %v630_v45, %v622_v23  ;;  %v644_v52 = vadd.f32 %v643_v46, %v642_v43 }
 0x226   : >>> { %v635_v53 = vsub.f32 %v633_v47, %v634_v48  ;;  %647 = vst [vmem:[%s1835_s28] sm:$0xff] %v641_v50  ;;  %v638_v54 = vadd.f32 %v637_v51, %v636_v49  ;;  %648 = vst [vmem:[%s1837_s21] sm:$0xff] %v644_v52  ;;  %s664_s28 = smov [#allocation13]  ;;  %s1875_s21 = smov [#allocation14] }
 0x228   : >>> { %645 = vst [vmem:[%s1839_s27] sm:$0xff] %v635_v53  ;;  %646 = vst [vmem:[%s1841_s22] sm:$0xff] %v638_v54  ;;  %s705_s27 = smov [#allocation12]  ;;  %s1620_s22 = smov 1  }
 0x22d   : >>> { %v684_v57 = vld [vmem:[%s677_s15] sm:$0xff] }
 0x22e   : >>> { %v688_v58 = vsel %vm687_vm0, 0.0, %v684_v57  ;;  %v699_v60 = vld [vmem:[%s690_s24] sm:$0xff] }
 0x22f   : >>> { %v658_v59 = vld [vmem:[%s649_s26] sm:$0xff]  ;;  %689 = vst [vmem:[%s677_s15] sm:$0xff] %v688_v58  ;;  %v703_v63 = vsel %vm702_vm3, %v698_v56, %v699_v60  ;;  %s1878_s15 = smov [#allocation15] }
 0x230   : >>> { %v662_v61 = vsel %vm661_vm1, %v657_v55, %v658_v59  ;;  %v671_v62 = vld [vmem:[%s664_s28] sm:$0xff]  ;;  %704 = vst [vmem:[%s690_s24] sm:$0xff] %v703_v63  ;;  %s793_s24 = smov [#allocation13] }
 0x231   : >>> { %663 = vst [vmem:[%s649_s26] sm:$0xff] %v662_v61  ;;  %v675_v0 = vsel %vm674_vm4, 0.0, %v671_v62  ;;  %s769_s26 = smov [#allocation12] }
 0x232   : >>> { %676 = vst [vmem:[%s664_s28] sm:$0xff] %v675_v0  ;;  %s770_s28 = smov [#allocation14] }
 0x236   : >>> { %v743_v1 = vld [vmem:[%s1875_s21] sm:$0xff] }
 0x237   : >>> { %744 = vrot.lane.b32.xlu0 %v743_v1, %s1620_s22  ;;  %v739_v4 = vld [vmem:[%s1878_s15] sm:$0xff] }
 0x238   : >>> { %v711_v2 = vld [vmem:[%s705_s27] sm:$0xff] }
 0x239   : >>> { %712 = vrot.lane.b32.xlu1 %v711_v2, %s1620_s22  ;;  %v707_v3 = vld [vmem:[%s706_s29] sm:$0xff] }
 0x23d   : >>> { %708 = vrot.lane.b32.xlu1 %v707_v3, %s1620_s22 }
 0x241   : >>> { %729 = vrot.lane.b32.xlu1 %v707_v3, %s1621_s11 }
 0x245   : >>> { %740 = vrot.lane.b32.xlu1 %v739_v4, %s1620_s22  ;;  %s358_s22 = smov (%p450_p9), [#allocation12] }
 0x249   : >>> { %761 = vrot.lane.b32.xlu1 %v739_v4, %s1621_s11  ;;  %s394_s11 = smov (%p450_p9), [#allocation14] }
 0x2a9   : >>> { %v745_v13 = vpop.permute.xlu0 %744 }
 0x2aa   : >>> { %v749_v15 = vsel %vm716_vm5, %v743_v1, %v745_v13 }
 0x2ab   : >>> { %v713_v7 = vpop.permute.xlu1 %712 }
 0x2ac   : >>> { %v717_v8 = vsel %vm716_vm5, %v711_v2, %v713_v7 }
 0x2af   : >>> { %v709_v9 = vpop.permute.xlu1 %708 }
 0x2b0   : >>> { %v721_v10 = vsel %vm720_vm6, %v709_v9, %v717_v8 }
 0x2b1   : >>> { %v727_v11 = vsel %vm1359_vm2, %v721_v10, 0.0 }
 0x2b2   : >>> { %735 = vst [vmem:[%s705_s27] sm:$0xff] %v727_v11  ;;  %s794_s27 = smov [#allocation15] }
 0x2b3   : >>> { %v730_v12 = vpop.permute.xlu1 %729 }
 0x2b4   : >>> { %v734_v14 = vsel %vm733_vm7, %v711_v2, %v730_v12 }
 0x2b5   : >>> { %736 = vst [vmem:[%s706_s29] sm:$0xff] %v734_v14  ;;  %s377_s29 = smov (%p450_p9), [#allocation13] }
 0x2b7   : >>> { %v741_v16 = vpop.permute.xlu1 %740 }
 0x2b8   : >>> { %v753_v17 = vsel %vm720_vm6, %v741_v16, %v749_v15 }
 0x2b9   : >>> { %v771_v18 = vld [vmem:[%s769_s26] ss:$0 sm:$0xff]  ;;  %v1491_v20 = vld [vmem:[%s769_s26 + $0x7] ss:$0 sm:$0xff]  ;;  %v759_v22 = vsel %vm1359_vm2, %v753_v17, 0.0 }
 0x2ba   : >>> { %v1490_v19 = vld [vmem:[%s769_s26 - $0x1] sm:$0xfe]  ;;  %767 = vst [vmem:[%s1875_s21] sm:$0xff] %v759_v22  ;;  %s893_s21 = sadd.s32 (%p450_p9), 1, %s1613_s16  }
 0x2bb   : >>> { %v778_v21 = vsel %vm777_vm14, %v771_v18, %v1490_v19  ;;  %v762_v23 = vpop.permute.xlu1 %761  ;;  %p446_p10 = scmp.ge.s32.totalorder (%p450_p9), %s893_s21, 15  ;;  %s1993_s16 = smov (%p450_p9), %s893_s21 }
 0x2bc   : >>> { %781 = vst [vmem:[%s769_s26] sm:$0xff] %v778_v21  ;;  %v795_v24 = vld [vmem:[%s793_s24] ss:$0 sm:$0xff]  ;;  %v1495_v26 = vld [vmem:[%s793_s24 + $0x7] ss:$0 sm:$0xff]  ;;  %v766_v27 = vsel %vm733_vm7, %v743_v1, %v762_v23 }
 0x2bd   : >>> { %v1494_v25 = vld [vmem:[%s793_s24 - $0x1] sm:$0xfe]  ;;  %768 = vst [vmem:[%s1878_s15] sm:$0xff] %v766_v27  ;;  %s411_s15 = smov (%p450_p9), [#allocation15] }
 0x2be   : >>> { %v802_v28 = vsel %vm777_vm14, %v795_v24, %v1494_v25 }
 0x2bf   : >>> { %805 = vst [vmem:[%s793_s24] sm:$0xff] %v802_v28 }
 0x2c1   : >>> { %v782_v29 = vld [vmem:[%s770_s28] ss:$0 sm:$0xff]  ;;  %v1493_v30 = vld [vmem:[%s770_s28 + $0x1] sm:$0x7f] }
 0x2c2   : >>> { %1492 = vst [vmem:[%s769_s26 + $0x1] sm:$0x1] %v782_v29  ;;  %v790_v31 = vsel %vm789_vm15, %v1491_v20, %v1493_v30  ;;  %452 = sbr.rel (!%p450_p9) target bundleno = 274 (0x112), region = 494 }
 0x2c3   : >>> { %792 = vst [vmem:[%s770_s28] sm:$0xff] %v790_v31 }
 0x2c4   : >>> { %v806_v32 = vld [vmem:[%s794_s27] ss:$0 sm:$0xff]  ;;  %v1497_v33 = vld [vmem:[%s794_s27 + $0x1] sm:$0x7f] }
 0x2c5   : >>> { %1496 = vst [vmem:[%s793_s24 + $0x1] sm:$0x1] %v806_v32  ;;  %v814_v34 = vsel %vm789_vm15, %v1495_v26, %v1497_v33 }
 0x2c6   : >>> { %816 = vst [vmem:[%s794_s27] sm:$0xff] %v814_v34 }
 0x2c9   : >> { %v364_v35 = vld [vmem:[%s358_s22] sm:$0xff] }
 0x2ca   : >> { %v365_v37 = vsel %vm1359_vm2, %v364_v35, 0.0  ;;  %v400_v39 = vld [vmem:[%s394_s11] sm:$0xff] }
 0x2cb   : >> { %v366_v41 = vmul.f32 %v365_v37, %v365_v37  ;;  %v401_v43 = vsel %vm1359_vm2, %v400_v39, 0.0 }
 0x2cc   : >> { %v383_v36 = vld [vmem:[%s377_s29] sm:$0xff]  ;;  %v402_v45 = vmul.f32 %v401_v43, %v401_v43 }
 0x2cd   : >> { %v384_v38 = vsel %vm1359_vm2, %v383_v36, 0.0  ;;  %v417_v40 = vld [vmem:[%s411_s15] sm:$0xff]  ;;  %v370_v48 = vsel %vm369_vm8, 0.0, %v366_v41 }
 0x2ce   : >> { %v385_v42 = vmul.f32 %v384_v38, %v384_v38  ;;  %v418_v44 = vsel %vm1359_vm2, %v417_v40, 0.0 }
 0x2cf   : >> { %v419_v47 = vmul.f32 %v418_v44, %v418_v44 }
 0x2d0   : >> { %v387_v46 = vadd.f32 %v385_v42, %v366_v41  ;;  %v386_v49 = vadd.f32 %v385_v42, %v370_v48 }
 0x2d1   : >> { %v423_v52 = vsel %vm422_vm9, 0.0, %v419_v47 }
 0x2d2   : >> { %v404_v50 = vadd.f32 %v402_v45, %v387_v46  ;;  %v403_v51 = vadd.f32 %v402_v45, %v386_v49 }
 0x2d4   : >> { %v425_v53 = vadd.f32 %v419_v47, %v404_v50  ;;  %v424_v54 = vadd.f32 %v423_v52, %v403_v51 }
 0x2d6   : >> { %426 = vadd.xlane.f32.xlu0 %v425_v53 }
 0x2da   : >> { %434 = vadd.xlane.f32.xlu0 %v424_v54 }
 0x363   : >> { %v427_v55 = vpop.xlane.xlu0 %426 }
 0x364   : >> { %v428_v56 = vrot.slane %v427_v55, 4 }
 0x366   : >> { %v429_v57 = vadd.f32 %v428_v56, %v427_v55 }
 0x367   : >> { %v435_v58 = vpop.xlane.xlu0 %434 }
 0x368   : >> { %v430_v59 = vrot.slane %v429_v57, 2  ;;  %v436_v60 = vrot.slane %v435_v58, 4 }
 0x36a   : >> { %v437_v61 = vadd.f32 %v436_v60, %v435_v58  ;;  %v431_v62 = vadd.f32 %v430_v59, %v429_v57 }
 0x36c   : >> { %v438_v63 = vrot.slane %v437_v61, 2  ;;  %v432_v1 = vrot.slane %v431_v62, 1 }
 0x36e   : >> { %v439_v0 = vadd.f32 %v438_v63, %v437_v61  ;;  %v433_v4 = vadd.f32 %v432_v1, %v431_v62 }
 0x370   : >> { %v440_v2 = vrot.slane %v439_v0, 1 }
 0x372   : >> { %v441_v3 = vadd.f32 %v440_v2, %v439_v0 }
 0x374   : >> { %1524 = vpush %v441_v3 }
 0x375   : >> { %1526 = vpush %v433_v4 }
 0x3a5   : >> { %s1525_s23 = spop %1524 }
 0x3a6   : >> { %s1527_s26 = spop %1526 }
 0x3a7   : >> { %s444_s24 = smul.f32 1e-10, %s1527_s26 }
 0x3a9   : >> { %p445_p11 = scmp.le.f32.partialorder %s1525_s23, %s444_s24 }
 0x3ab   : >> { %p447_p12 = por %p446_p10, %p445_p11 }
 0x3ad   : > { %895 = sbr.rel (!%p447_p12) target bundleno = 273 (0x111), region = 505 }
 0x3b4 PF: > { %s900_s28 = smov [#allocation12]  ;;  %v904_v5 = vmov %v1727_v5  ;;  %v907_v6 = vmov %v1729_v6  ;;  %s920_s27 = smov [#allocation15] }
 0x3b5   : > { %v924_v5 = vmov %v1727_v5  ;;  %v927_v6 = vmov %v1729_v6  ;;  %v908_v7 = vld [vmem:[%s900_s28] sm:$0xff]  ;;  %vm911_vm10 = vcmp.eq.s32.totalorder %v907_v6, %v904_v5  ;;  %s896_s16 = sand.u32 7, %s1688_s12   ;;  %s1994_s29 = scalar_lea.vmem [#allocation7], %s1725_s18 }
 0x3b6   : > { %vm931_vm11 = vcmp.eq.s32.totalorder %v927_v6, %v924_v5  ;;  %v912_v8 = vsel %vm911_vm10, %v908_v7, 0.0  ;;  %v928_v10 = vld [vmem:[%s920_s27] sm:$0xff]  ;;  %s897_s21 = scalar_lea.vmem [#allocation4], %s896_s16  ;;  %s899_s22 = scalar_lea.vmem [#allocation6], %s896_s16 }
 0x3b7   : > { %v913_v9 = vrot.slane %v912_v8, 4  ;;  %v932_v11 = vsel %vm931_vm11, %v928_v10, 0.0  ;;  %s901_s21 = smov %s897_s21  ;;  %s921_s22 = smov %s899_s22 }
 0x3b8   : > { %v933_v13 = vrot.slane %v932_v11, 4  ;;  %s979_s11 = sshrl.u32 (%p1702_p3), %s1688_s12, 3 }
 0x3b9   : > { %v914_v12 = vadd.f32 %v913_v9, %v912_v8  ;;  %s1512_s15 = sshll.u32 (%p1702_p3), %s979_s11, 1 }
 0x3ba   : > { %v934_v15 = vadd.f32 %v933_v13, %v932_v11  ;;  %s981_s24 = scalar_lea.vmem (%p1702_p3), %s1985_s4, %s1512_s15 }
 0x3bb   : > { %v915_v14 = vrot.slane %v914_v12, 2 }
 0x3bc   : > { %v935_v17 = vrot.slane %v934_v15, 2 }
 0x3bd   : > { %v916_v16 = vadd.f32 %v915_v14, %v914_v12 }
 0x3be   : > { %v936_v19 = vadd.f32 %v935_v17, %v934_v15 }
 0x3bf   : > { %v917_v18 = vrot.slane %v916_v16, 1 }
 0x3c0   : > { %v937_v5 = vrot.slane %v936_v19, 1 }
 0x3c1   : > { %v918_v20 = vadd.f32 %v917_v18, %v916_v16 }
 0x3c2   : > { %v938_v6 = vadd.f32 %v937_v5, %v936_v19 }
 0x3c3   : > { %919 = vst [vmem:[%s901_s21] sm:$0x1] %v918_v20 }
 0x3c4   : > { %939 = vst [vmem:[%s921_s22] sm:$0x1] %v938_v6 }
 0x3c6   : > { %978 = sbr.rel (!%p1702_p3) target bundleno = 980 (0x3d4), region = 174 }
 0x3ca   : > { %v943_v21 = vld [vmem:[#allocation4] sm:$0x3] }
 0x3cb   : > { %945 = vst [vmem:[%s283_s25] sm:$0x3] %v943_v21  ;;  %v949_v22 = vld [vmem:[#allocation6] sm:$0x3] }
 0x3cc   : > { %951 = vst [vmem:[%s1994_s29] sm:$0x3] %v949_v22 }
 0x3d2   : > { %v997_v23 = vld [vmem:[%s283_s25] sm:$0x3] }
 0x3d3   : > { %998 = vst [vmem:[%s981_s24] sm:$0x3] %v997_v23 }
 0x3d4 PF: > { %1015 = sbr.rel (!%p1702_p3) target bundleno = 988 (0x3dc), region = 208  ;;  %s1016_s28 = sshrl.u32 (%p1702_p3), %s1688_s12, 3 }
 0x3d5   : > { %s1995_s27 = scalar_lea.vmem (%p1702_p3), [#allocation7], %s1725_s18  ;;  %s1513_s16 = sshll.u32 (%p1702_p3), %s1016_s28, 1 }
 0x3d6   : > { %s1018_s25 = scalar_lea.vmem (%p1702_p3), %s1986_s5, %s1513_s16 }
 0x3da   : > { %v1034_v24 = vld [vmem:[%s1995_s27] sm:$0x3] (%p1702_p3) }
 0x3db   : > { %1035 = vst [vmem:[%s1018_s25] sm:$0x3] %v1034_v24 }
 0x3dc PF: > { %s1514_s29 = sshll.u32 %s1688_s12, 3  ;;  %v1079_v25 = vld [vmem:[%s1731_s14] sm:$0xff]  ;;  %v1113_v26 = vld [vmem:[%s1734_s30] sm:$0xff] }
 0x3dd   : > { %v1147_v27 = vld [vmem:[%s1737_s17] sm:$0xff]  ;;  %s1051_s18 = scalar_lea.vmem %s1987_s6, %s1514_s29  ;;  %s1085_s26 = scalar_lea.vmem %s1988_s7, %s1514_s29  ;;  %v1181_v28 = vld [vmem:[%s1740_s20] sm:$0xff] }
 0x3de   : > { %1080 = vst [vmem:[%s1051_s18] sm:$0xff] %v1079_v25  ;;  %1114 = vst [vmem:[%s1085_s26] sm:$0xff] %v1113_v26  ;;  %s1119_s27 = scalar_lea.vmem %s1989_s8, %s1514_s29  ;;  %s1153_s14 = scalar_lea.vmem %s1990_s9, %s1514_s29 }
 0x3df   : > { %1148 = vst [vmem:[%s1119_s27] sm:$0xff] %v1147_v27  ;;  %1182 = vst [vmem:[%s1153_s14] sm:$0xff] %v1181_v28 }
 0x3e0 PF: > { %s1996_s17 = sld [smem:[#allocation25_spill]]  ;;  %p13_p13 = scmp.ge.s32.totalorder %s1691_s13, 4  }
 0x3e1   : > { %s1997_s30 = smov %s1605_s10  ;;  %s1999_s11 = smov %s1691_s13 }
 0x3e2   :  { %15 = sbr.rel (!%p13_p13) target bundleno = 2 (0x2), region = 516 }
 0x3e6   : > { %s1998_s10 = smov %s1996_s17 }

// kernel: graph_encoder_forward.1
= control target key start
LH: loop header
LB: loop body
LE: loop exit
PB: predicated region body
PF: predicated region fallthrough
CT: control target
= control target key end

     0   :  { %s9566_s0 = inlined_call_operand.vmem [shape: f32[2,16,32], index: 0, kind: input, shape index: {}]   ;;  %s9567_s1 = inlined_call_operand.vmem [shape: f32[2,64,16], index: 1, kind: input, shape index: {}]   ;;  %s9568_s2 = inlined_call_operand.vmem [shape: bf16[2,32,96], index: 2, kind: input, shape index: {}]   ;;  %s9569_s3 = inlined_call_operand.vmem [shape: f32[2,1,96], index: 3, kind: input, shape index: {}]   ;;  %s9570_s4 = inlined_call_operand.vmem [shape: bf16[2,32,32], index: 4, kind: input, shape index: {}]   ;;  %s9571_s5 = inlined_call_operand.vmem [shape: f32[2,1,32], index: 5, kind: input, shape index: {}]   ;;  %s9572_s6 = inlined_call_operand.vmem [shape: f32[2,1,32], index: 6, kind: input, shape index: {}]   ;;  %s9573_s7 = inlined_call_operand.vmem [shape: f32[2,1,32], index: 7, kind: input, shape index: {}]   ;;  %s9574_s8 = inlined_call_operand.vmem [shape: bf16[2,32,2048], index: 8, kind: input, shape index: {}]   ;;  %s9575_s9 = inlined_call_operand.vmem [shape: f32[2,1,2048], index: 9, kind: input, shape index: {}]   ;;  %s9576_s10 = inlined_call_operand.vmem [shape: bf16[2,2048,32], index: 10, kind: input, shape index: {}]   ;;  %s9577_s11 = inlined_call_operand.vmem [shape: f32[2,1,32], index: 11, kind: input, shape index: {}]   ;;  %s9578_s12 = inlined_call_operand.vmem [shape: f32[2,1,32], index: 12, kind: input, shape index: {}]   ;;  %s9579_s13 = inlined_call_operand.vmem [shape: f32[2,1,32], index: 13, kind: input, shape index: {}]   ;;  %s9580_s14 = inlined_call_operand.hbm [shape: f32[2,1,32], index: 14, kind: output, shape index: {}]  }
   0x1   :  { %9596 = sst [smem:[#allocation7_spill]] %s9566_s0 }
   0x2   :  { %9597 = sst [smem:[#allocation8_spill]] %s9567_s1 }
   0x3   :  { %19 = vsyncpa [#allocation3], 0 }
   0x4   :  { %21 = vsyncpa [#allocation3 + $0x1], 0  ;;  %s7983_s29 = smov 0   ;;  %s7985_s30 = smov 0  }
   0x5   :  { %s7987_s15 = smov 0   ;;  %s7989_s16 = smov 0  }
   0x6 LB: > { %9598 = sst [smem:[#allocation5_spill]] %s7884_s15  ;;  %s8004_s17 = sadd.s32 4294967295, %s7888_s16   ;;  %s7888_s16 = sphi %s7989_s16, %s9622_s16   ;;  %s7884_s15 = sphi %s7987_s15, %s9619_s15   ;;  %s7880_s30 = sphi %s7985_s30, %s9621_s30   ;;  %s7876_s29 = sphi %s7983_s29, %s9620_s29  }
   0x7   : > { %s6166_s18 = sadd.s32 4294967294, %s7888_s16   ;;  %s8008_s19 = sadd.s32 1, %s7888_s16  }
   0x8   : > { %s338_s20 = sadd.s32 1, %s7884_s15  ;;  %s335_s21 = ssub.s32 %s7888_s16, %s8008_s19 }
   0x9   : > { %p348_p0 = scmp.ne.s32.totalorder %s7884_s15, %s7880_s30  ;;  %p336_p1 = scmp.eq.s32.totalorder %s335_s21, 0 }
   0xa   : > { %p349_p2 = scmp.eq.s32.totalorder %s8004_s17, 1  ;;  %p354_p3 = scmp.ne.s32.totalorder %s7880_s30, %s7876_s29 }
   0xb   : > { %p355_p4 = scmp.eq.s32.totalorder %s6166_s18, 1  ;;  %p6169_p7 = scmp.ge.s32.totalorder %s7888_s16, 1 }
   0xc   : > { %s8019_s22 = scalar_select %p336_p1, %s7884_s15, %s338_s20  }
   0xd   : > { %p8021_p5 = por %p349_p2, %p348_p0  ;;  %p8025_p6 = por %p355_p4, %p354_p3 }
   0xe   : > { %9599 = sst [smem:[#allocation6_spill]] %s8019_s22  ;;  %p425_p8 = scmp.lt.s32.totalorder %s7888_s16, 3 }
  0x10   : > { %p426_p9 = pnand %p6169_p7, %p425_p8 }
  0x11   : > { %v7472_v0 = vld [vmem:[%s9568_s2] sm:$0xff] (!%p426_p9)   ;;  %v7890_v1 = vmov (!%p426_p9), 0.0   ;;  %v7473_v2 = vld [vmem:[%s9568_s2 + $0x8] sm:$0xff] (!%p426_p9)   ;;  %vm7891_vm0 = vmmov (!%p426_p9), 0   ;;  %p475_p10 = scmp.lt.s32.totalorder (!%p426_p9), %s8004_s17, 1  ;;  %s9602_s0 = sld [smem:[#allocation7_spill]] (!%p426_p9) }
  0x12   : > { %429 = sbr.rel (%p426_p9) target bundleno = 5285 (0x14a5), region = 76  ;;  %7258 = vmatprep.subr.bf16.mxu0 (!%p426_p9), %v7890_v1  ;;  %7266 = vmatprep.subr.bf16.mxu1 (!%p426_p9), %v7890_v1  ;;  %vm512_vm1 = vcmask (!%p426_p9), 261120   ;;  %v6174_v6 = vld [vmem:[%s9569_s3] ss:$0 sm:$0xff] (!%p426_p9)  ;;  %s9590_s21 = smov (!%p426_p9), 96   ;;  %vm561_vm2 = vcmask (!%p426_p9), 64512  }
  0x13   : > { %7259 = vmatpush3.bf16.msra.mxu0 (!%p426_p9), %v7472_v0  ;;  %7262 = vmatprep.mubr.msk.bf16.mxu0 (!%p426_p9), %vm7891_vm0, %v7890_v1  ;;  %s9583_s25 = smov (!%p426_p9), 120   ;;  %s9594_s27 = smov (!%p426_p9), 88   ;;  %vm778_vm3 = vcmask (!%p426_p9), 130048   ;;  %vm1087_vm4 = vcmask (!%p426_p9), 195584   ;;  %vm6084_vm5 = vcmask (!%p426_p9), 253952  }
  0x14   : > { %7260 = vmatprep.subr.bf16.mxu0 (!%p426_p9), %v7890_v1  ;;  %7268 = vmatprep.mubr.msk.bf16.mxu1 (!%p426_p9), %vm7891_vm0, %v7890_v1  ;;  %s9582_s28 = smov (!%p426_p9), 112   ;;  %s9603_s1 = sld [smem:[#allocation8_spill]] (!%p426_p9) }
  0x15   : > { %s9612_s15 = smov (!%p426_p9), 64   ;;  %s9614_s22 = smov (!%p426_p9), 40  }
  0x17   : > { %7261 = vmatpush3.bf16.msra.mxu0 (!%p426_p9), %v7473_v2 }
  0x18   : > { %7272 = vmatprep.subr.bf16.mxu0 (!%p426_p9), %v7890_v1 }
  0x19   : > { %s8046_s18 = scalar_select %p475_p10, %s8004_s17, 1 }
  0x1b   : > { %s6860_s20 = sshll.u32 %s8046_s18, 4 }
  0x1c   : > { %s8052_s26 = scalar_lea.vmem %s9602_s0, %s6860_s20  ;;  %s9581_s20 = smov 80  }
  0x1d   : > { %v486_v3 = vld [vmem:[%s8052_s26] sm:$0xff]  ;;  %v487_v4 = vld [vmem:[%s8052_s26 + $0x8] sm:$0xff]  ;;  %s9585_s0 = smov 72  }
  0x1e   : > { %v488_v5 = vpack.c.bf16 %v487_v4, %v486_v3 }
  0x20   : > { %7263 = vmatmul.mubr.msk.bf16.vlgmr.msra.gmra.mrb[0].mxu0 %vm512_vm1, %v488_v5 }
  0x21   : > { %7274 = vmatprep.mubr.msk.bf16.mxu0 %vm7891_vm0, %v7890_v1 }
  0xf3   : > { %v550_v7 = vpop.f32.mrb[0].mxu0 }
  0xf4   : > { %v7264_v8 = vpop.f32.mrb[1].mxu0  ;;  %v551_v10 = vadd.f32 %v6174_v6, %v550_v7 }
  0xf5   : > { %v553_v9 = vpop.f32.mrb[2].mxu0 }
  0xf6   : > { %v554_v11 = vadd.f32 %v6174_v6, %v553_v9  ;;  %v7265_v12 = vpop.f32.mrb[3].mxu0 }
  0xf8   : > { %v8063_v13 = vpack.c.bf16 %v554_v11, %v551_v10 }
  0xfa   : > { %662 = vrot.lane.b32.xlu1 %v8063_v13, %s9581_s20  ;;  %559 = vrot.lane.b32.xlu0 %v8063_v13, %s9590_s21  ;;  %s9584_s20 = smov 104   ;;  %s9593_s21 = smov 8  }
  0xfe   : > { %609 = vrot.lane.b32.xlu1 %v8063_v13, %s9583_s25  ;;  %611 = vrot.lane.b32.xlu0 %v8063_v13, %s9594_s27  ;;  %s9587_s25 = smov 48   ;;  %s9607_s27 = smov 80  }
 0x102   : > { %660 = vrot.lane.b32.xlu1 %v8063_v13, %s9582_s28  ;;  %713 = vrot.lane.b32.xlu0 %v8063_v13, %s9585_s0  ;;  %s6861_s28 = sshll.u32 %s8046_s18, 6  ;;  %s9589_s18 = smov 56  }
 0x103   : > { %s8104_s0 = scalar_lea.vmem %s9603_s1, %s6861_s28  ;;  %s9586_s28 = smov 40  }
 0x104   : > { %v762_v25 = vld [vmem:[%s8104_s0] sm:$0xff]  ;;  %v763_v27 = vld [vmem:[%s8104_s0 + $0x8] sm:$0xff]  ;;  %v764_v31 = vld [vmem:[%s8104_s0 + $0x10] sm:$0xff]  ;;  %s9606_s1 = smov 72  }
 0x105   : > { %v765_v36 = vld [vmem:[%s8104_s0 + $0x18] sm:$0xff]  ;;  %v766_v41 = vld [vmem:[%s8104_s0 + $0x20] sm:$0xff]  ;;  %v767_v45 = vld [vmem:[%s8104_s0 + $0x28] sm:$0xff] }
 0x106   : > { %711 = vrot.lane.b32.xlu0 %v8063_v13, %s9584_s20  ;;  %v768_v51 = vld [vmem:[%s8104_s0 + $0x30] sm:$0xff]  ;;  %v769_v55 = vld [vmem:[%s8104_s0 + $0x38] sm:$0xff]  ;;  %s9588_s20 = smov 64  }
 0x16c   : > { %v560_v14 = vpop.permute.xlu0 %559  ;;  %v663_v16 = vpop.permute.xlu1 %662 }
 0x16d   : > { %v566_v15 = vsel %vm561_vm2, %v560_v14, 0  ;;  %v668_v19 = vsel %vm561_vm2, %v663_v16, 0 }
 0x16e   : > { %7267 = vmatpush3.bf16.xpose.msra.mxu1 %v566_v15 }
 0x16f   : > { %7278 = vmatprep.subr.bf16.mxu1 %v7890_v1 }
 0x170   : > { %v612_v17 = vpop.permute.xlu0 %611  ;;  %v610_v20 = vpop.permute.xlu1 %609 }
 0x171   : > { %v617_v18 = vsel %vm561_vm2, %v612_v17, 0 }
 0x172   : > { %7273 = vmatpush3.bf16.xpose.msra.mxu0 %v617_v18 }
 0x173   : > { %7284 = vmatprep.subr.bf16.mxu0 %v7890_v1 }
 0x174   : > { %v714_v21 = vpop.permute.xlu0 %713  ;;  %v661_v23 = vpop.permute.xlu1 %660 }
 0x175   : > { %7269 = vmatmul.mubr.msk.bf16.vlgmr.msra.gmra.mrb[0].mxu1 %vm561_vm2, %v8063_v13  ;;  %v719_v22 = vsel %vm561_vm2, %v714_v21, 0 }
 0x176   : > { %7279 = vmatpush3.bf16.xpose.msra.mxu1 %v668_v19  ;;  %7280 = vmatprep.mubr.msk.bf16.mxu1 %vm7891_vm0, %v7890_v1 }
 0x177   : > { %7290 = vmatprep.subr.bf16.mxu1 %v7890_v1 }
 0x178   : > { %v712_v24 = vpop.permute.xlu0 %711 }
 0x179   : > { %7275 = vmatmul.mubr.msk.bf16.vlgmr.msra.gmra.mrb[4].mxu0 %vm561_vm2, %v610_v20 }
 0x17a   : > { %7285 = vmatpush3.bf16.xpose.msra.mxu0 %v719_v22  ;;  %7286 = vmatprep.mubr.msk.bf16.mxu0 %vm7891_vm0, %v7890_v1 }
 0x17b   : > { %7296 = vmatprep.subr.bf16.mxu0 %v7890_v1 }
 0x17d   : > { %7281 = vmatmul.mubr.msk.bf16.vlgmr.msra.gmra.mrb[4].mxu1 %vm561_vm2, %v661_v23 }
 0x17e   : > { %7292 = vmatprep.mubr.msk.bf16.mxu1 %vm7891_vm0, %v7890_v1 }
 0x181   : > { %7287 = vmatmul.mubr.msk.bf16.vlgmr.msra.gmra.mrb[8].mxu0 %vm561_vm2, %v712_v24 }
 0x182   : > { %7298 = vmatprep.mubr.msk.bf16.mxu0 %vm7891_vm0, %v7890_v1 }
 0x248   : > { %v602_v26 = vpop.f32.mrb[0].mxu1 }
 0x249   : > { %v770_v28 = vadd.f32 %v762_v25, %v602_v26  ;;  %v7270_v29 = vpop.f32.mrb[1].mxu1 }
 0x24a   : > { %v605_v30 = vpop.f32.mrb[2].mxu1 }
 0x24b   : > { %v771_v32 = vadd.f32 %v763_v27, %v605_v30  ;;  %v7271_v33 = vpop.f32.mrb[3].mxu1  ;;  %v779_v34 = vsel %vm778_vm3, %v770_v28, -inf }
 0x24c   : > { %780 = vmax.xlane.f32.xlu1 %v779_v34  ;;  %v653_v35 = vpop.f32.mrb[4].mxu0 }
 0x24d   : > { %v772_v37 = vadd.f32 %v764_v31, %v653_v35  ;;  %v7276_v38 = vpop.f32.mrb[5].mxu0  ;;  %v782_v39 = vsel %vm778_vm3, %v771_v32, -inf }
 0x24e   : > { %783 = vmax.xlane.f32.xlu0 %v782_v39  ;;  %v656_v40 = vpop.f32.mrb[6].mxu0 }
 0x24f   : > { %v773_v42 = vadd.f32 %v765_v36, %v656_v40  ;;  %v7277_v43 = vpop.f32.mrb[7].mxu0  ;;  %v785_v48 = vsel %vm778_vm3, %v772_v37, -inf }
 0x250   : > { %v704_v44 = vpop.f32.mrb[4].mxu1 }
 0x251   : > { %v774_v46 = vadd.f32 %v766_v41, %v704_v44  ;;  %v7282_v47 = vpop.f32.mrb[5].mxu1  ;;  %v788_v49 = vsel %vm778_vm3, %v773_v42, -inf }
 0x252   : > { %v707_v50 = vpop.f32.mrb[6].mxu1  ;;  %786 = vmax.xlane.f32.xlu0 %v785_v48  ;;  %789 = vmax.xlane.f32.xlu1 %v788_v49 }
 0x253   : > { %v775_v52 = vadd.f32 %v767_v45, %v707_v50  ;;  %v7283_v53 = vpop.f32.mrb[7].mxu1  ;;  %v791_v58 = vsel %vm778_vm3, %v774_v46, -inf }
 0x254   : > { %v755_v54 = vpop.f32.mrb[8].mxu0 }
 0x255   : > { %v776_v56 = vadd.f32 %v768_v51, %v755_v54  ;;  %v7288_v57 = vpop.f32.mrb[9].mxu0  ;;  %v794_v59 = vsel %vm778_vm3, %v775_v52, -inf }
 0x256   : > { %792 = vmax.xlane.f32.xlu0 %v791_v58  ;;  %795 = vmax.xlane.f32.xlu1 %v794_v59  ;;  %v758_v60 = vpop.f32.mrb[10].mxu0 }
 0x257   : > { %v777_v61 = vadd.f32 %v769_v55, %v758_v60  ;;  %v7289_v62 = vpop.f32.mrb[11].mxu0  ;;  %v797_v63 = vsel %vm778_vm3, %v776_v56, -inf }
 0x259   : > { %v800_v0 = vsel %vm778_vm3, %v777_v61, -inf }
 0x25a   : > { %798 = vmax.xlane.f32.xlu0 %v797_v63  ;;  %801 = vmax.xlane.f32.xlu1 %v800_v0 }
 0x26b   : > { %918 = vrot.lane.b32.xlu1 %v8063_v13, %s9589_s18  ;;  %s9591_s18 = smov 24  }
 0x270   : > { %871 = vrot.lane.b32.xlu0 %v8063_v13, %s9588_s20  ;;  %s9609_s20 = smov 120  }
 0x2d9   : > { %v781_v2 = vpop.xlane.xlu1 %780 }
 0x2da   : > { %v803_v3 = vsub.f32 %v770_v28, %v781_v2 }
 0x2db   : > { %v784_v4 = vpop.xlane.xlu0 %783 }
 0x2dc   : > { %v811_v5 = vmul.f32 1.442695, %v803_v3  ;;  %v804_v6 = vsub.f32 %v771_v32, %v784_v4 }
 0x2de   : > { %7736 = vpow2.f32 %v811_v5  ;;  %v813_v7 = vmul.f32 1.442695, %v804_v6 }
 0x2df   : > { %v787_v8 = vpop.xlane.xlu0 %786  ;;  %v790_v9 = vpop.xlane.xlu1 %789 }
 0x2e0   : > { %7738 = vpow2.f32 %v813_v7  ;;  %v805_v10 = vsub.f32 %v772_v37, %v787_v8  ;;  %v806_v11 = vsub.f32 %v773_v42, %v790_v9 }
 0x2e2   : > { %v815_v12 = vmul.f32 1.442695, %v805_v10  ;;  %v817_v14 = vmul.f32 1.442695, %v806_v11 }
 0x2e3   : > { %v793_v15 = vpop.xlane.xlu0 %792  ;;  %v796_v16 = vpop.xlane.xlu1 %795 }
 0x2e4   : > { %7740 = vpow2.f32 %v815_v12  ;;  %v807_v17 = vsub.f32 %v774_v46, %v793_v15  ;;  %v808_v18 = vsub.f32 %v775_v52, %v796_v16  ;;  %v7474_v15 = vld [vmem:[%s9570_s4] sm:$0xff]  }
 0x2e5   : > { %7742 = vpow2.f32 %v817_v14 }
 0x2e6   : > { %v819_v19 = vmul.f32 1.442695, %v807_v17  ;;  %v821_v20 = vmul.f32 1.442695, %v808_v18 }
 0x2e7   : > { %v799_v21 = vpop.xlane.xlu0 %798  ;;  %v802_v22 = vpop.xlane.xlu1 %801 }
 0x2e8   : > { %v7737_v23 = vpop.eup %7736  ;;  %7744 = vpow2.f32 %v819_v19  ;;  %v809_v24 = vsub.f32 %v776_v56, %v799_v21  ;;  %v810_v25 = vsub.f32 %v777_v61, %v802_v22  ;;  %v7475_v19 = vld [vmem:[%s9570_s4 + $0x8] sm:$0xff]  }
 0x2e9   : > { %7746 = vpow2.f32 %v821_v20  ;;  %v827_v26 = vsel %vm778_vm3, %v7737_v23, 0.0 }
 0x2ea   : > { %v7739_v27 = vpop.eup %7738  ;;  %v823_v28 = vmul.f32 1.442695, %v809_v24  ;;  %v825_v29 = vmul.f32 1.442695, %v810_v25  ;;  %828 = vadd.xlane.f32.xlu0 %v827_v26 }
 0x2eb   : > { %v872_v30 = vpop.permute.xlu0 %871  ;;  %v919_v31 = vpop.permute.xlu1 %918  ;;  %v830_v32 = vsel %vm778_vm3, %v7739_v27, 0.0 }
 0x2ec   : > { %7748 = vpow2.f32 %v823_v28  ;;  %7291 = vmatpush3.bf16.msra.mxu1 %v872_v30  ;;  %831 = vadd.xlane.f32.xlu1 %v830_v32 }
 0x2ed   : > { %7750 = vpow2.f32 %v825_v29  ;;  %7297 = vmatpush3.bf16.msra.mxu0 %v919_v31  ;;  %7302 = vmatprep.subr.bf16.mxu1 %v7890_v1 }
 0x2ee   : > { %v7741_v33 = vpop.eup %7740  ;;  %7308 = vmatprep.subr.bf16.mxu0 %v7890_v1 }
 0x2ef   : > { %v7743_v34 = vpop.eup %7742  ;;  %v833_v35 = vsel %vm778_vm3, %v7741_v33, 0.0 }
 0x2f0   : > { %834 = vadd.xlane.f32.xlu0 %v833_v35  ;;  %v836_v36 = vsel %vm778_vm3, %v7743_v34, 0.0 }
 0x2f1   : > { %837 = vadd.xlane.f32.xlu1 %v836_v36 }
 0x2f2   : > { %v7745_v37 = vpop.eup %7744 }
 0x2f3   : > { %v7747_v38 = vpop.eup %7746  ;;  %v839_v39 = vsel %vm778_vm3, %v7745_v37, 0.0 }
 0x2f4   : > { %840 = vadd.xlane.f32.xlu0 %v839_v39  ;;  %v842_v40 = vsel %vm778_vm3, %v7747_v38, 0.0 }
 0x2f5   : > { %843 = vadd.xlane.f32.xlu1 %v842_v40 }
 0x2f6   : > { %v7749_v41 = vpop.eup %7748 }
 0x2f7   : > { %v7751_v42 = vpop.eup %7750  ;;  %v845_v43 = vsel %vm778_vm3, %v7749_v41, 0.0 }
 0x2f8   : > { %846 = vadd.xlane.f32.xlu0 %v845_v43  ;;  %v848_v44 = vsel %vm778_vm3, %v7751_v42, 0.0 }
 0x2f9   : > { %849 = vadd.xlane.f32.xlu1 %v848_v44 }
 0x30a   : > { %965 = vrot.lane.b32.xlu1 %v8063_v13, %s9587_s25  ;;  %s9592_s25 = smov 16  }
 0x30e   : > { %1012 = vrot.lane.b32.xlu0 %v8063_v13, %s9586_s28  ;;  %s9611_s28 = smov 56  }
 0x377   : > { %v829_v45 = vpop.xlane.xlu0 %828 }
 0x378   : > { %7752 = vrcp.f32 %v829_v45 }
 0x379   : > { %v832_v46 = vpop.xlane.xlu1 %831 }
 0x37a   : > { %7754 = vrcp.f32 %v832_v46 }
 0x37d   : > { %v835_v47 = vpop.xlane.xlu0 %834 }
 0x37e   : > { %7756 = vrcp.f32 %v835_v47  ;;  %v838_v48 = vpop.xlane.xlu1 %837 }
 0x37f   : > { %7758 = vrcp.f32 %v838_v48 }
 0x381   : > { %v841_v49 = vpop.xlane.xlu0 %840 }
 0x382   : > { %v7753_v50 = vpop.eup %7752  ;;  %7760 = vrcp.f32 %v841_v49  ;;  %v844_v51 = vpop.xlane.xlu1 %843  ;;  %v6186_v49 = vld [vmem:[%s9571_s5] ss:$0 sm:$0xff] }
 0x383   : > { %7762 = vrcp.f32 %v844_v51  ;;  %v859_v53 = vmul.f32 %v7753_v50, %v7737_v23 }
 0x384   : > { %v7755_v52 = vpop.eup %7754 }
 0x385   : > { %v860_v54 = vmul.f32 %v7755_v52, %v7739_v27  ;;  %v847_v55 = vpop.xlane.xlu0 %846 }
 0x386   : > { %7764 = vrcp.f32 %v847_v55  ;;  %v850_v56 = vpop.xlane.xlu1 %849 }
 0x387   : > { %7766 = vrcp.f32 %v850_v56  ;;  %v867_v13 = vpack.c.bf16 %v860_v54, %v859_v53  ;;  %v7816_v56 = vld [vmem:[%s8052_s26] sm:$0xff] }
 0x388   : > { %v7757_v57 = vpop.eup %7756 }
 0x389   : > { %v7759_v58 = vpop.eup %7758  ;;  %v861_v59 = vmul.f32 %v7757_v57, %v7741_v33  ;;  %7293 = vmatmul.mubr.msk.bf16.vlgmr.msra.gmra.mrb[8].mxu1 %vm778_vm3, %v867_v13  ;;  %v1013_v4 = vpop.permute.xlu0 %1012 }
 0x38a   : > { %v862_v60 = vmul.f32 %v7759_v58, %v7743_v34  ;;  %v966_v61 = vpop.permute.xlu1 %965  ;;  %7304 = vmatprep.mubr.msk.bf16.mxu1 %vm7891_vm0, %v7890_v1  ;;  %v7817_v58 = vld [vmem:[%s8052_s26 + $0x8] sm:$0xff]  ;;  %s9608_s26 = smov 104  }
 0x38b   : > { %7303 = vmatpush3.bf16.msra.mxu1 %v966_v61 }
 0x38c   : > { %v7761_v62 = vpop.eup %7760  ;;  %v868_v63 = vpack.c.bf16 %v862_v60, %v861_v59  ;;  %7314 = vmatprep.subr.bf16.mxu1 %v7890_v1 }
 0x38d   : > { %v7763_v0 = vpop.eup %7762  ;;  %v863_v2 = vmul.f32 %v7761_v62, %v7745_v37 }
 0x38e   : > { %v864_v3 = vmul.f32 %v7763_v0, %v7747_v38  ;;  %7299 = vmatmul.mubr.msk.bf16.vlgmr.msra.gmra.mrb[12].mxu0 %vm778_vm3, %v868_v63 }
 0x38f   : > { %7309 = vmatpush3.bf16.msra.mxu0 %v1013_v4  ;;  %7310 = vmatprep.mubr.msk.bf16.mxu0 %vm7891_vm0, %v7890_v1 }
 0x390   : > { %v7765_v5 = vpop.eup %7764  ;;  %v869_v6 = vpack.c.bf16 %v864_v3, %v863_v2 }
 0x391   : > { %v7767_v7 = vpop.eup %7766  ;;  %v865_v8 = vmul.f32 %v7765_v5, %v7749_v41 }
 0x392   : > { %v866_v9 = vmul.f32 %v7767_v7, %v7751_v42  ;;  %7305 = vmatmul.mubr.msk.bf16.vlgmr.msra.gmra.mrb[12].mxu1 %vm778_vm3, %v869_v6 }
 0x393   : > { %7318 = vmatprep.mubr.msk.bf16.mxu1 %vm7891_vm0, %v7890_v1  ;;  %7315 = vmatpush3.bf16.msra.mxu1 %v7474_v15 }
 0x394   : > { %v870_v10 = vpack.c.bf16 %v866_v9, %v865_v8  ;;  %7316 = vmatprep.subr.bf16.mxu1 %v7890_v1  ;;  %v1206_v8 = vld [vmem:[%s9574_s8] sm:$0xff] }
 0x395   : > { %v1214_v9 = vld [vmem:[%s9574_s8 + $0x40] sm:$0xff] }
 0x396   : > { %7311 = vmatmul.mubr.msk.bf16.vlgmr.msra.gmra.mrb[16].mxu0 %vm778_vm3, %v870_v10  ;;  %v1207_v10 = vld [vmem:[%s9574_s8 + $0x8] sm:$0xff] }
 0x397   : > { %7317 = vmatpush3.bf16.msra.mxu1 %v7475_v19  ;;  %v1223_v19 = vld [vmem:[%s9574_s8 + $0x88] sm:$0xff] }
 0x45c   : > { %v911_v11 = vpop.f32.mrb[8].mxu1 }
 0x45d   : > { %v7294_v12 = vpop.f32.mrb[9].mxu1 }
 0x45e   : > { %v914_v14 = vpop.f32.mrb[10].mxu1  ;;  %v1215_v12 = vld [vmem:[%s9574_s8 + $0x48] sm:$0xff] }
 0x45f   : > { %v7295_v16 = vpop.f32.mrb[11].mxu1  ;;  %v6194_v15 = vcombine.low %v1207_v10, %v1215_v12 }
 0x460   : > { %v6195_v16 = vcombine.high %v1207_v10, %v1215_v12  ;;  %v1220_v10 = vld [vmem:[%s9574_s8 + $0x70] sm:$0xff]  ;;  %v1221_v12 = vld [vmem:[%s9574_s8 + $0x78] sm:$0xff] }
 0x461   : > { %v958_v17 = vpop.f32.mrb[12].mxu0 }
 0x462   : > { %v7300_v18 = vpop.f32.mrb[13].mxu0  ;;  %1528 = vmatprep.subr.bf16.mxu1 %v6195_v16 }
 0x463   : > { %v961_v20 = vpop.f32.mrb[14].mxu0  ;;  %v1230_v18 = vld [vmem:[%s9574_s8 + $0xc0] sm:$0xff] }
 0x464   : > { %v7442_v21 = vpack.i.bf16 %v961_v20, %v958_v17  ;;  %v7301_v22 = vpop.f32.mrb[15].mxu0  ;;  %v1222_v17 = vld [vmem:[%s9574_s8 + $0x80] sm:$0xff] }
 0x465   : > { %v1005_v23 = vpop.f32.mrb[12].mxu1  ;;  %v6209_v20 = vcombine.high %v1222_v17, %v1230_v18  ;;  %v6208_v22 = vcombine.low %v1222_v17, %v1230_v18  ;;  %v1228_v18 = vld [vmem:[%s9574_s8 + $0xb0] sm:$0xff] }
 0x466   : > { %v7306_v24 = vpop.f32.mrb[13].mxu1  ;;  %7443 = vrot.lane.b32.xlu1 %v7442_v21, %s9593_s21  ;;  %v1231_v21 = vld [vmem:[%s9574_s8 + $0xc8] sm:$0xff]  ;;  %s9604_s21 = smov 88  }
 0x467   : > { %v1008_v25 = vpop.f32.mrb[14].mxu1  ;;  %v6211_v24 = vcombine.high %v1223_v19, %v1231_v21 }
 0x468   : > { %v7447_v26 = vpack.i.bf16 %v1008_v25, %v1005_v23  ;;  %v7307_v27 = vpop.f32.mrb[15].mxu1  ;;  %v6210_v23 = vcombine.low %v1223_v19, %v1231_v21  ;;  %v1208_v25 = vld [vmem:[%s9574_s8 + $0x10] sm:$0xff]  ;;  %v1237_v21 = vld [vmem:[%s9574_s8 + $0xf8] sm:$0xff] }
 0x469   : > { %v1052_v28 = vpop.f32.mrb[16].mxu0  ;;  %v1209_v27 = vld [vmem:[%s9574_s8 + $0x18] sm:$0xff]  ;;  %v1236_v19 = vld [vmem:[%s9574_s8 + $0xf0] sm:$0xff] }
 0x46a   : > { %7448 = vrot.lane.b32.xlu0 %v7447_v26, %s9592_s25  ;;  %v7312_v29 = vpop.f32.mrb[17].mxu0  ;;  %v1216_v26 = vld [vmem:[%s9574_s8 + $0x50] sm:$0xff]  ;;  %s9605_s25 = smov 96  }
 0x46b   : > { %v1055_v30 = vpop.f32.mrb[18].mxu0  ;;  %v6197_v29 = vcombine.high %v1208_v25, %v1216_v26 }
 0x46c   : > { %v7452_v31 = vpack.i.bf16 %v1055_v30, %v1052_v28  ;;  %v7313_v32 = vpop.f32.mrb[19].mxu0  ;;  %v7906_v28 = vmov 0   ;;  %v1217_v30 = vld [vmem:[%s9574_s8 + $0x58] sm:$0xff] }
 0x46d   : > { %1517 = vmatprep.mubr.bf16.mxu0 %v7906_v28  ;;  %v6198_v32 = vcombine.low %v1209_v27, %v1217_v30 }
 0x46e   : > { %7453 = vrot.lane.b32.xlu1 %v7452_v31, %s9591_s18  ;;  %v6196_v31 = vcombine.low %v1208_v25, %v1216_v26  ;;  %v6220_v26 = vcombine.low %v1228_v18, %v1236_v19  ;;  %s9610_s18 = smov 112  }
 0x4d8   : > { %v7444_v33 = vpop.permute.xlu1 %7443 }
 0x4d9   : > { %v7446_v35 = vunpack.i.h.bf16 %v7444_v33  ;;  %v7445_v36 = vunpack.i.l.bf16 %v7444_v33  ;;  %v6199_v33 = vcombine.high %v1209_v27, %v1217_v30  ;;  %v7477_v30 = vld [vmem:[%s9576_s10 + $0xc0] sm:$0xff]  }
 0x4db   : > { %v1084_v40 = vsel %vm561_vm2, %v914_v14, %v7446_v35  ;;  %v1083_v41 = vsel %vm561_vm2, %v911_v11, %v7445_v36  ;;  %v6193_v11 = vcombine.high %v1206_v8, %v1214_v9  ;;  %v6192_v14 = vcombine.low %v1206_v8, %v1214_v9  ;;  %v1212_v9 = vld [vmem:[%s9574_s8 + $0x30] sm:$0xff] }
 0x4dc   : > { %v7449_v34 = vpop.permute.xlu0 %7448  ;;  %v6205_v16 = vcombine.high %v1212_v9, %v1220_v10 }
 0x4dd   : > { %v7451_v37 = vunpack.i.h.bf16 %v7449_v34  ;;  %v7450_v38 = vunpack.i.l.bf16 %v7449_v34  ;;  %1485 = vmatprep.subr.bf16.mxu0 %v6193_v11  ;;  %v1213_v11 = vld [vmem:[%s9574_s8 + $0x38] sm:$0xff] }
 0x4de   : > { %1486 = vmatpush1.bf16.msra.mxu0 %v6192_v14  ;;  %v6207_v17 = vcombine.high %v1213_v11, %v1221_v12 }
 0x4df   : > { %v1085_v44 = vsel %vm778_vm3, %v1083_v41, %v7450_v38  ;;  %v1086_v45 = vsel %vm778_vm3, %v1084_v40, %v7451_v37  ;;  %1487 = vmatprep.subr.bf16.mxu0 %v6209_v20  ;;  %v1229_v20 = vld [vmem:[%s9574_s8 + $0xb8] sm:$0xff] }
 0x4e0   : > { %v7454_v39 = vpop.permute.xlu1 %7453  ;;  %v6223_v25 = vcombine.high %v1229_v20, %v1237_v21  ;;  %v6222_v27 = vcombine.low %v1229_v20, %v1237_v21 }
 0x4e1   : > { %v7456_v42 = vunpack.i.h.bf16 %v7454_v39  ;;  %v7455_v43 = vunpack.i.l.bf16 %v7454_v39 }
 0x4e2   : > { %1488 = vmatpush1.bf16.msra.mxu0 %v6208_v22  ;;  %v6204_v22 = vcombine.low %v1212_v9, %v1220_v10 }
 0x4e3   : > { %v1089_v46 = vsel %vm1087_vm4, %v1086_v45, %v7456_v42  ;;  %v1088_v47 = vsel %vm1087_vm4, %v1085_v44, %v7455_v43  ;;  %1571 = vmatprep.subr.bf16.mxu0 %v6197_v29  ;;  %v6190_v42 = vld [vmem:[%s9572_s6] ss:$0 sm:$0xff] }
 0x4e4   : > { %v1090_v48 = vpack.c.bf16 %v1089_v46, %v1088_v47  ;;  %v6191_v46 = vld [vmem:[%s9573_s7] ss:$0 sm:$0xff] }
 0x4e5   : > { %v7476_v29 = vld [vmem:[%s9576_s10 + $0x40] sm:$0xff]  }
 0x4e6   : > { %7319 = vmatmul.mubr.msk.bf16.vlgmr.msra.gmra.mrb[16].mxu1 %vm512_vm1, %v1090_v48  ;;  %v1224_v48 = vld [vmem:[%s9574_s8 + $0x90] sm:$0xff] }
 0x4e7   : > { %1529 = vmatpush1.bf16.msra.mxu1 %v6194_v15  ;;  %1560 = vmatprep.mubr.bf16.mxu1 %v7906_v28 }
 0x4e8   : > { %1530 = vmatprep.subr.bf16.mxu1 %v6211_v24  ;;  %v6221_v24 = vcombine.high %v1228_v18, %v1236_v19 }
 0x4eb   : > { %1531 = vmatpush1.bf16.msra.mxu1 %v6210_v23  ;;  %v6206_v23 = vcombine.low %v1213_v11, %v1221_v12 }
 0x4ec   : > { %1614 = vmatprep.subr.bf16.mxu1 %v6199_v33  ;;  %v7480_v33 = vld [vmem:[%s9576_s10 + $0x48] sm:$0xff]  }
 0x5b9   : > { %v1151_v50 = vpop.f32.mrb[16].mxu1 }
 0x5ba   : > { %v1152_v51 = vadd.f32 %v6186_v49, %v1151_v50  ;;  %v7320_v52 = vpop.f32.mrb[17].mxu1  ;;  %v1225_v50 = vld [vmem:[%s9574_s8 + $0x98] sm:$0xff] }
 0x5bb   : > { %v1154_v53 = vpop.f32.mrb[18].mxu1 }
 0x5bc   : > { %v1155_v54 = vadd.f32 %v6186_v49, %v1154_v53  ;;  %v7321_v55 = vpop.f32.mrb[19].mxu1  ;;  %v1158_v13 = vadd.f32 %v7816_v56, %v1152_v51  ;;  %v1232_v49 = vld [vmem:[%s9574_s8 + $0xd0] sm:$0xff]  ;;  %v1233_v51 = vld [vmem:[%s9574_s8 + $0xd8] sm:$0xff] }
 0x5bd   : > { %v6213_v55 = vcombine.high %v1224_v48, %v1232_v49  ;;  %v6215_v56 = vcombine.high %v1225_v50, %v1233_v51 }
 0x5be   : > { %v1162_v57 = vsel %vm512_vm1, %v1158_v13, 0.0  ;;  %v1159_v59 = vadd.f32 %v7817_v58, %v1155_v54  ;;  %v1211_v58 = vld [vmem:[%s9574_s8 + $0x28] sm:$0xff] }
 0x5bf   : > { %1163 = vadd.xlane.f32.xlu0 %v1162_v57  ;;  %v1218_v57 = vld [vmem:[%s9574_s8 + $0x60] sm:$0xff] }
 0x5c0   : > { %v1165_v60 = vsel %vm512_vm1, %v1159_v59, 0.0 }
 0x5c1   : > { %1166 = vadd.xlane.f32.xlu1 %v1165_v60  ;;  %v6212_v60 = vcombine.low %v1224_v48, %v1232_v49  ;;  %v7495_v48 = vld [vmem:[%s9576_s10 + $0xa0] sm:$0xff]   ;;  %v7496_v49 = vld [vmem:[%s9576_s10 + $0x68] sm:$0xff]  }
 0x64c   : > { %v1164_v61 = vpop.xlane.xlu0 %1163 }
 0x64d   : > { %v1169_v62 = vmul.f32 0.03125, %v1164_v61  ;;  %v6214_v61 = vcombine.low %v1225_v50, %v1233_v51  ;;  %v7497_v50 = vld [vmem:[%s9576_s10 + $0xe8] sm:$0xff]  }
 0x64e   : > { %v1167_v63 = vpop.xlane.xlu1 %1166  ;;  %v7498_v51 = vld [vmem:[%s9576_s10 + $0x28] sm:$0xff]  }
 0x64f   : > { %v1171_v0 = vsub.f32 %v1158_v13, %v1169_v62  ;;  %v1170_v2 = vmul.f32 0.03125, %v1167_v63  ;;  %v1210_v13 = vld [vmem:[%s9574_s8 + $0x20] sm:$0xff] }
 0x650   : > { %v6201_v62 = vcombine.high %v1210_v13, %v1218_v57 }
 0x651   : > { %v1172_v3 = vsub.f32 %v1159_v59, %v1170_v2  ;;  %v1173_v4 = vmul.f32 %v1171_v0, %v1171_v0  ;;  %v1219_v59 = vld [vmem:[%s9574_s8 + $0x68] sm:$0xff]  ;;  %v1234_v2 = vld [vmem:[%s9574_s8 + $0xe0] sm:$0xff] }
 0x652   : > { %v6203_v63 = vcombine.high %v1211_v58, %v1219_v59 }
 0x653   : > { %v1175_v5 = vsel %vm512_vm1, %v1173_v4, 0.0  ;;  %v1174_v6 = vmul.f32 %v1172_v3, %v1172_v3  ;;  %v1235_v4 = vld [vmem:[%s9574_s8 + $0xe8] sm:$0xff] }
 0x654   : > { %1176 = vadd.xlane.f32.xlu0 %v1175_v5  ;;  %v6200_v5 = vcombine.low %v1210_v13, %v1218_v57  ;;  %v7502_v13 = vld [vmem:[%s9576_s10 + $0x30] sm:$0xff]  }
 0x655   : > { %v1178_v7 = vsel %vm512_vm1, %v1174_v6, 0.0  ;;  %v6202_v6 = vcombine.low %v1211_v58, %v1219_v59  ;;  %v7503_v57 = vld [vmem:[%s9576_s10 + $0xb0] sm:$0xff]   ;;  %v7504_v58 = vld [vmem:[%s9576_s10 + $0x78] sm:$0xff]  }
 0x656   : > { %v7505_v59 = vld [vmem:[%s9576_s10 + $0xf8] sm:$0xff]  }
 0x658   : > { %1179 = vadd.xlane.f32.xlu0 %v1178_v7 }
 0x6e1   : > { %v1177_v34 = vpop.xlane.xlu0 %1176 }
 0x6e2   : > { %v1181_v35 = vmul.f32 0.03125, %v1177_v34  ;;  %v7481_v34 = vld [vmem:[%s9576_s10 + $0xc8] sm:$0xff]  }
 0x6e4   : > { %v1183_v36 = vadd.f32 1e-05, %v1181_v35  ;;  %v7482_v35 = vld [vmem:[%s9576_s10 + $0x8] sm:$0xff]  }
 0x6e5   : > { %v1180_v37 = vpop.xlane.xlu0 %1179 }
 0x6e6   : > { %7768 = vrsqrt.f32 %v1183_v36  ;;  %v1182_v38 = vmul.f32 0.03125, %v1180_v37  ;;  %v7483_v36 = vld [vmem:[%s9576_s10 + $0x88] sm:$0xff]   ;;  %v7484_v37 = vld [vmem:[%s9576_s10 + $0x50] sm:$0xff]  }
 0x6e8   : > { %v1184_v39 = vadd.f32 1e-05, %v1182_v38  ;;  %v7485_v38 = vld [vmem:[%s9576_s10 + $0xd0] sm:$0xff]  }
 0x6ea   : > { %7770 = vrsqrt.f32 %v1184_v39  ;;  %v7486_v39 = vld [vmem:[%s9576_s10 + $0x10] sm:$0xff]  }
 0x6f0   : > { %v7769_v40 = vpop.eup %7768 }
 0x6f1   : > { %v1187_v41 = vmul.f32 %v7769_v40, %v1171_v0  ;;  %v1226_v0 = vld [vmem:[%s9574_s8 + $0xa0] sm:$0xff]  ;;  %v7487_v40 = vld [vmem:[%s9576_s10 + $0x90] sm:$0xff]  }
 0x6f2   : > { %v6217_v7 = vcombine.high %v1226_v0, %v1234_v2  ;;  %v6216_v14 = vcombine.low %v1226_v0, %v1234_v2  ;;  %v1242_v0 = vlaneseq }
 0x6f3   : > { %v1195_v44 = vmul.f32 %v6190_v42, %v1187_v41  ;;  %v7488_v41 = vld [vmem:[%s9576_s10 + $0x58] sm:$0xff]  }
 0x6f4   : > { %v7771_v43 = vpop.eup %7770  ;;  %v1243_v2 = vshrl.u32 %v1242_v0, 7 }
 0x6f5   : > { %v1188_v45 = vmul.f32 %v7771_v43, %v1172_v3  ;;  %v8233_v52 = vadd.f32 %v6191_v46, %v1195_v44  ;;  %v1227_v3 = vld [vmem:[%s9574_s8 + $0xa8] sm:$0xff]  ;;  %v7490_v43 = vld [vmem:[%s9576_s10 + $0x18] sm:$0xff]  }
 0x6f6   : > { %v6219_v8 = vcombine.high %v1227_v3, %v1235_v4  ;;  %v6218_v15 = vcombine.low %v1227_v3, %v1235_v4  ;;  %v7491_v44 = vld [vmem:[%s9576_s10 + $0x98] sm:$0xff]   ;;  %v8413_v3 = vsub.s32 0, %v1243_v2  ;;  %v8415_v4 = vsub.s32 2, %v1243_v2 }
 0x6f7   : > { %v1196_v47 = vmul.f32 %v6190_v42, %v1188_v45  ;;  %v7489_v42 = vld [vmem:[%s9576_s10 + $0xd8] sm:$0xff]   ;;  %v7492_v45 = vld [vmem:[%s9576_s10 + $0x60] sm:$0xff]   ;;  %v8428_v12 = vsub.s32 4, %v1243_v2  ;;  %v8434_v18 = vsub.s32 7, %v1243_v2 }
 0x6f9   : > { %v8235_v53 = vadd.f32 %v6191_v46, %v1196_v47  ;;  %v7493_v46 = vld [vmem:[%s9576_s10 + $0xe0] sm:$0xff]  }
 0x6fa   : > { %v7494_v47 = vld [vmem:[%s9576_s10 + $0x20] sm:$0xff]  }
 0x6fb   : > { %v8239_v54 = vpack.c.bf16 %v8235_v53, %v8233_v52 }
 0x6fd   : > { %6224 = vmatmul.mubr.msk.bf16.vlgmr.msra.gmra.mrb[20].mxu0 %vm512_vm1, %v8239_v54  ;;  %6225 = vmatmul.mubr.msk.bf16.vlgmr.msra.gmra.mrb[20].mxu1 %vm512_vm1, %v8239_v54 }
 0x6fe   : > { %1572 = vmatpush1.bf16.msra.mxu0 %v6196_v31  ;;  %1615 = vmatpush1.bf16.msra.mxu1 %v6198_v32  ;;  %v7478_v31 = vld [vmem:[%s9576_s10] sm:$0xff]  }
 0x6ff   : > { %1573 = vmatprep.subr.bf16.mxu0 %v6213_v55  ;;  %1616 = vmatprep.subr.bf16.mxu1 %v6215_v56  ;;  %v7479_v32 = vld [vmem:[%s9576_s10 + $0x80] sm:$0xff]   ;;  %v7500_v55 = vld [vmem:[%s9576_s10 + $0x70] sm:$0xff]  }
 0x700   : > { %1603 = vmatprep.mubr.bf16.mxu0 %v7906_v28  ;;  %1646 = vmatprep.mubr.bf16.mxu1 %v7906_v28  ;;  %v7501_v56 = vld [vmem:[%s9576_s10 + $0xf0] sm:$0xff]  }
 0x702   : > { %1574 = vmatpush1.bf16.msra.mxu0 %v6212_v60  ;;  %1617 = vmatpush1.bf16.msra.mxu1 %v6214_v61  ;;  %v7506_v60 = vld [vmem:[%s9576_s10 + $0x38] sm:$0xff]  }
 0x703   : > { %1657 = vmatprep.subr.bf16.mxu0 %v6201_v62  ;;  %1700 = vmatprep.subr.bf16.mxu1 %v6203_v63  ;;  %v7507_v61 = vld [vmem:[%s9576_s10 + $0xb8] sm:$0xff]   ;;  %v7508_v62 = vld [vmem:[%s9576_s10 + $0x140] sm:$0xff]  }
 0x704   : > { %v7509_v63 = vld [vmem:[%s9576_s10 + $0x1c0] sm:$0xff]  }
 0x705   : > { %6226 = vmatmul.mubr.msk.bf16.vlgmr.msra.gmra.mrb[24].mxu0 %vm512_vm1, %v8239_v54  ;;  %6227 = vmatmul.mubr.msk.bf16.vlgmr.msra.gmra.mrb[24].mxu1 %vm512_vm1, %v8239_v54 }
 0x706   : > { %1658 = vmatpush1.bf16.msra.mxu0 %v6200_v5  ;;  %1701 = vmatpush1.bf16.msra.mxu1 %v6202_v6  ;;  %v1238_v5 = vld [vmem:[%s9575_s9] sm:$0xff]  ;;  %v8420_v6 = vsub.s32 1, %v1243_v2 }
 0x707   : > { %1659 = vmatprep.subr.bf16.mxu0 %v6217_v7  ;;  %1702 = vmatprep.subr.bf16.mxu1 %v6219_v8  ;;  %v8422_v7 = vsub.s32 3, %v1243_v2  ;;  %v1245_v8 = vrot.slane %v1238_v5, %v8413_v3  ;;  %v1253_v9 = vrot.slane %v1238_v5, %v8415_v4 }
 0x708   : > { %1689 = vmatprep.mubr.bf16.mxu0 %v7906_v28  ;;  %1732 = vmatprep.mubr.bf16.mxu1 %v7906_v28  ;;  %v1249_v10 = vrot.slane %v1238_v5, %v8420_v6 }
 0x709   : > { %v1257_v11 = vrot.slane %v1238_v5, %v8422_v7 }
 0x70a   : > { %1660 = vmatpush1.bf16.msra.mxu0 %v6216_v14  ;;  %1703 = vmatpush1.bf16.msra.mxu1 %v6218_v15  ;;  %v8430_v14 = vsub.s32 6, %v1243_v2 }
 0x70b   : > { %1743 = vmatprep.subr.bf16.mxu0 %v6205_v16  ;;  %1786 = vmatprep.subr.bf16.mxu1 %v6207_v17  ;;  %v8432_v17 = vsub.s32 5, %v1243_v2 }
 0x70d   : > { %6228 = vmatmul.mubr.msk.bf16.vlgmr.msra.gmra.mrb[28].mxu0 %vm512_vm1, %v8239_v54  ;;  %6229 = vmatmul.mubr.msk.bf16.vlgmr.msra.gmra.mrb[28].mxu1 %vm512_vm1, %v8239_v54 }
 0x70e   : > { %1744 = vmatpush1.bf16.msra.mxu0 %v6204_v22  ;;  %1787 = vmatpush1.bf16.msra.mxu1 %v6206_v23 }
 0x70f   : > { %1745 = vmatprep.subr.bf16.mxu0 %v6221_v24  ;;  %1788 = vmatprep.subr.bf16.mxu1 %v6223_v25 }
 0x710   : > { %1775 = vmatprep.mubr.bf16.mxu0 %v7906_v28  ;;  %1818 = vmatprep.mubr.bf16.mxu1 %v7906_v28 }
 0x712   : > { %1746 = vmatpush1.bf16.msra.mxu0 %v6220_v26  ;;  %1789 = vmatpush1.bf16.msra.mxu1 %v6222_v27 }
 0x713   : > { %6884 = vmatprep.subr.bf16.mxu0 %v7476_v29  ;;  %6906 = vmatprep.subr.bf16.mxu1 %v7477_v30 }
 0x715   : > { %6230 = vmatmul.mubr.msk.bf16.vlgmr.msra.gmra.mrb[32].mxu0 %vm512_vm1, %v8239_v54  ;;  %6231 = vmatmul.mubr.msk.bf16.vlgmr.msra.gmra.mrb[32].mxu1 %vm512_vm1, %v8239_v54  ;;  %v7499_v54 = vld [vmem:[%s9576_s10 + $0xa8] sm:$0xff]  }
 0x716   : > { %6885 = vmatpush3.bf16.msra.mxu0 %v7478_v31  ;;  %6907 = vmatpush3.bf16.msra.mxu1 %v7479_v32  ;;  %v1261_v32 = vrot.slane %v1238_v5, %v8428_v12 }
 0x717   : > { %6886 = vmatprep.subr.bf16.mxu0 %v7480_v33  ;;  %6908 = vmatprep.subr.bf16.mxu1 %v7481_v34  ;;  %v1269_v33 = vrot.slane %v1238_v5, %v8430_v14 }
 0x71a   : > { %6887 = vmatpush3.bf16.msra.mxu0 %v7482_v35  ;;  %6909 = vmatpush3.bf16.msra.mxu1 %v7483_v36  ;;  %v1265_v36 = vrot.slane %v1238_v5, %v8432_v17 }
 0x71b   : > { %6888 = vmatprep.subr.bf16.mxu0 %v7484_v37  ;;  %6910 = vmatprep.subr.bf16.mxu1 %v7485_v38  ;;  %v1273_v37 = vrot.slane %v1238_v5, %v8434_v18 }
 0x71e   : > { %6889 = vmatpush3.bf16.msra.mxu0 %v7486_v39  ;;  %6911 = vmatpush3.bf16.msra.mxu1 %v7487_v40 }
 0x71f   : > { %6890 = vmatprep.subr.bf16.mxu0 %v7488_v41  ;;  %6912 = vmatprep.subr.bf16.mxu1 %v7489_v42 }
 0x722   : > { %6891 = vmatpush3.bf16.msra.mxu0 %v7490_v43  ;;  %6913 = vmatpush3.bf16.msra.mxu1 %v7491_v44 }
 0x723   : > { %6892 = vmatprep.subr.bf16.mxu0 %v7492_v45  ;;  %6914 = vmatprep.subr.bf16.mxu1 %v7493_v46  ;;  %v8443_v46 = vld [vmem:[%s9575_s9 + $0x8] sm:$0xff] }
 0x726   : > { %6893 = vmatpush3.bf16.msra.mxu0 %v7494_v47  ;;  %6915 = vmatpush3.bf16.msra.mxu1 %v7495_v48 }
 0x727   : > { %6894 = vmatprep.subr.bf16.mxu0 %v7496_v49  ;;  %6916 = vmatprep.subr.bf16.mxu1 %v7497_v50 }
 0x72a   : > { %6895 = vmatpush3.bf16.msra.mxu0 %v7498_v51  ;;  %6917 = vmatpush3.bf16.msra.mxu1 %v7499_v54 }
 0x72b   : > { %6896 = vmatprep.subr.bf16.mxu0 %v7500_v55  ;;  %6918 = vmatprep.subr.bf16.mxu1 %v7501_v56  ;;  %v7510_v55 = vld [vmem:[%s9576_s10 + $0x100] sm:$0xff]  }
 0x72c   : > { %v7511_v56 = vld [vmem:[%s9576_s10 + $0x180] sm:$0xff]  }
 0x72e   : > { %6897 = vmatpush3.bf16.msra.mxu0 %v7502_v13  ;;  %6919 = vmatpush3.bf16.msra.mxu1 %v7503_v57 }
 0x72f   : > { %6898 = vmatprep.subr.bf16.mxu0 %v7504_v58  ;;  %6920 = vmatprep.subr.bf16.mxu1 %v7505_v59 }
 0x732   : > { %6899 = vmatpush3.bf16.msra.mxu0 %v7506_v60  ;;  %6921 = vmatpush3.bf16.msra.mxu1 %v7507_v61  ;;  %v7512_v60 = vld [vmem:[%s9576_s10 + $0x148] sm:$0xff]  }
 0x733   : > { %6928 = vmatprep.subr.bf16.mxu0 %v7508_v62  ;;  %6950 = vmatprep.subr.bf16.mxu1 %v7509_v63  ;;  %v7513_v61 = vld [vmem:[%s9576_s10 + $0x1c8] sm:$0xff]   ;;  %v1277_v62 = vrot.slane %v8443_v46, %v8413_v3 }
 0x7d0   : > { %v1519_v15 = vpop.f32.mrb[20].mxu0  ;;  %v1562_v16 = vpop.f32.mrb[20].mxu1 }
 0x7d1   : > { %v1520_v19 = vadd.f32 %v1519_v15, %v1245_v8  ;;  %v1563_v20 = vadd.f32 %v1562_v16, %v1253_v9  ;;  %v1521_v21 = vpop.f32.mrb[21].mxu0  ;;  %v1564_v22 = vpop.f32.mrb[21].mxu1  ;;  %v1281_v16 = vrot.slane %v8443_v46, %v8420_v6 }
 0x7d2   : > { %v1522_v23 = vadd.f32 %v1521_v21, %v1249_v10  ;;  %v1565_v24 = vadd.f32 %v1564_v22, %v1257_v11  ;;  %v1523_v25 = vpop.f32.mrb[22].mxu0  ;;  %v1566_v26 = vpop.f32.mrb[22].mxu1  ;;  %v7514_v21 = vld [vmem:[%s9576_s10 + $0x108] sm:$0xff]  }
 0x7d3   : > { %v1524_v27 = vadd.f32 %v1523_v25, %v1245_v8  ;;  %v1567_v29 = vadd.f32 %v1566_v26, %v1253_v9  ;;  %v1525_v30 = vpop.f32.mrb[23].mxu0  ;;  %v1568_v31 = vpop.f32.mrb[23].mxu1  ;;  %v1829_v38 = vmax.f32 %v1520_v19, 0.0  ;;  %v1831_v39 = vmax.f32 %v1563_v20, 0.0  ;;  %v7515_v22 = vld [vmem:[%s9576_s10 + $0x188] sm:$0xff]  }
 0x7d4   : > { %v1526_v34 = vadd.f32 %v1525_v30, %v1249_v10  ;;  %v1569_v35 = vadd.f32 %v1568_v31, %v1257_v11  ;;  %v1830_v42 = vmax.f32 %v1522_v23, 0.0  ;;  %v1832_v43 = vmax.f32 %v1565_v24, 0.0  ;;  %v7517_v30 = vld [vmem:[%s9576_s10 + $0x1d0] sm:$0xff]  }
 0x7d5   : > { %v1845_v40 = vmax.f32 %v1524_v27, 0.0  ;;  %v1847_v41 = vmax.f32 %v1567_v29, 0.0  ;;  %v1285_v8 = vrot.slane %v8443_v46, %v8415_v4  ;;  %v1289_v23 = vrot.slane %v8443_v46, %v8422_v7  ;;  %v7516_v29 = vld [vmem:[%s9576_s10 + $0x150] sm:$0xff]  }
 0x7d6   : > { %v1846_v44 = vmax.f32 %v1526_v34, 0.0  ;;  %v1848_v45 = vmax.f32 %v1569_v35, 0.0 }
 0x7d7   : > { %v1861_v47 = vpack.c.bf16 %v1845_v40, %v1829_v38  ;;  %v1863_v48 = vpack.c.bf16 %v1847_v41, %v1831_v39  ;;  %v7518_v41 = vld [vmem:[%s9576_s10 + $0x110] sm:$0xff]  }
 0x7d8   : > { %v1862_v49 = vpack.c.bf16 %v1846_v44, %v1830_v42  ;;  %v1864_v50 = vpack.c.bf16 %v1848_v45, %v1832_v43  ;;  %v1605_v51 = vpop.f32.mrb[24].mxu0  ;;  %v1648_v54 = vpop.f32.mrb[24].mxu1  ;;  %v7519_v42 = vld [vmem:[%s9576_s10 + $0x190] sm:$0xff]  }
 0x7d9   : > { %v1606_v13 = vadd.f32 %v1605_v51, %v1261_v32  ;;  %v1649_v57 = vadd.f32 %v1648_v54, %v1269_v33  ;;  %v1607_v58 = vpop.f32.mrb[25].mxu0  ;;  %v1650_v59 = vpop.f32.mrb[25].mxu1 }
 0x7da   : > { %v1608_v63 = vadd.f32 %v1607_v58, %v1265_v36  ;;  %v1651_v0 = vadd.f32 %v1650_v59, %v1273_v37  ;;  %v1609_v2 = vpop.f32.mrb[26].mxu0  ;;  %v1652_v5 = vpop.f32.mrb[26].mxu1  ;;  %2940 = vmatprep.mubr.bf16.mxu0 %v1862_v49  ;;  %2981 = vmatprep.mubr.bf16.mxu1 %v1864_v50  ;;  %v7521_v49 = vld [vmem:[%s9576_s10 + $0x1d8] sm:$0xff]  }
 0x7db   : > { %v1610_v9 = vadd.f32 %v1609_v2, %v1261_v32  ;;  %v1653_v10 = vadd.f32 %v1652_v5, %v1269_v33  ;;  %v1611_v11 = vpop.f32.mrb[27].mxu0  ;;  %v1654_v15 = vpop.f32.mrb[27].mxu1  ;;  %2941 = vmatmul.mubr.bf16.vlgmr.msra.gmra.mrb[36].mxu0 %v1861_v47  ;;  %2982 = vmatmul.mubr.bf16.vlgmr.msra.gmra.mrb[36].mxu1 %v1863_v48  ;;  %v1833_v24 = vmax.f32 %v1606_v13, 0.0  ;;  %v1835_v25 = vmax.f32 %v1649_v57, 0.0  ;;  %v7520_v48 = vld [vmem:[%s9576_s10 + $0x158] sm:$0xff]  }
 0x7dc   : > { %v1612_v19 = vadd.f32 %v1611_v11, %v1265_v36  ;;  %v1655_v20 = vadd.f32 %v1654_v15, %v1273_v37  ;;  %6929 = vmatpush3.bf16.msra.mxu0 %v7510_v55  ;;  %6951 = vmatpush3.bf16.msra.mxu1 %v7511_v56  ;;  %v1834_v31 = vmax.f32 %v1608_v63, 0.0  ;;  %v1836_v32 = vmax.f32 %v1651_v0, 0.0  ;;  %v7522_v2 = vld [vmem:[%s9576_s10 + $0x118] sm:$0xff]   ;;  %v7524_v15 = vld [vmem:[%s9576_s10 + $0x160] sm:$0xff]  }
 0x7dd   : > { %v1849_v26 = vmax.f32 %v1610_v9, 0.0  ;;  %v1851_v27 = vmax.f32 %v1653_v10, 0.0  ;;  %6930 = vmatprep.subr.bf16.mxu0 %v7512_v60  ;;  %6952 = vmatprep.subr.bf16.mxu1 %v7513_v61  ;;  %v1293_v56 = vrot.slane %v8443_v46, %v8428_v12  ;;  %v1301_v60 = vrot.slane %v8443_v46, %v8430_v14 }
 0x7de   : > { %v1850_v33 = vmax.f32 %v1612_v19, 0.0  ;;  %v1852_v34 = vmax.f32 %v1655_v20, 0.0  ;;  %v1297_v61 = vrot.slane %v8443_v46, %v8432_v17  ;;  %v1305_v5 = vrot.slane %v8443_v46, %v8434_v18 }
 0x7df   : > { %v8477_v35 = vpack.c.bf16 %v1849_v26, %v1833_v24  ;;  %v8479_v36 = vpack.c.bf16 %v1851_v27, %v1835_v25 }
 0x7e0   : > { %v1866_v37 = vpack.c.bf16 %v1850_v33, %v1834_v31  ;;  %v1868_v38 = vpack.c.bf16 %v1852_v34, %v1836_v32  ;;  %6931 = vmatpush3.bf16.msra.mxu0 %v7514_v21  ;;  %6953 = vmatpush3.bf16.msra.mxu1 %v7515_v22  ;;  %v1691_v39 = vpop.f32.mrb[28].mxu0  ;;  %v1734_v40 = vpop.f32.mrb[28].mxu1 }
 0x7e1   : > { %v1692_v43 = vadd.f32 %v1691_v39, %v1277_v62  ;;  %v1735_v44 = vadd.f32 %v1734_v40, %v1285_v8  ;;  %v1693_v45 = vpop.f32.mrb[29].mxu0  ;;  %v1736_v47 = vpop.f32.mrb[29].mxu1  ;;  %6932 = vmatprep.subr.bf16.mxu0 %v7516_v29  ;;  %6954 = vmatprep.subr.bf16.mxu1 %v7517_v30  ;;  %v7526_v29 = vld [vmem:[%s9576_s10 + $0x120] sm:$0xff]  }
 0x7e2   : > { %v1694_v50 = vadd.f32 %v1693_v45, %v1281_v16  ;;  %v1737_v51 = vadd.f32 %v1736_v47, %v1289_v23  ;;  %v1695_v54 = vpop.f32.mrb[30].mxu0  ;;  %v1738_v55 = vpop.f32.mrb[30].mxu1  ;;  %3022 = vmatprep.mubr.bf16.mxu0 %v1866_v37  ;;  %3063 = vmatprep.mubr.bf16.mxu1 %v1868_v38  ;;  %v7527_v30 = vld [vmem:[%s9576_s10 + $0x1a0] sm:$0xff]   ;;  %v7528_v37 = vld [vmem:[%s9576_s10 + $0x168] sm:$0xff]  }
 0x7e3   : > { %v1696_v13 = vadd.f32 %v1695_v54, %v1277_v62  ;;  %v1739_v57 = vadd.f32 %v1738_v55, %v1285_v8  ;;  %v1697_v58 = vpop.f32.mrb[31].mxu0  ;;  %v1740_v59 = vpop.f32.mrb[31].mxu1  ;;  %v7523_v62 = vld [vmem:[%s9576_s10 + $0x198] sm:$0xff]   ;;  %v1837_v8 = vmax.f32 %v1692_v43, 0.0  ;;  %v1839_v9 = vmax.f32 %v1735_v44, 0.0  ;;  %v7529_v38 = vld [vmem:[%s9576_s10 + $0x1e8] sm:$0xff]  }
 0x7e4   : > { %v1698_v63 = vadd.f32 %v1697_v58, %v1281_v16  ;;  %v1741_v0 = vadd.f32 %v1740_v59, %v1289_v23  ;;  %6933 = vmatpush3.bf16.msra.mxu0 %v7518_v41  ;;  %6955 = vmatpush3.bf16.msra.mxu1 %v7519_v42  ;;  %v7525_v16 = vld [vmem:[%s9576_s10 + $0x1e0] sm:$0xff]   ;;  %v1838_v19 = vmax.f32 %v1694_v50, 0.0  ;;  %v1840_v20 = vmax.f32 %v1737_v51, 0.0  ;;  %v7530_v50 = vld [vmem:[%s9576_s10 + $0x128] sm:$0xff]   ;;  %v7533_v58 = vld [vmem:[%s9576_s10 + $0x1f0] sm:$0xff]  }
 0x7e5   : > { %v1853_v10 = vmax.f32 %v1696_v13, 0.0  ;;  %v1855_v11 = vmax.f32 %v1739_v57, 0.0  ;;  %6934 = vmatprep.subr.bf16.mxu0 %v7520_v48  ;;  %6956 = vmatprep.subr.bf16.mxu1 %v7521_v49  ;;  %v7531_v51 = vld [vmem:[%s9576_s10 + $0x1a8] sm:$0xff]  }
 0x7e6   : > { %v1854_v21 = vmax.f32 %v1698_v63, 0.0  ;;  %v1856_v22 = vmax.f32 %v1741_v0, 0.0 }
 0x7e7   : > { %v8513_v23 = vpack.c.bf16 %v1853_v10, %v1837_v8  ;;  %v8515_v46 = vpack.c.bf16 %v1855_v11, %v1839_v9  ;;  %v7534_v8 = vld [vmem:[%s9576_s10 + $0x130] sm:$0xff]   ;;  %v7536_v10 = vld [vmem:[%s9576_s10 + $0x178] sm:$0xff]  }
 0x7e8   : > { %v8517_v24 = vpack.c.bf16 %v1854_v21, %v1838_v19  ;;  %v8519_v25 = vpack.c.bf16 %v1856_v22, %v1840_v20  ;;  %6935 = vmatpush3.bf16.msra.mxu0 %v7522_v2  ;;  %6957 = vmatpush3.bf16.msra.mxu1 %v7523_v62  ;;  %v1777_v26 = vpop.f32.mrb[32].mxu0  ;;  %v1820_v27 = vpop.f32.mrb[32].mxu1  ;;  %v7535_v9 = vld [vmem:[%s9576_s10 + $0x1b0] sm:$0xff]   ;;  %v7537_v11 = vld [vmem:[%s9576_s10 + $0x1f8] sm:$0xff]   ;;  %v7540_v19 = vld [vmem:[%s9576_s10 + $0x240] sm:$0xff]  }
 0x7e9   : > { %v1778_v31 = vadd.f32 %v1777_v26, %v1293_v56  ;;  %v1821_v32 = vadd.f32 %v1820_v27, %v1301_v60  ;;  %v1779_v33 = vpop.f32.mrb[33].mxu0  ;;  %v1822_v34 = vpop.f32.mrb[33].mxu1  ;;  %6936 = vmatprep.subr.bf16.mxu0 %v7524_v15  ;;  %6958 = vmatprep.subr.bf16.mxu1 %v7525_v16  ;;  %v7538_v15 = vld [vmem:[%s9576_s10 + $0x138] sm:$0xff]   ;;  %v7541_v20 = vld [vmem:[%s9576_s10 + $0x2c0] sm:$0xff]   ;;  %v7544_v26 = vld [vmem:[%s9576_s10 + $0x248] sm:$0xff]  }
 0x7ea   : > { %v1780_v39 = vadd.f32 %v1779_v33, %v1297_v61  ;;  %v1823_v40 = vadd.f32 %v1822_v34, %v1305_v5  ;;  %v1781_v41 = vpop.f32.mrb[34].mxu0  ;;  %v1824_v42 = vpop.f32.mrb[34].mxu1  ;;  %v7539_v16 = vld [vmem:[%s9576_s10 + $0x1b8] sm:$0xff]   ;;  %v7542_v21 = vld [vmem:[%s9576_s10 + $0x200] sm:$0xff]   ;;  %v7545_v27 = vld [vmem:[%s9576_s10 + $0x2c8] sm:$0xff]  }
 0x7eb   : > { %v1782_v43 = vadd.f32 %v1781_v41, %v1293_v56  ;;  %v1825_v44 = vadd.f32 %v1824_v42, %v1301_v60  ;;  %v1783_v45 = vpop.f32.mrb[35].mxu0  ;;  %v1826_v47 = vpop.f32.mrb[35].mxu1  ;;  %v1841_v54 = vmax.f32 %v1778_v31, 0.0  ;;  %v1843_v55 = vmax.f32 %v1821_v32, 0.0  ;;  %v7532_v56 = vld [vmem:[%s9576_s10 + $0x170] sm:$0xff]   ;;  %v7543_v22 = vld [vmem:[%s9576_s10 + $0x280] sm:$0xff]  }
 0x7ec   : > { %v1784_v48 = vadd.f32 %v1783_v45, %v1297_v61  ;;  %v1827_v49 = vadd.f32 %v1826_v47, %v1305_v5  ;;  %6937 = vmatpush3.bf16.msra.mxu0 %v7526_v29  ;;  %6959 = vmatpush3.bf16.msra.mxu1 %v7527_v30  ;;  %v1842_v59 = vmax.f32 %v1780_v39, 0.0  ;;  %v1844_v60 = vmax.f32 %v1823_v40, 0.0  ;;  %v7546_v29 = vld [vmem:[%s9576_s10 + $0x208] sm:$0xff]   ;;  %v7552_v31 = vld [vmem:[%s9576_s10 + $0x258] sm:$0xff]   ;;  %v7558_v39 = vld [vmem:[%s9576_s10 + $0x220] sm:$0xff]  }
 0x7ed   : > { %v1857_v13 = vmax.f32 %v1782_v43, 0.0  ;;  %v1859_v57 = vmax.f32 %v1825_v44, 0.0  ;;  %6938 = vmatprep.subr.bf16.mxu0 %v7528_v37  ;;  %6960 = vmatprep.subr.bf16.mxu1 %v7529_v38  ;;  %v7547_v30 = vld [vmem:[%s9576_s10 + $0x288] sm:$0xff]   ;;  %v7553_v32 = vld [vmem:[%s9576_s10 + $0x2d8] sm:$0xff]   ;;  %v7556_v37 = vld [vmem:[%s9576_s10 + $0x260] sm:$0xff]  }
 0x7ee   : > { %v1858_v61 = vmax.f32 %v1784_v48, 0.0  ;;  %v1860_v63 = vmax.f32 %v1827_v49, 0.0  ;;  %v7554_v33 = vld [vmem:[%s9576_s10 + $0x218] sm:$0xff]   ;;  %v7557_v38 = vld [vmem:[%s9576_s10 + $0x2e0] sm:$0xff]   ;;  %v7560_v41 = vld [vmem:[%s9576_s10 + $0x268] sm:$0xff]  }
 0x7ef   : > { %v8545_v0 = vpack.c.bf16 %v1857_v13, %v1841_v54  ;;  %v8547_v2 = vpack.c.bf16 %v1859_v57, %v1843_v55  ;;  %v7555_v34 = vld [vmem:[%s9576_s10 + $0x298] sm:$0xff]   ;;  %v7559_v40 = vld [vmem:[%s9576_s10 + $0x2a0] sm:$0xff]   ;;  %v7561_v42 = vld [vmem:[%s9576_s10 + $0x2e8] sm:$0xff]  }
 0x7f0   : > { %v8549_v62 = vpack.c.bf16 %v1858_v61, %v1842_v59  ;;  %v8551_v5 = vpack.c.bf16 %v1860_v63, %v1844_v60  ;;  %6939 = vmatpush3.bf16.msra.mxu0 %v7530_v50  ;;  %6961 = vmatpush3.bf16.msra.mxu1 %v7531_v51  ;;  %v7562_v43 = vld [vmem:[%s9576_s10 + $0x228] sm:$0xff]   ;;  %v7564_v45 = vld [vmem:[%s9576_s10 + $0x270] sm:$0xff]   ;;  %v7568_v50 = vld [vmem:[%s9576_s10 + $0x278] sm:$0xff]  }
 0x7f1   : > { %6940 = vmatprep.subr.bf16.mxu0 %v7532_v56  ;;  %6962 = vmatprep.subr.bf16.mxu1 %v7533_v58  ;;  %v7563_v44 = vld [vmem:[%s9576_s10 + $0x2a8] sm:$0xff]   ;;  %v7565_v47 = vld [vmem:[%s9576_s10 + $0x2f0] sm:$0xff]   ;;  %v7569_v51 = vld [vmem:[%s9576_s10 + $0x2f8] sm:$0xff]  }
 0x7f2   : > { %v7566_v48 = vld [vmem:[%s9576_s10 + $0x230] sm:$0xff]   ;;  %v7570_v54 = vld [vmem:[%s9576_s10 + $0x238] sm:$0xff]   ;;  %v7572_v13 = vld [vmem:[%s9576_s10 + $0x340] sm:$0xff]  }
 0x7f3   : > { %v7567_v49 = vld [vmem:[%s9576_s10 + $0x2b0] sm:$0xff]   ;;  %v7571_v55 = vld [vmem:[%s9576_s10 + $0x2b8] sm:$0xff]   ;;  %v7573_v57 = vld [vmem:[%s9576_s10 + $0x3c0] sm:$0xff]  }
 0x7f4   : > { %6941 = vmatpush3.bf16.msra.mxu0 %v7534_v8  ;;  %6963 = vmatpush3.bf16.msra.mxu1 %v7535_v9  ;;  %v7574_v56 = vld [vmem:[%s9576_s10 + $0x300] sm:$0xff]   ;;  %v7576_v59 = vld [vmem:[%s9576_s10 + $0x348] sm:$0xff]   ;;  %v7583_v8 = vld [vmem:[%s9576_s10 + $0x390] sm:$0xff]  }
 0x7f5   : > { %6942 = vmatprep.subr.bf16.mxu0 %v7536_v10  ;;  %6964 = vmatprep.subr.bf16.mxu1 %v7537_v11  ;;  %v7575_v58 = vld [vmem:[%s9576_s10 + $0x380] sm:$0xff]   ;;  %v7577_v60 = vld [vmem:[%s9576_s10 + $0x3c8] sm:$0xff]   ;;  %v7585_v9 = vld [vmem:[%s9576_s10 + $0x3d8] sm:$0xff]  }
 0x7f6   : > { %v7578_v61 = vld [vmem:[%s9576_s10 + $0x308] sm:$0xff]   ;;  %v7586_v10 = vld [vmem:[%s9576_s10 + $0x318] sm:$0xff]  }
 0x7f7   : > { %v7579_v63 = vld [vmem:[%s9576_s10 + $0x388] sm:$0xff]   ;;  %v7587_v11 = vld [vmem:[%s9576_s10 + $0x398] sm:$0xff]  }
 0x7f8   : > { %6943 = vmatpush3.bf16.msra.mxu0 %v7538_v15  ;;  %6965 = vmatpush3.bf16.msra.mxu1 %v7539_v16  ;;  %v7588_v15 = vld [vmem:[%s9576_s10 + $0x360] sm:$0xff]  }
 0x7f9   : > { %6972 = vmatprep.subr.bf16.mxu0 %v7540_v19  ;;  %6994 = vmatprep.subr.bf16.mxu1 %v7541_v20  ;;  %v7589_v16 = vld [vmem:[%s9576_s10 + $0x3e0] sm:$0xff]  }
 0x7fa   : > { %v7590_v19 = vld [vmem:[%s9576_s10 + $0x320] sm:$0xff]  }
 0x7fb   : > { %3023 = vmatmul.mubr.bf16.vlgmr.msra.gmra.mrb[40].mxu0 %v8477_v35  ;;  %3064 = vmatmul.mubr.bf16.vlgmr.msra.gmra.mrb[40].mxu1 %v8479_v36  ;;  %v7548_v35 = vld [vmem:[%s9576_s10 + $0x250] sm:$0xff]   ;;  %v7591_v20 = vld [vmem:[%s9576_s10 + $0x3a0] sm:$0xff]  }
 0x7fc   : > { %6973 = vmatpush3.bf16.msra.mxu0 %v7542_v21  ;;  %3104 = vmatprep.mubr.bf16.mxu0 %v8517_v24  ;;  %v7549_v36 = vld [vmem:[%s9576_s10 + $0x2d0] sm:$0xff]   ;;  %v7592_v21 = vld [vmem:[%s9576_s10 + $0x368] sm:$0xff]  }
 0x7fd   : > { %6995 = vmatpush3.bf16.msra.mxu1 %v7543_v22  ;;  %3145 = vmatprep.mubr.bf16.mxu1 %v8519_v25  ;;  %v7550_v24 = vld [vmem:[%s9576_s10 + $0x210] sm:$0xff]   ;;  %v7593_v22 = vld [vmem:[%s9576_s10 + $0x3e8] sm:$0xff]  }
 0x7fe   : > { %6974 = vmatprep.subr.bf16.mxu0 %v7544_v26  ;;  %6996 = vmatprep.subr.bf16.mxu1 %v7545_v27  ;;  %v7551_v25 = vld [vmem:[%s9576_s10 + $0x290] sm:$0xff]   ;;  %v7594_v26 = vld [vmem:[%s9576_s10 + $0x328] sm:$0xff]  }
 0x7ff   : > { %v7595_v27 = vld [vmem:[%s9576_s10 + $0x3a8] sm:$0xff]  }
 0x800   : > { %6975 = vmatpush3.bf16.msra.mxu0 %v7546_v29  ;;  %v7596_v29 = vld [vmem:[%s9576_s10 + $0x370] sm:$0xff]  }
 0x801   : > { %6997 = vmatpush3.bf16.msra.mxu1 %v7547_v30  ;;  %6976 = vmatprep.subr.bf16.mxu0 %v7548_v35  ;;  %v7597_v30 = vld [vmem:[%s9576_s10 + $0x3f0] sm:$0xff]  }
 0x802   : > { %6998 = vmatprep.subr.bf16.mxu1 %v7549_v36  ;;  %v7598_v35 = vld [vmem:[%s9576_s10 + $0x330] sm:$0xff]  }
 0x803   : > { %v7599_v36 = vld [vmem:[%s9576_s10 + $0x3b0] sm:$0xff]  }
 0x804   : > { %6977 = vmatpush3.bf16.msra.mxu0 %v7550_v24  ;;  %v7600_v24 = vld [vmem:[%s9576_s10 + $0x378] sm:$0xff]  }
 0x805   : > { %6999 = vmatpush3.bf16.msra.mxu1 %v7551_v25  ;;  %6978 = vmatprep.subr.bf16.mxu0 %v7552_v31  ;;  %v7601_v25 = vld [vmem:[%s9576_s10 + $0x3f8] sm:$0xff]  }
 0x806   : > { %7000 = vmatprep.subr.bf16.mxu1 %v7553_v32  ;;  %v7602_v31 = vld [vmem:[%s9576_s10 + $0x338] sm:$0xff]  }
 0x807   : > { %v7603_v32 = vld [vmem:[%s9576_s10 + $0x3b8] sm:$0xff]  }
 0x808   : > { %6979 = vmatpush3.bf16.msra.mxu0 %v7554_v33 }
 0x809   : > { %7001 = vmatpush3.bf16.msra.mxu1 %v7555_v34  ;;  %6980 = vmatprep.subr.bf16.mxu0 %v7556_v37  ;;  %v6232_v37 = vld [vmem:[%s9577_s11] ss:$0 sm:$0xff] }
 0x80a   : > { %7002 = vmatprep.subr.bf16.mxu1 %v7557_v38 }
 0x80c   : > { %6981 = vmatpush3.bf16.msra.mxu0 %v7558_v39 }
 0x80d   : > { %7003 = vmatpush3.bf16.msra.mxu1 %v7559_v40  ;;  %6982 = vmatprep.subr.bf16.mxu0 %v7560_v41 }
 0x80e   : > { %7004 = vmatprep.subr.bf16.mxu1 %v7561_v42 }
 0x810   : > { %6983 = vmatpush3.bf16.msra.mxu0 %v7562_v43 }
 0x811   : > { %7005 = vmatpush3.bf16.msra.mxu1 %v7563_v44  ;;  %6984 = vmatprep.subr.bf16.mxu0 %v7564_v45 }
 0x812   : > { %7006 = vmatprep.subr.bf16.mxu1 %v7565_v47 }
 0x814   : > { %6985 = vmatpush3.bf16.msra.mxu0 %v7566_v48 }
 0x815   : > { %7007 = vmatpush3.bf16.msra.mxu1 %v7567_v49  ;;  %6986 = vmatprep.subr.bf16.mxu0 %v7568_v50 }
 0x816   : > { %7008 = vmatprep.subr.bf16.mxu1 %v7569_v51 }
 0x818   : > { %6987 = vmatpush3.bf16.msra.mxu0 %v7570_v54 }
 0x819   : > { %7009 = vmatpush3.bf16.msra.mxu1 %v7571_v55  ;;  %7016 = vmatprep.subr.bf16.mxu0 %v7572_v13 }
 0x81a   : > { %7038 = vmatprep.subr.bf16.mxu1 %v7573_v57 }
 0x81b   : > { %3105 = vmatmul.mubr.bf16.vlgmr.msra.gmra.mrb[44].mxu0 %v8513_v23  ;;  %v7580_v23 = vld [vmem:[%s9576_s10 + $0x350] sm:$0xff]  }
 0x81c   : > { %3146 = vmatmul.mubr.bf16.vlgmr.msra.gmra.mrb[44].mxu1 %v8515_v46  ;;  %7017 = vmatpush3.bf16.msra.mxu0 %v7574_v56  ;;  %v7581_v46 = vld [vmem:[%s9576_s10 + $0x3d0] sm:$0xff]  }
 0x81d   : > { %3186 = vmatprep.mubr.bf16.mxu0 %v8549_v62  ;;  %7039 = vmatpush3.bf16.msra.mxu1 %v7575_v58  ;;  %v7582_v62 = vld [vmem:[%s9576_s10 + $0x310] sm:$0xff]  }
 0x81e   : > { %3227 = vmatprep.mubr.bf16.mxu1 %v8551_v5  ;;  %7018 = vmatprep.subr.bf16.mxu0 %v7576_v59  ;;  %v7584_v5 = vld [vmem:[%s9576_s10 + $0x358] sm:$0xff]  }
 0x81f   : > { %7040 = vmatprep.subr.bf16.mxu1 %v7577_v60 }
 0x820   : > { %7019 = vmatpush3.bf16.msra.mxu0 %v7578_v61 }
 0x821   : > { %7041 = vmatpush3.bf16.msra.mxu1 %v7579_v63  ;;  %7020 = vmatprep.subr.bf16.mxu0 %v7580_v23 }
 0x822   : > { %7042 = vmatprep.subr.bf16.mxu1 %v7581_v46 }
 0x824   : > { %7021 = vmatpush3.bf16.msra.mxu0 %v7582_v62 }
 0x825   : > { %7043 = vmatpush3.bf16.msra.mxu1 %v7583_v8  ;;  %7022 = vmatprep.subr.bf16.mxu0 %v7584_v5 }
 0x826   : > { %7044 = vmatprep.subr.bf16.mxu1 %v7585_v9 }
 0x828   : > { %7023 = vmatpush3.bf16.msra.mxu0 %v7586_v10 }
 0x829   : > { %7045 = vmatpush3.bf16.msra.mxu1 %v7587_v11  ;;  %7024 = vmatprep.subr.bf16.mxu0 %v7588_v15 }
 0x82a   : > { %7046 = vmatprep.subr.bf16.mxu1 %v7589_v16 }
 0x82c   : > { %7025 = vmatpush3.bf16.msra.mxu0 %v7590_v19 }
 0x82d   : > { %7047 = vmatpush3.bf16.msra.mxu1 %v7591_v20  ;;  %7026 = vmatprep.subr.bf16.mxu0 %v7592_v21 }
 0x82e   : > { %7048 = vmatprep.subr.bf16.mxu1 %v7593_v22 }
 0x830   : > { %7027 = vmatpush3.bf16.msra.mxu0 %v7594_v26 }
 0x831   : > { %7049 = vmatpush3.bf16.msra.mxu1 %v7595_v27  ;;  %7028 = vmatprep.subr.bf16.mxu0 %v7596_v29 }
 0x832   : > { %7050 = vmatprep.subr.bf16.mxu1 %v7597_v30 }
 0x834   : > { %7029 = vmatpush3.bf16.msra.mxu0 %v7598_v35 }
 0x835   : > { %7051 = vmatpush3.bf16.msra.mxu1 %v7599_v36  ;;  %7030 = vmatprep.subr.bf16.mxu0 %v7600_v24 }
 0x836   : > { %7052 = vmatprep.subr.bf16.mxu1 %v7601_v25 }
 0x838   : > { %7031 = vmatpush3.bf16.msra.mxu0 %v7602_v31 }
 0x839   : > { %7053 = vmatpush3.bf16.msra.mxu1 %v7603_v32  ;;  %7322 = vmatprep.subr.bf16.mxu0 %v7890_v1 }
 0x83a   : > { %7330 = vmatprep.subr.bf16.mxu1 %v7890_v1 }
 0x83b   : > { %3187 = vmatmul.mubr.bf16.vlgmr.msra.gmra.mrb[48].mxu0 %v8545_v0 }
 0x83c   : > { %3228 = vmatmul.mubr.bf16.vlgmr.msra.gmra.mrb[48].mxu1 %v8547_v2  ;;  %7326 = vmatprep.mubr.msk.bf16.mxu0 %vm7891_vm0, %v7890_v1 }
 0x83d   : > { %7332 = vmatprep.mubr.msk.bf16.mxu1 %vm7891_vm0, %v7890_v1 }
 0x8ae   : > { %v6900_v33 = vpop.f32.mrb[36].mxu0  ;;  %v6922_v34 = vpop.f32.mrb[36].mxu1 }
 0x8af   : > { %v6901_v38 = vpop.f32.mrb[37].mxu0  ;;  %v6923_v39 = vpop.f32.mrb[37].mxu1 }
 0x8b0   : > { %v6902_v40 = vadd.f32 %v6901_v38, %v6900_v33  ;;  %v6924_v41 = vadd.f32 %v6923_v39, %v6922_v34  ;;  %v6903_v42 = vpop.f32.mrb[38].mxu0  ;;  %v6925_v0 = vpop.f32.mrb[38].mxu1 }
 0x8b1   : > { %v6904_v43 = vpop.f32.mrb[39].mxu0  ;;  %v6926_v2 = vpop.f32.mrb[39].mxu1 }
 0x8b2   : > { %v2943_v44 = vadd.f32 %v6902_v40, %v6232_v37  ;;  %v6905_v45 = vadd.f32 %v6904_v43, %v6903_v42  ;;  %v6927_v47 = vadd.f32 %v6926_v2, %v6925_v0 }
 0x8b4   : > { %v2984_v48 = vadd.f32 %v6924_v41, %v2943_v44  ;;  %v2946_v49 = vadd.f32 %v6905_v45, %v6232_v37 }
 0x8b6   : > { %v2987_v50 = vadd.f32 %v6927_v47, %v2946_v49 }
 0x8ce   : > { %v6944_v51 = vpop.f32.mrb[40].mxu0  ;;  %v6966_v54 = vpop.f32.mrb[40].mxu1 }
 0x8cf   : > { %v6945_v55 = vpop.f32.mrb[41].mxu0  ;;  %v6967_v13 = vpop.f32.mrb[41].mxu1 }
 0x8d0   : > { %v6946_v57 = vadd.f32 %v6945_v55, %v6944_v51  ;;  %v6968_v56 = vadd.f32 %v6967_v13, %v6966_v54  ;;  %v6947_v58 = vpop.f32.mrb[42].mxu0  ;;  %v6969_v59 = vpop.f32.mrb[42].mxu1 }
 0x8d1   : > { %v6948_v60 = vpop.f32.mrb[43].mxu0  ;;  %v6970_v61 = vpop.f32.mrb[43].mxu1 }
 0x8d2   : > { %v3025_v63 = vadd.f32 %v6946_v57, %v2984_v48  ;;  %v6949_v23 = vadd.f32 %v6948_v60, %v6947_v58  ;;  %v6971_v46 = vadd.f32 %v6970_v61, %v6969_v59  ;;  %v7605_v61 = vld [vmem:[%s9568_s2 + $0x18] sm:$0xff]  }
 0x8d4   : > { %v3066_v62 = vadd.f32 %v6968_v56, %v3025_v63  ;;  %v3028_v8 = vadd.f32 %v6949_v23, %v2987_v50 }
 0x8d6   : > { %v3069_v5 = vadd.f32 %v6971_v46, %v3028_v8 }
 0x8ee   : > { %v6988_v9 = vpop.f32.mrb[44].mxu0 }
 0x8ef   : > { %v7010_v10 = vpop.f32.mrb[44].mxu1  ;;  %v6989_v11 = vpop.f32.mrb[45].mxu0 }
 0x8f0   : > { %v6990_v15 = vadd.f32 %v6989_v11, %v6988_v9  ;;  %v7011_v16 = vpop.f32.mrb[45].mxu1  ;;  %v6991_v19 = vpop.f32.mrb[46].mxu0 }
 0x8f1   : > { %v7012_v20 = vadd.f32 %v7011_v16, %v7010_v10  ;;  %v7013_v21 = vpop.f32.mrb[46].mxu1  ;;  %v6992_v22 = vpop.f32.mrb[47].mxu0  ;;  %v6361_v10 = vld [vmem:[%s9578_s12] ss:$0 sm:$0xff] }
 0x8f2   : > { %v3107_v26 = vadd.f32 %v6990_v15, %v3066_v62  ;;  %v6993_v27 = vadd.f32 %v6992_v22, %v6991_v19  ;;  %v7014_v29 = vpop.f32.mrb[47].mxu1 }
 0x8f3   : > { %v7015_v30 = vadd.f32 %v7014_v29, %v7013_v21  ;;  %v6368_v29 = vld [vmem:[%s9569_s3 + $0x1] ss:$0 sm:$0xff] }
 0x8f4   : > { %v3148_v35 = vadd.f32 %v7012_v20, %v3107_v26  ;;  %v3110_v36 = vadd.f32 %v6993_v27, %v3069_v5  ;;  %v6362_v20 = vld [vmem:[%s9579_s13] ss:$0 sm:$0xff] }
 0x8f6   : > { %v3151_v24 = vadd.f32 %v7015_v30, %v3110_v36 }
 0x90e   : > { %v7032_v25 = vpop.f32.mrb[48].mxu0 }
 0x90f   : > { %v7054_v31 = vpop.f32.mrb[48].mxu1  ;;  %v7033_v32 = vpop.f32.mrb[49].mxu0 }
 0x910   : > { %v7034_v33 = vadd.f32 %v7033_v32, %v7032_v25  ;;  %v7055_v34 = vpop.f32.mrb[49].mxu1  ;;  %v7035_v37 = vpop.f32.mrb[50].mxu0 }
 0x911   : > { %v7056_v38 = vadd.f32 %v7055_v34, %v7054_v31  ;;  %v7057_v39 = vpop.f32.mrb[50].mxu1  ;;  %v7036_v40 = vpop.f32.mrb[51].mxu0 }
 0x912   : > { %v3189_v41 = vadd.f32 %v7034_v33, %v3148_v35  ;;  %v7037_v42 = vadd.f32 %v7036_v40, %v7035_v37  ;;  %v7058_v0 = vpop.f32.mrb[51].mxu1 }
 0x913   : > { %v7059_v43 = vadd.f32 %v7058_v0, %v7057_v39 }
 0x914   : > { %v3230_v2 = vadd.f32 %v7056_v38, %v3189_v41  ;;  %v3192_v44 = vadd.f32 %v7037_v42, %v3151_v24 }
 0x916   : > { %v3233_v45 = vadd.f32 %v7059_v43, %v3192_v44  ;;  %v3236_v47 = vadd.f32 %v3230_v2, %v8233_v52 }
 0x918   : > { %v3240_v48 = vsel %vm512_vm1, %v3236_v47, 0.0  ;;  %v3237_v49 = vadd.f32 %v3233_v45, %v8235_v53  ;;  %v7604_v53 = vld [vmem:[%s9568_s2 + $0x10] sm:$0xff]  }
 0x919   : > { %3241 = vadd.xlane.f32.xlu1 %v3240_v48  ;;  %7323 = vmatpush3.bf16.msra.mxu0 %v7604_v53 }
 0x91a   : > { %v3243_v50 = vsel %vm512_vm1, %v3237_v49, 0.0  ;;  %7324 = vmatprep.subr.bf16.mxu0 %v7890_v1 }
 0x91b   : > { %3244 = vadd.xlane.f32.xlu0 %v3243_v50 }
 0x91d   : > { %7325 = vmatpush3.bf16.msra.mxu0 %v7605_v61 }
 0x91e   : > { %7336 = vmatprep.subr.bf16.mxu0 %v7890_v1 }
 0x9a6   : > { %v3242_v51 = vpop.xlane.xlu1 %3241 }
 0x9a7   : > { %v3246_v54 = vmul.f32 0.03125, %v3242_v51 }
 0x9a8   : > { %v3245_v55 = vpop.xlane.xlu0 %3244 }
 0x9a9   : > { %v3248_v13 = vsub.f32 %v3236_v47, %v3246_v54  ;;  %v3247_v57 = vmul.f32 0.03125, %v3245_v55  ;;  %v7818_v47 = vld [vmem:[%s8104_s0] sm:$0xff]  ;;  %v7819_v55 = vld [vmem:[%s8104_s0 + $0x8] sm:$0xff] }
 0x9ab   : > { %v3249_v56 = vsub.f32 %v3237_v49, %v3247_v57  ;;  %v3250_v58 = vmul.f32 %v3248_v13, %v3248_v13  ;;  %v7820_v57 = vld [vmem:[%s8104_s0 + $0x18] sm:$0xff] }
 0x9ad   : > { %v3252_v59 = vsel %vm512_vm1, %v3250_v58, 0.0  ;;  %v3251_v60 = vmul.f32 %v3249_v56, %v3249_v56 }
 0x9ae   : > { %3253 = vadd.xlane.f32.xlu1 %v3252_v59 }
 0x9af   : > { %v3255_v52 = vsel %vm512_vm1, %v3251_v60, 0.0 }
 0x9b0   : > { %3256 = vadd.xlane.f32.xlu0 %v3255_v52  ;;  %v7821_v52 = vld [vmem:[%s8104_s0 + $0x10] sm:$0xff] }
 0xa3b   : > { %v3254_v63 = vpop.xlane.xlu1 %3253 }
 0xa3c   : > { %v3258_v23 = vmul.f32 0.03125, %v3254_v63 }
 0xa3d   : > { %v3257_v46 = vpop.xlane.xlu0 %3256 }
 0xa3e   : > { %v3260_v62 = vadd.f32 1e-05, %v3258_v23  ;;  %v3259_v8 = vmul.f32 0.03125, %v3257_v46 }
 0xa40   : > { %7772 = vrsqrt.f32 %v3260_v62  ;;  %v3261_v5 = vadd.f32 1e-05, %v3259_v8  ;;  %v7822_v62 = vld [vmem:[%s8104_s0 + $0x20] sm:$0xff] }
 0xa42   : > { %7774 = vrsqrt.f32 %v3261_v5 }
 0xa4a   : > { %v7773_v9 = vpop.eup %7772 }
 0xa4b   : > { %v3264_v11 = vmul.f32 %v7773_v9, %v3248_v13 }
 0xa4c   : > { %v7775_v15 = vpop.eup %7774 }
 0xa4d   : > { %v3272_v16 = vmul.f32 %v6361_v10, %v3264_v11  ;;  %v3265_v19 = vmul.f32 %v7775_v15, %v3249_v56 }
 0xa4f   : > { %v3273_v21 = vmul.f32 %v6361_v10, %v3265_v19  ;;  %v8802_v22 = vadd.f32 %v6362_v20, %v3272_v16  ;;  %v7823_v16 = vld [vmem:[%s8104_s0 + $0x28] sm:$0xff] }
 0xa51   : > { %v8804_v26 = vadd.f32 %v6362_v20, %v3273_v21 }
 0xa53   : > { %v3282_v27 = vpack.c.bf16 %v8804_v26, %v8802_v22 }
 0xa55   : > { %7327 = vmatmul.mubr.msk.bf16.vlgmr.msra.gmra.mrb[52].mxu0 %vm512_vm1, %v3282_v27  ;;  %v7824_v27 = vld [vmem:[%s8104_s0 + $0x30] sm:$0xff] }
 0xa56   : > { %7338 = vmatprep.mubr.msk.bf16.mxu0 %vm7891_vm0, %v7890_v1 }
 0xb28   : > { %v3345_v30 = vpop.f32.mrb[52].mxu0 }
 0xb29   : > { %v7328_v35 = vpop.f32.mrb[53].mxu0  ;;  %v3346_v24 = vadd.f32 %v6368_v29, %v3345_v30  ;;  %v7825_v30 = vld [vmem:[%s8104_s0 + $0x38] sm:$0xff]  ;;  %s9613_s0 = smov 48  }
 0xb2a   : > { %v3348_v36 = vpop.f32.mrb[54].mxu0 }
 0xb2b   : > { %v3349_v25 = vadd.f32 %v6368_v29, %v3348_v36  ;;  %v7329_v31 = vpop.f32.mrb[55].mxu0 }
 0xb2d   : > { %v8814_v32 = vpack.c.bf16 %v3349_v25, %v3346_v24 }
 0xb2f   : > { %3405 = vrot.lane.b32.xlu0 %v8814_v32, %s9604_s21  ;;  %3354 = vrot.lane.b32.xlu1 %v8814_v32, %s9605_s25 }
 0xb33   : > { %3507 = vrot.lane.b32.xlu0 %v8814_v32, %s9606_s1  ;;  %3456 = vrot.lane.b32.xlu1 %v8814_v32, %s9607_s27  ;;  %s473_s1 = sand.u32 1, %s7880_s30   ;;  %s6857_s27 = sshll.u32 %s8004_s17, 4 }
 0xb34   : > { %s7907_s17 = smov [#allocation2]  }
 0xb35   : > { %s7830_s21 = sshll.u32 %s7907_s17, 4  ;;  %s7831_s21 = int_to_ptr.vmem [resolvable:$false] %s7830_s21 }
 0xb36   : > { %s7832_s25 = scalar_lea.vmem %s7831_s21, 32 }
 0xb37   : > { %3505 = vrot.lane.b32.xlu0 %v8814_v32, %s9608_s26  ;;  %3403 = vrot.lane.b32.xlu1 %v8814_v32, %s9609_s20  ;;  %s9615_s26 = smov 8   ;;  %s9616_s20 = smov 16  }
 0xb3b   : > { %3454 = vrot.lane.b32.xlu1 %v8814_v32, %s9610_s18  ;;  %s9617_s18 = smov 24  }
 0xba1   : > { %v3406_v33 = vpop.permute.xlu0 %3405  ;;  %v3355_v34 = vpop.permute.xlu1 %3354 }
 0xba2   : > { %v3411_v37 = vsel %vm561_vm2, %v3406_v33, 0  ;;  %v3360_v38 = vsel %vm561_vm2, %v3355_v34, 0 }
 0xba3   : > { %7331 = vmatpush3.bf16.xpose.msra.mxu1 %v3360_v38  ;;  %7337 = vmatpush3.bf16.xpose.msra.mxu0 %v3411_v37 }
 0xba4   : > { %7342 = vmatprep.subr.bf16.mxu1 %v7890_v1  ;;  %7348 = vmatprep.subr.bf16.mxu0 %v7890_v1 }
 0xba5   : > { %v3457_v39 = vpop.permute.xlu1 %3456  ;;  %v3508_v40 = vpop.permute.xlu0 %3507 }
 0xba6   : > { %v3513_v42 = vsel %vm561_vm2, %v3508_v40, 0  ;;  %v3462_v0 = vsel %vm561_vm2, %v3457_v39, 0 }
 0xba9   : > { %v3404_v41 = vpop.permute.xlu1 %3403  ;;  %v3506_v43 = vpop.permute.xlu0 %3505 }
 0xbaa   : > { %7333 = vmatmul.mubr.msk.bf16.vlgmr.msra.gmra.mrb[52].mxu1 %vm561_vm2, %v8814_v32  ;;  %7339 = vmatmul.mubr.msk.bf16.vlgmr.msra.gmra.mrb[56].mxu0 %vm561_vm2, %v3404_v41 }
 0xbab   : > { %7343 = vmatpush3.bf16.xpose.msra.mxu1 %v3462_v0  ;;  %7349 = vmatpush3.bf16.xpose.msra.mxu0 %v3513_v42 }
 0xbac   : > { %7344 = vmatprep.mubr.msk.bf16.mxu1 %vm7891_vm0, %v7890_v1  ;;  %7350 = vmatprep.mubr.msk.bf16.mxu0 %vm7891_vm0, %v7890_v1 }
 0xbad   : > { %7354 = vmatprep.subr.bf16.mxu1 %v7890_v1  ;;  %7360 = vmatprep.subr.bf16.mxu0 %v7890_v1  ;;  %v3455_v2 = vpop.permute.xlu1 %3454 }
 0xbb2   : > { %7345 = vmatmul.mubr.msk.bf16.vlgmr.msra.gmra.mrb[56].mxu1 %vm561_vm2, %v3455_v2  ;;  %7351 = vmatmul.mubr.msk.bf16.vlgmr.msra.gmra.mrb[60].mxu0 %vm561_vm2, %v3506_v43 }
 0xbb3   : > { %7356 = vmatprep.mubr.msk.bf16.mxu1 %vm7891_vm0, %v7890_v1  ;;  %7362 = vmatprep.mubr.msk.bf16.mxu0 %vm7891_vm0, %v7890_v1 }
 0xc7d   : > { %v3396_v44 = vpop.f32.mrb[52].mxu1  ;;  %v3447_v45 = vpop.f32.mrb[56].mxu0 }
 0xc7e   : > { %v3556_v48 = vadd.f32 %v7818_v47, %v3396_v44  ;;  %v7334_v49 = vpop.f32.mrb[53].mxu1  ;;  %v7340_v50 = vpop.f32.mrb[57].mxu0  ;;  %v3558_v53 = vadd.f32 %v7821_v52, %v3447_v45 }
 0xc7f   : > { %v3399_v51 = vpop.f32.mrb[54].mxu1  ;;  %v3450_v54 = vpop.f32.mrb[58].mxu0 }
 0xc80   : > { %v3557_v13 = vadd.f32 %v7819_v55, %v3399_v51  ;;  %v3559_v56 = vadd.f32 %v7820_v57, %v3450_v54  ;;  %v7335_v58 = vpop.f32.mrb[55].mxu1  ;;  %v7341_v59 = vpop.f32.mrb[59].mxu0  ;;  %v3564_v60 = vsel %vm778_vm3, %v3556_v48, -inf  ;;  %v3570_v10 = vsel %vm778_vm3, %v3558_v53, -inf }
 0xc81   : > { %3565 = vmax.xlane.f32.xlu1 %v3564_v60 }
 0xc82   : > { %v3567_v61 = vsel %vm778_vm3, %v3557_v13, -inf  ;;  %v3573_v63 = vsel %vm778_vm3, %v3559_v56, -inf }
 0xc83   : > { %3568 = vmax.xlane.f32.xlu0 %v3567_v61 }
 0xc85   : > { %v3498_v23 = vpop.f32.mrb[56].mxu1  ;;  %3574 = vmax.xlane.f32.xlu1 %v3573_v63  ;;  %v3549_v46 = vpop.f32.mrb[60].mxu0 }
 0xc86   : > { %v3560_v8 = vadd.f32 %v7822_v62, %v3498_v23  ;;  %v7346_v5 = vpop.f32.mrb[57].mxu1  ;;  %v7352_v9 = vpop.f32.mrb[61].mxu0  ;;  %v3562_v29 = vadd.f32 %v7824_v27, %v3549_v46 }
 0xc87   : > { %v3501_v11 = vpop.f32.mrb[58].mxu1  ;;  %3571 = vmax.xlane.f32.xlu0 %v3570_v10  ;;  %v3552_v15 = vpop.f32.mrb[62].mxu0 }
 0xc88   : > { %v3561_v19 = vadd.f32 %v7823_v16, %v3501_v11  ;;  %v7347_v20 = vpop.f32.mrb[59].mxu1  ;;  %v7353_v21 = vpop.f32.mrb[63].mxu0  ;;  %v3563_v35 = vadd.f32 %v7825_v30, %v3552_v15  ;;  %v3576_v36 = vsel %vm778_vm3, %v3560_v8, -inf  ;;  %v3582_v25 = vsel %vm778_vm3, %v3562_v29, -inf }
 0xc8a   : > { %v3579_v24 = vsel %vm778_vm3, %v3561_v19, -inf  ;;  %v3585_v31 = vsel %vm778_vm3, %v3563_v35, -inf }
 0xc8b   : > { %3577 = vmax.xlane.f32.xlu0 %v3576_v36  ;;  %3580 = vmax.xlane.f32.xlu1 %v3579_v24 }
 0xc8f   : > { %3583 = vmax.xlane.f32.xlu0 %v3582_v25  ;;  %3586 = vmax.xlane.f32.xlu1 %v3585_v31 }
 0xca0   : > { %3703 = vrot.lane.b32.xlu1 %v8814_v32, %s9611_s28 }
 0xca5   : > { %3656 = vrot.lane.b32.xlu0 %v8814_v32, %s9612_s15  ;;  %s9524_s15 = scalar_lea.hbm %s9580_s14, %s6857_s27 }
 0xd0e   : > { %v3566_v33 = vpop.xlane.xlu1 %3565 }
 0xd0f   : > { %v3588_v34 = vsub.f32 %v3556_v48, %v3566_v33 }
 0xd10   : > { %v3569_v37 = vpop.xlane.xlu0 %3568 }
 0xd11   : > { %v3596_v38 = vmul.f32 1.442695, %v3588_v34  ;;  %v3589_v39 = vsub.f32 %v3557_v13, %v3569_v37 }
 0xd12   : > { %v3575_v40 = vpop.xlane.xlu1 %3574 }
 0xd13   : > { %7776 = vpow2.f32 %v3596_v38  ;;  %v3598_v41 = vmul.f32 1.442695, %v3589_v39  ;;  %v3591_v42 = vsub.f32 %v3559_v56, %v3575_v40 }
 0xd14   : > { %v3572_v0 = vpop.xlane.xlu0 %3571 }
 0xd15   : > { %7778 = vpow2.f32 %v3598_v41  ;;  %v3602_v43 = vmul.f32 1.442695, %v3591_v42  ;;  %v3590_v2 = vsub.f32 %v3558_v53, %v3572_v0 }
 0xd17   : > { %7780 = vpow2.f32 %v3602_v43  ;;  %v3600_v44 = vmul.f32 1.442695, %v3590_v2 }
 0xd18   : > { %v3578_v45 = vpop.xlane.xlu0 %3577  ;;  %v3581_v47 = vpop.xlane.xlu1 %3580 }
 0xd19   : > { %7782 = vpow2.f32 %v3600_v44  ;;  %v3592_v49 = vsub.f32 %v3560_v8, %v3578_v45  ;;  %v3593_v50 = vsub.f32 %v3561_v19, %v3581_v47 }
 0xd1b   : > { %v3604_v51 = vmul.f32 1.442695, %v3592_v49  ;;  %v3606_v48 = vmul.f32 1.442695, %v3593_v50 }
 0xd1c   : > { %v3584_v54 = vpop.xlane.xlu0 %3583  ;;  %v3587_v55 = vpop.xlane.xlu1 %3586 }
 0xd1d   : > { %v7777_v13 = vpop.eup %7776  ;;  %7784 = vpow2.f32 %v3604_v51  ;;  %v3594_v57 = vsub.f32 %v3562_v29, %v3584_v54  ;;  %v3595_v58 = vsub.f32 %v3563_v35, %v3587_v55 }
 0xd1e   : > { %7786 = vpow2.f32 %v3606_v48  ;;  %v3612_v56 = vsel %vm778_vm3, %v7777_v13, 0.0 }
 0xd1f   : > { %v7779_v59 = vpop.eup %7778  ;;  %v3608_v60 = vmul.f32 1.442695, %v3594_v57  ;;  %v3610_v52 = vmul.f32 1.442695, %v3595_v58  ;;  %3613 = vadd.xlane.f32.xlu0 %v3612_v56  ;;  %v7606_v56 = vld [vmem:[%s9570_s4 + $0x10] sm:$0xff]  }
 0xd20   : > { %v3657_v53 = vpop.permute.xlu0 %3656  ;;  %v3704_v61 = vpop.permute.xlu1 %3703  ;;  %v3615_v63 = vsel %vm778_vm3, %v7779_v59, 0.0 }
 0xd21   : > { %v7781_v23 = vpop.eup %7780  ;;  %7788 = vpow2.f32 %v3608_v60  ;;  %7355 = vmatpush3.bf16.msra.mxu1 %v3657_v53  ;;  %3616 = vadd.xlane.f32.xlu1 %v3615_v63  ;;  %v7607_v53 = vld [vmem:[%s9570_s4 + $0x18] sm:$0xff]  }
 0xd22   : > { %7790 = vpow2.f32 %v3610_v52  ;;  %7361 = vmatpush3.bf16.msra.mxu0 %v3704_v61  ;;  %7366 = vmatprep.subr.bf16.mxu1 %v7890_v1  ;;  %v3621_v8 = vsel %vm778_vm3, %v7781_v23, 0.0 }
 0xd23   : > { %v7783_v46 = vpop.eup %7782  ;;  %7372 = vmatprep.subr.bf16.mxu0 %v7890_v1 }
 0xd24   : > { %v3618_v62 = vsel %vm778_vm3, %v7783_v46, 0.0 }
 0xd25   : > { %3619 = vadd.xlane.f32.xlu0 %v3618_v62  ;;  %3622 = vadd.xlane.f32.xlu1 %v3621_v8 }
 0xd27   : > { %v7785_v5 = vpop.eup %7784 }
 0xd28   : > { %v7787_v9 = vpop.eup %7786  ;;  %v3624_v10 = vsel %vm778_vm3, %v7785_v5, 0.0 }
 0xd29   : > { %3625 = vadd.xlane.f32.xlu0 %v3624_v10  ;;  %v3627_v11 = vsel %vm778_vm3, %v7787_v9, 0.0 }
 0xd2a   : > { %3628 = vadd.xlane.f32.xlu1 %v3627_v11 }
 0xd2b   : > { %v7789_v15 = vpop.eup %7788 }
 0xd2c   : > { %v7791_v16 = vpop.eup %7790  ;;  %v3630_v19 = vsel %vm778_vm3, %v7789_v15, 0.0 }
 0xd2d   : > { %3631 = vadd.xlane.f32.xlu0 %v3630_v19  ;;  %v3633_v20 = vsel %vm778_vm3, %v7791_v16, 0.0 }
 0xd2e   : > { %3634 = vadd.xlane.f32.xlu1 %v3633_v20 }
 0xd3f   : > { %3750 = vrot.lane.b32.xlu1 %v8814_v32, %s9613_s0  ;;  %s6087_s0 = scalar_lea.sflag [#allocation3], %s473_s1 }
 0xd43   : > { %3797 = vrot.lane.b32.xlu0 %v8814_v32, %s9614_s22 }
 0xdac   : > { %v3614_v21 = vpop.xlane.xlu0 %3613 }
 0xdad   : > { %7792 = vrcp.f32 %v3614_v21 }
 0xdae   : > { %v3617_v27 = vpop.xlane.xlu1 %3616 }
 0xdaf   : > { %7794 = vrcp.f32 %v3617_v27 }
 0xdb2   : > { %v3620_v29 = vpop.xlane.xlu0 %3619  ;;  %v3623_v30 = vpop.xlane.xlu1 %3622 }
 0xdb3   : > { %7796 = vrcp.f32 %v3620_v29 }
 0xdb4   : > { %7798 = vrcp.f32 %v3623_v30 }
 0xdb6   : > { %v3626_v35 = vpop.xlane.xlu0 %3625 }
 0xdb7   : > { %v7793_v36 = vpop.eup %7792  ;;  %7800 = vrcp.f32 %v3626_v35  ;;  %v3629_v24 = vpop.xlane.xlu1 %3628 }
 0xdb8   : > { %7802 = vrcp.f32 %v3629_v24  ;;  %v3644_v31 = vmul.f32 %v7793_v36, %v7777_v13 }
 0xdb9   : > { %v7795_v25 = vpop.eup %7794 }
 0xdba   : > { %v3645_v33 = vmul.f32 %v7795_v25, %v7779_v59  ;;  %v3632_v34 = vpop.xlane.xlu0 %3631 }
 0xdbb   : > { %7804 = vrcp.f32 %v3632_v34  ;;  %v3635_v37 = vpop.xlane.xlu1 %3634 }
 0xdbc   : > { %7806 = vrcp.f32 %v3635_v37  ;;  %v3652_v32 = vpack.c.bf16 %v3645_v33, %v3644_v31 }
 0xdbd   : > { %v7797_v38 = vpop.eup %7796 }
 0xdbe   : > { %v7799_v39 = vpop.eup %7798  ;;  %v3646_v40 = vmul.f32 %v7797_v38, %v7783_v46  ;;  %7357 = vmatmul.mubr.msk.bf16.vlgmr.msra.gmra.mrb[60].mxu1 %vm778_vm3, %v3652_v32  ;;  %v3798_v47 = vpop.permute.xlu0 %3797 }
 0xdbf   : > { %v3647_v41 = vmul.f32 %v7799_v39, %v7781_v23  ;;  %v3751_v42 = vpop.permute.xlu1 %3750  ;;  %7368 = vmatprep.mubr.msk.bf16.mxu1 %vm7891_vm0, %v7890_v1  ;;  %v6385_v39 = vld [vmem:[%s9571_s5 + $0x1] ss:$0 sm:$0xff] }
 0xdc0   : > { %7367 = vmatpush3.bf16.msra.mxu1 %v3751_v42 }
 0xdc1   : > { %v7801_v0 = vpop.eup %7800  ;;  %v3653_v43 = vpack.c.bf16 %v3647_v41, %v3646_v40  ;;  %7378 = vmatprep.subr.bf16.mxu1 %v7890_v1 }
 0xdc2   : > { %v7803_v2 = vpop.eup %7802  ;;  %v3648_v44 = vmul.f32 %v7801_v0, %v7785_v5 }
 0xdc3   : > { %v3649_v45 = vmul.f32 %v7803_v2, %v7787_v9  ;;  %7363 = vmatmul.mubr.msk.bf16.vlgmr.msra.gmra.mrb[64].mxu0 %vm778_vm3, %v3653_v43 }
 0xdc4   : > { %7373 = vmatpush3.bf16.msra.mxu0 %v3798_v47  ;;  %7374 = vmatprep.mubr.msk.bf16.mxu0 %vm7891_vm0, %v7890_v1 }
 0xdc5   : > { %v7805_v49 = vpop.eup %7804  ;;  %v3654_v50 = vpack.c.bf16 %v3649_v45, %v3648_v44 }
 0xdc6   : > { %v7807_v51 = vpop.eup %7806  ;;  %v3650_v48 = vmul.f32 %v7805_v49, %v7789_v15 }
 0xdc7   : > { %v3651_v54 = vmul.f32 %v7807_v51, %v7791_v16  ;;  %7369 = vmatmul.mubr.msk.bf16.vlgmr.msra.gmra.mrb[64].mxu1 %vm778_vm3, %v3654_v50 }
 0xdc8   : > { %7382 = vmatprep.mubr.msk.bf16.mxu1 %vm7891_vm0, %v7890_v1  ;;  %7379 = vmatpush3.bf16.msra.mxu1 %v7606_v56 }
 0xdc9   : > { %v3655_v55 = vpack.c.bf16 %v3651_v54, %v3650_v48  ;;  %7380 = vmatprep.subr.bf16.mxu1 %v7890_v1 }
 0xdcb   : > { %7375 = vmatmul.mubr.msk.bf16.vlgmr.msra.gmra.mrb[68].mxu0 %vm778_vm3, %v3655_v55 }
 0xdcc   : > { %4306 = vmatprep.mubr.bf16.mxu0 %v7906_v28  ;;  %7381 = vmatpush3.bf16.msra.mxu1 %v7607_v53  ;;  %v6402_v53 = vld [vmem:[%s9574_s8 + $0x148] sm:$0xff] }
 0xe91   : > { %v3696_v13 = vpop.f32.mrb[60].mxu1 }
 0xe92   : > { %v7358_v57 = vpop.f32.mrb[61].mxu1 }
 0xe93   : > { %v3699_v58 = vpop.f32.mrb[62].mxu1 }
 0xe94   : > { %v7359_v59 = vpop.f32.mrb[63].mxu1 }
 0xe95   : > { %v6401_v59 = vld [vmem:[%s9574_s8 + $0x140] sm:$0xff] }
 0xe96   : > { %v3743_v60 = vpop.f32.mrb[64].mxu0 }
 0xe97   : > { %v7364_v52 = vpop.f32.mrb[65].mxu0 }
 0xe98   : > { %v3746_v61 = vpop.f32.mrb[66].mxu0 }
 0xe99   : > { %v7457_v63 = vpack.i.bf16 %v3746_v61, %v3743_v60  ;;  %v7365_v23 = vpop.f32.mrb[67].mxu0  ;;  %v6394_v60 = vld [vmem:[%s9574_s8 + $0x108] sm:$0xff] }
 0xe9a   : > { %v3790_v46 = vpop.f32.mrb[64].mxu1  ;;  %v6430_v23 = vcombine.high %v6394_v60, %v6402_v53 }
 0xe9b   : > { %v7370_v62 = vpop.f32.mrb[65].mxu1  ;;  %7458 = vrot.lane.b32.xlu1 %v7457_v63, %s9615_s26  ;;  %v6429_v63 = vcombine.low %v6394_v60, %v6402_v53  ;;  %v6414_v60 = vld [vmem:[%s9574_s8 + $0x1a8] sm:$0xff]  ;;  %s474_s26 = scalar_lea.vmem [#allocation2], %s473_s1 }
 0xe9c   : > { %v3793_v8 = vpop.f32.mrb[66].mxu1  ;;  %4317 = vmatprep.subr.bf16.mxu1 %v6430_v23  ;;  %v6417_v62 = vld [vmem:[%s9574_s8 + $0x1c0] sm:$0xff] }
 0xe9d   : > { %v7462_v5 = vpack.i.bf16 %v3793_v8, %v3790_v46  ;;  %v7371_v9 = vpop.f32.mrb[67].mxu1  ;;  %v6409_v46 = vld [vmem:[%s9574_s8 + $0x180] sm:$0xff]  ;;  %v6410_v8 = vld [vmem:[%s9574_s8 + $0x188] sm:$0xff] }
 0xe9e   : > { %v3837_v10 = vpop.f32.mrb[68].mxu0  ;;  %v6418_v9 = vld [vmem:[%s9574_s8 + $0x1c8] sm:$0xff] }
 0xe9f   : > { %7463 = vrot.lane.b32.xlu0 %v7462_v5, %s9616_s20  ;;  %v7376_v1 = vpop.f32.mrb[69].mxu0  ;;  %v6444_v5 = vcombine.high %v6409_v46, %v6417_v62  ;;  %s6099_s20 = sshll.u32 %s474_s26, 4  ;;  %s9526_s20 = int_to_ptr.vmem [resolvable:$true] %s6099_s20 }
 0xea0   : > { %v3840_v11 = vpop.f32.mrb[70].mxu0  ;;  %v6445_v1 = vcombine.low %v6410_v8, %v6418_v9  ;;  %s7826_s22 = scalar_lea.vmem %s9526_s20, 16  ;;  %p7833_p0 = scmp.lt.s32.totalorder %s9526_s20, %s7831_s21 }
 0xea1   : > { %v7467_v15 = vpack.i.bf16 %v3840_v11, %v3837_v10  ;;  %v7377_v16 = vpop.f32.mrb[71].mxu0  ;;  %v6443_v10 = vcombine.low %v6409_v46, %v6417_v62  ;;  %v6446_v11 = vcombine.high %v6410_v8, %v6418_v9  ;;  %v6399_v46 = vld [vmem:[%s9574_s8 + $0x130] sm:$0xff]  ;;  %v6400_v8 = vld [vmem:[%s9574_s8 + $0x138] sm:$0xff]  ;;  %p7827_p11 = scmp.ne.s32.totalorder %s9526_s20, %s7826_s22  ;;  %p7834_p1 = scmp.lt.s32.totalorder %s7832_s25, %s7826_s22 }
 0xea2   : > { %v6403_v16 = vld [vmem:[%s9574_s8 + $0x150] sm:$0xff] }
 0xea3   : > { %7468 = vrot.lane.b32.xlu1 %v7467_v15, %s9617_s18  ;;  %v6395_v15 = vld [vmem:[%s9574_s8 + $0x110] sm:$0xff]  ;;  %p7828_p12 = pnand %p7827_p11, %p8021_p5  ;;  %p7835_p2 = por %p7834_p1, %p7833_p0 }
 0xea4   : > { %v6407_v62 = vld [vmem:[%s9574_s8 + $0x170] sm:$0xff] }
 0xea5   : > { %p7829_p13 = pneg %p7828_p12 }
 0xea7   : > { %p7836_p3 = pnand %p7835_p2, %p7829_p13 }
 0xf0d   : > { %v7459_v19 = vpop.permute.xlu1 %7458 }
 0xf0e   : > { %v7461_v21 = vunpack.i.h.bf16 %v7459_v19  ;;  %v7460_v27 = vunpack.i.l.bf16 %v7459_v19  ;;  %v6396_v19 = vld [vmem:[%s9574_s8 + $0x118] sm:$0xff] }
 0xf10   : > { %v3869_v36 = vsel %vm561_vm2, %v3699_v58, %v7461_v21  ;;  %v3868_v24 = vsel %vm561_vm2, %v3696_v13, %v7460_v27  ;;  %v6404_v21 = vld [vmem:[%s9574_s8 + $0x158] sm:$0xff]  ;;  %v6431_v27 = vcombine.low %v6395_v15, %v6403_v16 }
 0xf11   : > { %v7464_v20 = vpop.permute.xlu0 %7463 }
 0xf12   : > { %v7466_v29 = vunpack.i.h.bf16 %v7464_v20  ;;  %v7465_v30 = vunpack.i.l.bf16 %v7464_v20  ;;  %v6432_v20 = vcombine.high %v6395_v15, %v6403_v16  ;;  %v6415_v15 = vld [vmem:[%s9574_s8 + $0x1b0] sm:$0xff] }
 0xf13   : > { %v6423_v16 = vld [vmem:[%s9574_s8 + $0x1f0] sm:$0xff] }
 0xf14   : > { %v3870_v33 = vsel %vm778_vm3, %v3868_v24, %v7465_v30  ;;  %v3871_v34 = vsel %vm778_vm3, %v3869_v36, %v7466_v29  ;;  %v6433_v29 = vcombine.low %v6396_v19, %v6404_v21  ;;  %v6434_v30 = vcombine.high %v6396_v19, %v6404_v21  ;;  %v6416_v19 = vld [vmem:[%s9574_s8 + $0x1b8] sm:$0xff] }
 0xf15   : > { %v7469_v35 = vpop.permute.xlu1 %7468  ;;  %v6439_v21 = vcombine.low %v6399_v46, %v6407_v62 }
 0xf16   : > { %v7471_v25 = vunpack.i.h.bf16 %v7469_v35  ;;  %v7470_v31 = vunpack.i.l.bf16 %v7469_v35 }
 0xf18   : > { %v3873_v37 = vsel %vm1087_vm4, %v3871_v34, %v7471_v25  ;;  %v3872_v32 = vsel %vm1087_vm4, %v3870_v33, %v7470_v31 }
 0xf19   : > { %v3874_v38 = vpack.c.bf16 %v3873_v37, %v3872_v32  ;;  %v6391_v32 = vld [vmem:[%s9572_s6 + $0x1] ss:$0 sm:$0xff] }
 0xf1b   : > { %7383 = vmatmul.mubr.msk.bf16.vlgmr.msra.gmra.mrb[68].mxu1 %vm512_vm1, %v3874_v38 }
 0xf1c   : > { %4349 = vmatprep.mubr.bf16.mxu1 %v7906_v28  ;;  %4318 = vmatpush1.bf16.msra.mxu1 %v6429_v63 }
 0xf1d   : > { %4319 = vmatprep.subr.bf16.mxu1 %v6446_v11 }
 0xf20   : > { %4320 = vmatpush1.bf16.msra.mxu1 %v6445_v1  ;;  %v6440_v1 = vcombine.high %v6399_v46, %v6407_v62 }
 0xf21   : > { %4403 = vmatprep.subr.bf16.mxu1 %v6434_v30 }
 0xfee   : > { %v3937_v40 = vpop.f32.mrb[68].mxu1 }
 0xfef   : > { %v3938_v41 = vadd.f32 %v6385_v39, %v3937_v40  ;;  %v7384_v42 = vpop.f32.mrb[69].mxu1 }
 0xff0   : > { %v3940_v0 = vpop.f32.mrb[70].mxu1 }
 0xff1   : > { %v3941_v43 = vadd.f32 %v6385_v39, %v3940_v0  ;;  %v7385_v2 = vpop.f32.mrb[71].mxu1  ;;  %v3944_v44 = vadd.f32 %v3938_v41, %v8802_v22  ;;  %v6392_v41 = vld [vmem:[%s9573_s7 + $0x1] ss:$0 sm:$0xff]  ;;  %v6411_v0 = vld [vmem:[%s9574_s8 + $0x190] sm:$0xff] }
 0xff2   : > { %v6412_v2 = vld [vmem:[%s9574_s8 + $0x198] sm:$0xff] }
 0xff3   : > { %v3950_v45 = vsel %vm512_vm1, %v3944_v44, 0.0  ;;  %v3945_v47 = vadd.f32 %v3941_v43, %v8804_v26  ;;  %v6393_v26 = vld [vmem:[%s9574_s8 + $0x100] sm:$0xff]  ;;  %v6419_v43 = vld [vmem:[%s9574_s8 + $0x1d0] sm:$0xff] }
 0xff4   : > { %3951 = vadd.xlane.f32.xlu0 %v3950_v45  ;;  %v6428_v52 = vcombine.high %v6393_v26, %v6401_v59  ;;  %v6427_v61 = vcombine.low %v6393_v26, %v6401_v59  ;;  %v6413_v26 = vld [vmem:[%s9574_s8 + $0x1a0] sm:$0xff] }
 0xff5   : > { %v3953_v49 = vsel %vm512_vm1, %v3945_v47, 0.0  ;;  %v6421_v59 = vld [vmem:[%s9574_s8 + $0x1e0] sm:$0xff] }
 0xff6   : > { %3954 = vadd.xlane.f32.xlu1 %v3953_v49  ;;  %4274 = vmatprep.subr.bf16.mxu0 %v6428_v52  ;;  %v6422_v52 = vld [vmem:[%s9574_s8 + $0x1e8] sm:$0xff]  ;;  %v6452_v63 = vcombine.high %v6413_v26, %v6421_v59  ;;  %v6451_v9 = vcombine.low %v6413_v26, %v6421_v59  ;;  %v7636_v26 = vld [vmem:[%s9576_s10 + $0x478] sm:$0xff]  }
 0xff7   : > { %4275 = vmatpush1.bf16.msra.mxu0 %v6427_v61  ;;  %v6454_v23 = vcombine.high %v6414_v60, %v6422_v52  ;;  %v7637_v59 = vld [vmem:[%s9576_s10 + $0x4f8] sm:$0xff]  }
 0xff8   : > { %4276 = vmatprep.subr.bf16.mxu0 %v6444_v5  ;;  %v6408_v5 = vld [vmem:[%s9574_s8 + $0x178] sm:$0xff] }
 0xff9   : > { %v6442_v11 = vcombine.high %v6400_v8, %v6408_v5 }
 0xffb   : > { %4277 = vmatpush1.bf16.msra.mxu0 %v6443_v10  ;;  %v6453_v10 = vcombine.low %v6414_v60, %v6422_v52  ;;  %v7638_v60 = vld [vmem:[%s9576_s10 + $0x438] sm:$0xff]  }
 0xffc   : > { %4360 = vmatprep.subr.bf16.mxu0 %v6432_v20  ;;  %v6424_v20 = vld [vmem:[%s9574_s8 + $0x1f8] sm:$0xff] }
 0xffd   : > { %v6458_v30 = vcombine.high %v6416_v19, %v6424_v20  ;;  %v7639_v52 = vld [vmem:[%s9576_s10 + $0x4b8] sm:$0xff]  }
0x1081   : > { %v3952_v50 = vpop.xlane.xlu0 %3951 }
0x1082   : > { %v3956_v51 = vmul.f32 0.03125, %v3952_v50  ;;  %v6448_v50 = vcombine.high %v6411_v0, %v6419_v43 }
0x1083   : > { %v3955_v48 = vpop.xlane.xlu1 %3954 }
0x1084   : > { %v3958_v54 = vsub.f32 %v3944_v44, %v3956_v51  ;;  %v3957_v55 = vmul.f32 0.03125, %v3955_v48  ;;  %v6420_v44 = vld [vmem:[%s9574_s8 + $0x1d8] sm:$0xff]  ;;  %v6397_v48 = vld [vmem:[%s9574_s8 + $0x120] sm:$0xff] }
0x1085   : > { %v6450_v51 = vcombine.high %v6412_v2, %v6420_v44 }
0x1086   : > { %v3959_v13 = vsub.f32 %v3945_v47, %v3957_v55  ;;  %v3960_v57 = vmul.f32 %v3958_v54, %v3958_v54  ;;  %v6398_v55 = vld [vmem:[%s9574_s8 + $0x128] sm:$0xff] }
0x1088   : > { %v3962_v58 = vsel %vm512_vm1, %v3960_v57, 0.0  ;;  %v3961_v56 = vmul.f32 %v3959_v13, %v3959_v13  ;;  %v6447_v57 = vcombine.low %v6411_v0, %v6419_v43  ;;  %v7621_v0 = vld [vmem:[%s9576_s10 + $0x4d8] sm:$0xff]  }
0x1089   : > { %3963 = vadd.xlane.f32.xlu0 %v3962_v58  ;;  %v6449_v58 = vcombine.low %v6412_v2, %v6420_v44  ;;  %v7622_v43 = vld [vmem:[%s9576_s10 + $0x418] sm:$0xff]   ;;  %v7624_v44 = vld [vmem:[%s9576_s10 + $0x460] sm:$0xff]  }
0x108a   : > { %v3965_v22 = vsel %vm512_vm1, %v3961_v56, 0.0  ;;  %v7623_v2 = vld [vmem:[%s9576_s10 + $0x498] sm:$0xff]  }
0x108d   : > { %3966 = vadd.xlane.f32.xlu0 %v3965_v22 }
0x1116   : > { %v3964_v35 = vpop.xlane.xlu0 %3963 }
0x1117   : > { %v3968_v36 = vmul.f32 0.03125, %v3964_v35  ;;  %v6455_v35 = vcombine.low %v6415_v15, %v6423_v16 }
0x1119   : > { %v3970_v24 = vadd.f32 1e-05, %v3968_v36  ;;  %v6457_v36 = vcombine.low %v6416_v19, %v6424_v20 }
0x111a   : > { %v3967_v25 = vpop.xlane.xlu0 %3966 }
0x111b   : > { %7808 = vrsqrt.f32 %v3970_v24  ;;  %v3969_v31 = vmul.f32 0.03125, %v3967_v25  ;;  %v7608_v24 = vld [vmem:[%s9576_s10 + $0x440] sm:$0xff]  }
0x111c   : > { %v7609_v25 = vld [vmem:[%s9576_s10 + $0x4c0] sm:$0xff]  }
0x111d   : > { %v3971_v33 = vadd.f32 1e-05, %v3969_v31  ;;  %v7610_v31 = vld [vmem:[%s9576_s10 + $0x400] sm:$0xff]  }
0x111f   : > { %7810 = vrsqrt.f32 %v3971_v33  ;;  %v7611_v33 = vld [vmem:[%s9576_s10 + $0x480] sm:$0xff]  }
0x1125   : > { %v7809_v34 = vpop.eup %7808 }
0x1126   : > { %v3974_v37 = vmul.f32 %v7809_v34, %v3958_v54  ;;  %v6405_v54 = vld [vmem:[%s9574_s8 + $0x160] sm:$0xff]  ;;  %v7612_v34 = vld [vmem:[%s9576_s10 + $0x448] sm:$0xff]  }
0x1127   : > { %v6436_v56 = vcombine.high %v6397_v48, %v6405_v54  ;;  %v6435_v53 = vcombine.low %v6397_v48, %v6405_v54  ;;  %v7628_v48 = vld [vmem:[%s9576_s10 + $0x468] sm:$0xff]  }
0x1128   : > { %v3982_v39 = vmul.f32 %v6391_v32, %v3974_v37  ;;  %v7614_v37 = vld [vmem:[%s9576_s10 + $0x408] sm:$0xff]  }
0x1129   : > { %v7811_v38 = vpop.eup %7810  ;;  %v7629_v54 = vld [vmem:[%s9576_s10 + $0x4e8] sm:$0xff]  }
0x112a   : > { %v3975_v40 = vmul.f32 %v7811_v38, %v3959_v13  ;;  %v8978_v45 = vadd.f32 %v6392_v41, %v3982_v39  ;;  %v6406_v13 = vld [vmem:[%s9574_s8 + $0x168] sm:$0xff]  ;;  %v7616_v38 = vld [vmem:[%s9576_s10 + $0x450] sm:$0xff]  }
0x112b   : > { %v6438_v22 = vcombine.high %v6398_v55, %v6406_v13  ;;  %v6437_v61 = vcombine.low %v6398_v55, %v6406_v13  ;;  %v7617_v39 = vld [vmem:[%s9576_s10 + $0x4d0] sm:$0xff]   ;;  %v7630_v55 = vld [vmem:[%s9576_s10 + $0x428] sm:$0xff]  }
0x112c   : > { %v3983_v42 = vmul.f32 %v6391_v32, %v3975_v40  ;;  %v7615_v32 = vld [vmem:[%s9576_s10 + $0x488] sm:$0xff]   ;;  %v7618_v40 = vld [vmem:[%s9576_s10 + $0x410] sm:$0xff]  }
0x112d   : > { %v7631_v13 = vld [vmem:[%s9576_s10 + $0x4a8] sm:$0xff]  }
0x112e   : > { %v8980_v47 = vadd.f32 %v6392_v41, %v3983_v42  ;;  %v7619_v41 = vld [vmem:[%s9576_s10 + $0x490] sm:$0xff]   ;;  %v7620_v42 = vld [vmem:[%s9576_s10 + $0x458] sm:$0xff]  }
0x1130   : > { %v8984_v49 = vpack.c.bf16 %v8980_v47, %v8978_v45 }
0x1132   : > { %6459 = vmatmul.mubr.msk.bf16.vlgmr.msra.gmra.mrb[72].mxu0 %vm512_vm1, %v8984_v49  ;;  %6460 = vmatmul.mubr.msk.bf16.vlgmr.msra.gmra.mrb[72].mxu1 %vm512_vm1, %v8984_v49 }
0x1133   : > { %4361 = vmatpush1.bf16.msra.mxu0 %v6431_v27  ;;  %4404 = vmatpush1.bf16.msra.mxu1 %v6433_v29  ;;  %v6441_v27 = vcombine.low %v6400_v8, %v6408_v5  ;;  %v6456_v29 = vcombine.high %v6415_v15, %v6423_v16 }
0x1134   : > { %4362 = vmatprep.subr.bf16.mxu0 %v6448_v50  ;;  %4405 = vmatprep.subr.bf16.mxu1 %v6450_v51  ;;  %v7626_v50 = vld [vmem:[%s9576_s10 + $0x420] sm:$0xff]  }
0x1135   : > { %4392 = vmatprep.mubr.bf16.mxu0 %v7906_v28  ;;  %4435 = vmatprep.mubr.bf16.mxu1 %v7906_v28  ;;  %v7627_v51 = vld [vmem:[%s9576_s10 + $0x4a0] sm:$0xff]  }
0x1137   : > { %4363 = vmatpush1.bf16.msra.mxu0 %v6447_v57  ;;  %4406 = vmatpush1.bf16.msra.mxu1 %v6449_v58  ;;  %v7632_v57 = vld [vmem:[%s9576_s10 + $0x470] sm:$0xff]  }
0x1138   : > { %4446 = vmatprep.subr.bf16.mxu0 %v6436_v56  ;;  %4489 = vmatprep.subr.bf16.mxu1 %v6438_v22  ;;  %v7633_v58 = vld [vmem:[%s9576_s10 + $0x4f0] sm:$0xff]  }
0x1139   : > { %v7634_v56 = vld [vmem:[%s9576_s10 + $0x430] sm:$0xff]  }
0x113a   : > { %6461 = vmatmul.mubr.msk.bf16.vlgmr.msra.gmra.mrb[76].mxu0 %vm512_vm1, %v8984_v49  ;;  %6462 = vmatmul.mubr.msk.bf16.vlgmr.msra.gmra.mrb[76].mxu1 %vm512_vm1, %v8984_v49  ;;  %v7635_v22 = vld [vmem:[%s9576_s10 + $0x4b0] sm:$0xff]  }
0x113b   : > { %4447 = vmatpush1.bf16.msra.mxu0 %v6435_v53  ;;  %4490 = vmatpush1.bf16.msra.mxu1 %v6437_v61  ;;  %v7640_v53 = vld [vmem:[%s9576_s10 + $0x540] sm:$0xff]  }
0x113c   : > { %4448 = vmatprep.subr.bf16.mxu0 %v6452_v63  ;;  %4491 = vmatprep.subr.bf16.mxu1 %v6454_v23  ;;  %v7641_v61 = vld [vmem:[%s9576_s10 + $0x5c0] sm:$0xff]   ;;  %v6425_v63 = vld [vmem:[%s9575_s9 + $0x10] sm:$0xff] }
0x113d   : > { %4478 = vmatprep.mubr.bf16.mxu0 %v7906_v28  ;;  %4521 = vmatprep.mubr.bf16.mxu1 %v7906_v28  ;;  %v4034_v23 = vrot.slane %v6425_v63, %v8413_v3  ;;  %v4042_v46 = vrot.slane %v6425_v63, %v8415_v4  ;;  %v4038_v62 = vrot.slane %v6425_v63, %v8420_v6 }
0x113e   : > { %v4046_v8 = vrot.slane %v6425_v63, %v8422_v7 }
0x113f   : > { %4449 = vmatpush1.bf16.msra.mxu0 %v6451_v9  ;;  %4492 = vmatpush1.bf16.msra.mxu1 %v6453_v10 }
0x1140   : > { %4532 = vmatprep.subr.bf16.mxu0 %v6440_v1  ;;  %4575 = vmatprep.subr.bf16.mxu1 %v6442_v11 }
0x1142   : > { %6463 = vmatmul.mubr.msk.bf16.vlgmr.msra.gmra.mrb[80].mxu0 %vm512_vm1, %v8984_v49  ;;  %6464 = vmatmul.mubr.msk.bf16.vlgmr.msra.gmra.mrb[80].mxu1 %vm512_vm1, %v8984_v49 }
0x1143   : > { %4533 = vmatpush1.bf16.msra.mxu0 %v6439_v21  ;;  %4576 = vmatpush1.bf16.msra.mxu1 %v6441_v27 }
0x1144   : > { %4534 = vmatprep.subr.bf16.mxu0 %v6456_v29  ;;  %4577 = vmatprep.subr.bf16.mxu1 %v6458_v30 }
0x1145   : > { %4564 = vmatprep.mubr.bf16.mxu0 %v7906_v28  ;;  %4607 = vmatprep.mubr.bf16.mxu1 %v7906_v28  ;;  %v7613_v28 = vld [vmem:[%s9576_s10 + $0x4c8] sm:$0xff]  }
0x1147   : > { %4535 = vmatpush1.bf16.msra.mxu0 %v6455_v35  ;;  %4578 = vmatpush1.bf16.msra.mxu1 %v6457_v36  ;;  %v4050_v36 = vrot.slane %v6425_v63, %v8428_v12 }
0x1148   : > { %7082 = vmatprep.subr.bf16.mxu0 %v7608_v24  ;;  %7104 = vmatprep.subr.bf16.mxu1 %v7609_v25  ;;  %v4058_v24 = vrot.slane %v6425_v63, %v8430_v14 }
0x114a   : > { %6465 = vmatmul.mubr.msk.bf16.vlgmr.msra.gmra.mrb[84].mxu0 %vm512_vm1, %v8984_v49  ;;  %6466 = vmatmul.mubr.msk.bf16.vlgmr.msra.gmra.mrb[84].mxu1 %vm512_vm1, %v8984_v49  ;;  %v7625_v49 = vld [vmem:[%s9576_s10 + $0x4e0] sm:$0xff]  }
0x114b   : > { %7083 = vmatpush3.bf16.msra.mxu0 %v7610_v31  ;;  %7105 = vmatpush3.bf16.msra.mxu1 %v7611_v33  ;;  %v4054_v33 = vrot.slane %v6425_v63, %v8432_v17 }
0x114c   : > { %7084 = vmatprep.subr.bf16.mxu0 %v7612_v34  ;;  %7106 = vmatprep.subr.bf16.mxu1 %v7613_v28  ;;  %v4062_v34 = vrot.slane %v6425_v63, %v8434_v18 }
0x114f   : > { %7085 = vmatpush3.bf16.msra.mxu0 %v7614_v37  ;;  %7107 = vmatpush3.bf16.msra.mxu1 %v7615_v32 }
0x1150   : > { %7086 = vmatprep.subr.bf16.mxu0 %v7616_v38  ;;  %7108 = vmatprep.subr.bf16.mxu1 %v7617_v39 }
0x1153   : > { %7087 = vmatpush3.bf16.msra.mxu0 %v7618_v40  ;;  %7109 = vmatpush3.bf16.msra.mxu1 %v7619_v41 }
0x1154   : > { %7088 = vmatprep.subr.bf16.mxu0 %v7620_v42  ;;  %7110 = vmatprep.subr.bf16.mxu1 %v7621_v0  ;;  %v9172_v0 = vld [vmem:[%s9575_s9 + $0x18] sm:$0xff] }
0x1157   : > { %7089 = vmatpush3.bf16.msra.mxu0 %v7622_v43  ;;  %7111 = vmatpush3.bf16.msra.mxu1 %v7623_v2 }
0x1158   : > { %7090 = vmatprep.subr.bf16.mxu0 %v7624_v44  ;;  %7112 = vmatprep.subr.bf16.mxu1 %v7625_v49 }
0x115b   : > { %7091 = vmatpush3.bf16.msra.mxu0 %v7626_v50  ;;  %7113 = vmatpush3.bf16.msra.mxu1 %v7627_v51 }
0x115c   : > { %7092 = vmatprep.subr.bf16.mxu0 %v7628_v48  ;;  %7114 = vmatprep.subr.bf16.mxu1 %v7629_v54  ;;  %v7642_v48 = vld [vmem:[%s9576_s10 + $0x500] sm:$0xff]  }
0x115d   : > { %v7643_v54 = vld [vmem:[%s9576_s10 + $0x580] sm:$0xff]  }
0x115f   : > { %7093 = vmatpush3.bf16.msra.mxu0 %v7630_v55  ;;  %7115 = vmatpush3.bf16.msra.mxu1 %v7631_v13 }
0x1160   : > { %7094 = vmatprep.subr.bf16.mxu0 %v7632_v57  ;;  %7116 = vmatprep.subr.bf16.mxu1 %v7633_v58 }
0x1163   : > { %7095 = vmatpush3.bf16.msra.mxu0 %v7634_v56  ;;  %7117 = vmatpush3.bf16.msra.mxu1 %v7635_v22  ;;  %v7644_v56 = vld [vmem:[%s9576_s10 + $0x548] sm:$0xff]  }
0x1164   : > { %7096 = vmatprep.subr.bf16.mxu0 %v7636_v26  ;;  %7118 = vmatprep.subr.bf16.mxu1 %v7637_v59  ;;  %v7645_v22 = vld [vmem:[%s9576_s10 + $0x5c8] sm:$0xff]   ;;  %v4066_v26 = vrot.slane %v9172_v0, %v8413_v3 }
0x1167   : > { %7097 = vmatpush3.bf16.msra.mxu0 %v7638_v60  ;;  %7119 = vmatpush3.bf16.msra.mxu1 %v7639_v52 }
0x1168   : > { %7126 = vmatprep.subr.bf16.mxu0 %v7640_v53  ;;  %7148 = vmatprep.subr.bf16.mxu1 %v7641_v61  ;;  %v4074_v61 = vrot.slane %v9172_v0, %v8415_v4  ;;  %v7647_v4 = vld [vmem:[%s9576_s10 + $0x588] sm:$0xff]  }
0x1205   : > { %v4308_v5 = vpop.f32.mrb[72].mxu0  ;;  %v4351_v9 = vpop.f32.mrb[72].mxu1 }
0x1206   : > { %v4309_v10 = vadd.f32 %v4308_v5, %v4034_v23  ;;  %v4352_v1 = vadd.f32 %v4351_v9, %v4042_v46  ;;  %v4310_v11 = vpop.f32.mrb[73].mxu0  ;;  %v4353_v15 = vpop.f32.mrb[73].mxu1  ;;  %v7646_v9 = vld [vmem:[%s9576_s10 + $0x508] sm:$0xff]  }
0x1207   : > { %v4311_v16 = vadd.f32 %v4310_v11, %v4038_v62  ;;  %v4354_v19 = vadd.f32 %v4353_v15, %v4046_v8  ;;  %v4312_v20 = vpop.f32.mrb[74].mxu0  ;;  %v4355_v21 = vpop.f32.mrb[74].mxu1 }
0x1208   : > { %v4313_v27 = vadd.f32 %v4312_v20, %v4034_v23  ;;  %v4356_v29 = vadd.f32 %v4355_v21, %v4042_v46  ;;  %v4314_v30 = vpop.f32.mrb[75].mxu0  ;;  %v4357_v35 = vpop.f32.mrb[75].mxu1  ;;  %v4618_v28 = vmax.f32 %v4309_v10, 0.0  ;;  %v4620_v37 = vmax.f32 %v4352_v1, 0.0 }
0x1209   : > { %v4315_v25 = vadd.f32 %v4314_v30, %v4038_v62  ;;  %v4358_v31 = vadd.f32 %v4357_v35, %v4046_v8  ;;  %v4619_v39 = vmax.f32 %v4311_v16, 0.0  ;;  %v4621_v40 = vmax.f32 %v4354_v19, 0.0  ;;  %v7649_v19 = vld [vmem:[%s9576_s10 + $0x5d0] sm:$0xff]  }
0x120a   : > { %v4634_v32 = vmax.f32 %v4313_v27, 0.0  ;;  %v4636_v38 = vmax.f32 %v4356_v29, 0.0  ;;  %v4070_v8 = vrot.slane %v9172_v0, %v8420_v6  ;;  %v4078_v10 = vrot.slane %v9172_v0, %v8422_v7  ;;  %v7648_v6 = vld [vmem:[%s9576_s10 + $0x550] sm:$0xff]  }
0x120b   : > { %v4635_v41 = vmax.f32 %v4315_v25, 0.0  ;;  %v4637_v42 = vmax.f32 %v4358_v31, 0.0  ;;  %v7650_v31 = vld [vmem:[%s9576_s10 + $0x510] sm:$0xff]  }
0x120c   : > { %v4650_v43 = vpack.c.bf16 %v4634_v32, %v4618_v28  ;;  %v4652_v2 = vpack.c.bf16 %v4636_v38, %v4620_v37  ;;  %v7652_v38 = vld [vmem:[%s9576_s10 + $0x558] sm:$0xff]  }
0x120d   : > { %v4651_v44 = vpack.c.bf16 %v4635_v41, %v4619_v39  ;;  %v4653_v49 = vpack.c.bf16 %v4637_v42, %v4621_v40  ;;  %v4394_v50 = vpop.f32.mrb[76].mxu0  ;;  %v4437_v51 = vpop.f32.mrb[76].mxu1  ;;  %v7653_v39 = vld [vmem:[%s9576_s10 + $0x5d8] sm:$0xff]  }
0x120e   : > { %v4395_v55 = vadd.f32 %v4394_v50, %v4050_v36  ;;  %v4438_v13 = vadd.f32 %v4437_v51, %v4058_v24  ;;  %v4396_v57 = vpop.f32.mrb[77].mxu0  ;;  %v4439_v58 = vpop.f32.mrb[77].mxu1 }
0x120f   : > { %v4397_v59 = vadd.f32 %v4396_v57, %v4054_v33  ;;  %v4440_v60 = vadd.f32 %v4439_v58, %v4062_v34  ;;  %v4398_v52 = vpop.f32.mrb[78].mxu0  ;;  %v4441_v53 = vpop.f32.mrb[78].mxu1  ;;  %5731 = vmatprep.mubr.bf16.mxu0 %v4651_v44  ;;  %5772 = vmatprep.mubr.bf16.mxu1 %v4653_v49  ;;  %v7654_v57 = vld [vmem:[%s9576_s10 + $0x518] sm:$0xff]   ;;  %v4094_v58 = vrot.slane %v9172_v0, %v8434_v18 }
0x1210   : > { %v4399_v63 = vadd.f32 %v4398_v52, %v4050_v36  ;;  %v4442_v23 = vadd.f32 %v4441_v53, %v4058_v24  ;;  %v4400_v46 = vpop.f32.mrb[79].mxu0  ;;  %v4443_v62 = vpop.f32.mrb[79].mxu1  ;;  %5732 = vmatmul.mubr.bf16.vlgmr.msra.gmra.mrb[88].mxu0 %v4650_v43  ;;  %5773 = vmatmul.mubr.bf16.vlgmr.msra.gmra.mrb[88].mxu1 %v4652_v2  ;;  %v4622_v1 = vmax.f32 %v4395_v55, 0.0  ;;  %v4624_v11 = vmax.f32 %v4438_v13, 0.0 }
0x1211   : > { %v4401_v5 = vadd.f32 %v4400_v46, %v4054_v33  ;;  %v4444_v3 = vadd.f32 %v4443_v62, %v4062_v34  ;;  %7127 = vmatpush3.bf16.msra.mxu0 %v7642_v48  ;;  %7149 = vmatpush3.bf16.msra.mxu1 %v7643_v54  ;;  %v4623_v20 = vmax.f32 %v4397_v59, 0.0  ;;  %v4625_v21 = vmax.f32 %v4440_v60, 0.0  ;;  %v7651_v33 = vld [vmem:[%s9576_s10 + $0x590] sm:$0xff]   ;;  %v7657_v59 = vld [vmem:[%s9576_s10 + $0x5e0] sm:$0xff]  }
0x1212   : > { %v4638_v15 = vmax.f32 %v4399_v63, 0.0  ;;  %v4640_v16 = vmax.f32 %v4442_v23, 0.0  ;;  %7128 = vmatprep.subr.bf16.mxu0 %v7644_v56  ;;  %7150 = vmatprep.subr.bf16.mxu1 %v7645_v22  ;;  %v4082_v2 = vrot.slane %v9172_v0, %v8428_v12  ;;  %v4090_v48 = vrot.slane %v9172_v0, %v8430_v14  ;;  %v7655_v12 = vld [vmem:[%s9576_s10 + $0x598] sm:$0xff]  }
0x1213   : > { %v4639_v27 = vmax.f32 %v4401_v5, 0.0  ;;  %v4641_v29 = vmax.f32 %v4444_v3, 0.0  ;;  %v4086_v54 = vrot.slane %v9172_v0, %v8432_v17  ;;  %v7656_v17 = vld [vmem:[%s9576_s10 + $0x560] sm:$0xff]  }
0x1214   : > { %v9206_v30 = vpack.c.bf16 %v4638_v15, %v4622_v1  ;;  %v9208_v7 = vpack.c.bf16 %v4640_v16, %v4624_v11  ;;  %v7659_v5 = vld [vmem:[%s9576_s10 + $0x5a0] sm:$0xff]   ;;  %v7660_v1 = vld [vmem:[%s9576_s10 + $0x568] sm:$0xff]  }
0x1215   : > { %v4655_v35 = vpack.c.bf16 %v4639_v27, %v4623_v20  ;;  %v4657_v36 = vpack.c.bf16 %v4641_v29, %v4625_v21  ;;  %7129 = vmatpush3.bf16.msra.mxu0 %v7646_v9  ;;  %7151 = vmatpush3.bf16.msra.mxu1 %v7647_v4  ;;  %v4480_v24 = vpop.f32.mrb[80].mxu0  ;;  %v4523_v25 = vpop.f32.mrb[80].mxu1  ;;  %v7661_v11 = vld [vmem:[%s9576_s10 + $0x5e8] sm:$0xff]  }
0x1216   : > { %v4481_v34 = vadd.f32 %v4480_v24, %v4066_v26  ;;  %v4524_v28 = vadd.f32 %v4523_v25, %v4074_v61  ;;  %v4482_v37 = vpop.f32.mrb[81].mxu0  ;;  %v4525_v32 = vpop.f32.mrb[81].mxu1  ;;  %7130 = vmatprep.subr.bf16.mxu0 %v7648_v6  ;;  %7152 = vmatprep.subr.bf16.mxu1 %v7649_v19  ;;  %v7662_v24 = vld [vmem:[%s9576_s10 + $0x528] sm:$0xff]  }
0x1217   : > { %v4483_v40 = vadd.f32 %v4482_v37, %v4070_v8  ;;  %v4526_v41 = vadd.f32 %v4525_v32, %v4078_v10  ;;  %v4484_v42 = vpop.f32.mrb[82].mxu0  ;;  %v4527_v43 = vpop.f32.mrb[82].mxu1  ;;  %5813 = vmatprep.mubr.bf16.mxu0 %v4655_v35  ;;  %5854 = vmatprep.mubr.bf16.mxu1 %v4657_v36  ;;  %v7663_v25 = vld [vmem:[%s9576_s10 + $0x5a8] sm:$0xff]   ;;  %v7664_v37 = vld [vmem:[%s9576_s10 + $0x570] sm:$0xff]  }
0x1218   : > { %v4485_v44 = vadd.f32 %v4484_v42, %v4066_v26  ;;  %v4528_v49 = vadd.f32 %v4527_v43, %v4074_v61  ;;  %v4486_v50 = vpop.f32.mrb[83].mxu0  ;;  %v4529_v51 = vpop.f32.mrb[83].mxu1  ;;  %v4626_v56 = vmax.f32 %v4481_v34, 0.0  ;;  %v4628_v14 = vmax.f32 %v4524_v28, 0.0  ;;  %v7665_v32 = vld [vmem:[%s9576_s10 + $0x5f0] sm:$0xff]  }
0x1219   : > { %v4487_v55 = vadd.f32 %v4486_v50, %v4070_v8  ;;  %v4530_v13 = vadd.f32 %v4529_v51, %v4078_v10  ;;  %7131 = vmatpush3.bf16.msra.mxu0 %v7650_v31  ;;  %7153 = vmatpush3.bf16.msra.mxu1 %v7651_v33  ;;  %v4627_v60 = vmax.f32 %v4483_v40, 0.0  ;;  %v4629_v52 = vmax.f32 %v4526_v41, 0.0  ;;  %v7658_v8 = vld [vmem:[%s9576_s10 + $0x520] sm:$0xff]   ;;  %v7667_v50 = vld [vmem:[%s9576_s10 + $0x5b0] sm:$0xff]   ;;  %v7668_v51 = vld [vmem:[%s9576_s10 + $0x578] sm:$0xff]  }
0x121a   : > { %v4642_v22 = vmax.f32 %v4485_v44, 0.0  ;;  %v4644_v26 = vmax.f32 %v4528_v49, 0.0  ;;  %7132 = vmatprep.subr.bf16.mxu0 %v7652_v38  ;;  %7154 = vmatprep.subr.bf16.mxu1 %v7653_v39  ;;  %v7666_v49 = vld [vmem:[%s9576_s10 + $0x530] sm:$0xff]  }
0x121b   : > { %v4643_v53 = vmax.f32 %v4487_v55, 0.0  ;;  %v4645_v61 = vmax.f32 %v4530_v13, 0.0  ;;  %v7671_v55 = vld [vmem:[%s9576_s10 + $0x5b8] sm:$0xff]   ;;  %v7672_v13 = vld [vmem:[%s9576_s10 + $0x640] sm:$0xff]  }
0x121c   : > { %v9242_v63 = vpack.c.bf16 %v4642_v22, %v4626_v56  ;;  %v9244_v18 = vpack.c.bf16 %v4644_v26, %v4628_v14  ;;  %v7676_v56 = vld [vmem:[%s9576_s10 + $0x648] sm:$0xff]  }
0x121d   : > { %v9246_v0 = vpack.c.bf16 %v4643_v53, %v4627_v60  ;;  %v9248_v23 = vpack.c.bf16 %v4645_v61, %v4629_v52  ;;  %7133 = vmatpush3.bf16.msra.mxu0 %v7654_v57  ;;  %7155 = vmatpush3.bf16.msra.mxu1 %v7655_v12  ;;  %v4566_v46 = vpop.f32.mrb[84].mxu0  ;;  %v4609_v62 = vpop.f32.mrb[84].mxu1  ;;  %v7673_v57 = vld [vmem:[%s9576_s10 + $0x6c0] sm:$0xff]   ;;  %v7677_v14 = vld [vmem:[%s9576_s10 + $0x6c8] sm:$0xff]   ;;  %v7684_v60 = vld [vmem:[%s9576_s10 + $0x658] sm:$0xff]  }
0x121e   : > { %v4567_v3 = vadd.f32 %v4566_v46, %v4082_v2  ;;  %v4610_v9 = vadd.f32 %v4609_v62, %v4090_v48  ;;  %v4568_v4 = vpop.f32.mrb[85].mxu0  ;;  %v4611_v10 = vpop.f32.mrb[85].mxu1  ;;  %7134 = vmatprep.subr.bf16.mxu0 %v7656_v17  ;;  %7156 = vmatprep.subr.bf16.mxu1 %v7657_v59  ;;  %v7674_v12 = vld [vmem:[%s9576_s10 + $0x600] sm:$0xff]   ;;  %v7678_v22 = vld [vmem:[%s9576_s10 + $0x608] sm:$0xff]   ;;  %v7682_v17 = vld [vmem:[%s9576_s10 + $0x610] sm:$0xff]  }
0x121f   : > { %v4569_v15 = vadd.f32 %v4568_v4, %v4086_v54  ;;  %v4612_v16 = vadd.f32 %v4611_v10, %v4094_v58  ;;  %v4570_v6 = vpop.f32.mrb[86].mxu0  ;;  %v4613_v19 = vpop.f32.mrb[86].mxu1  ;;  %v7679_v26 = vld [vmem:[%s9576_s10 + $0x688] sm:$0xff]   ;;  %v7683_v59 = vld [vmem:[%s9576_s10 + $0x690] sm:$0xff]   ;;  %v7685_v52 = vld [vmem:[%s9576_s10 + $0x6d8] sm:$0xff]  }
0x1220   : > { %v4571_v20 = vadd.f32 %v4570_v6, %v4082_v2  ;;  %v4614_v21 = vadd.f32 %v4613_v19, %v4090_v48  ;;  %v4572_v27 = vpop.f32.mrb[87].mxu0  ;;  %v4615_v29 = vpop.f32.mrb[87].mxu1  ;;  %v4630_v31 = vmax.f32 %v4567_v3, 0.0  ;;  %v4632_v33 = vmax.f32 %v4610_v9, 0.0  ;;  %v7669_v48 = vld [vmem:[%s9576_s10 + $0x5f8] sm:$0xff]   ;;  %v7690_v46 = vld [vmem:[%s9576_s10 + $0x620] sm:$0xff]  }
0x1221   : > { %v4573_v35 = vadd.f32 %v4572_v27, %v4086_v54  ;;  %v4616_v36 = vadd.f32 %v4615_v29, %v4094_v58  ;;  %7135 = vmatpush3.bf16.msra.mxu0 %v7658_v8  ;;  %7157 = vmatpush3.bf16.msra.mxu1 %v7659_v5  ;;  %v4631_v38 = vmax.f32 %v4569_v15, 0.0  ;;  %v4633_v39 = vmax.f32 %v4612_v16, 0.0  ;;  %v7670_v54 = vld [vmem:[%s9576_s10 + $0x538] sm:$0xff]   ;;  %v7675_v58 = vld [vmem:[%s9576_s10 + $0x680] sm:$0xff]   ;;  %v7692_v8 = vld [vmem:[%s9576_s10 + $0x668] sm:$0xff]  }
0x1222   : > { %v4646_v34 = vmax.f32 %v4571_v20, 0.0  ;;  %v4648_v28 = vmax.f32 %v4614_v21, 0.0  ;;  %7136 = vmatprep.subr.bf16.mxu0 %v7660_v1  ;;  %7158 = vmatprep.subr.bf16.mxu1 %v7661_v11  ;;  %v7686_v53 = vld [vmem:[%s9576_s10 + $0x618] sm:$0xff]   ;;  %v7691_v62 = vld [vmem:[%s9576_s10 + $0x6a0] sm:$0xff]   ;;  %v7693_v5 = vld [vmem:[%s9576_s10 + $0x6e8] sm:$0xff]  }
0x1223   : > { %v4647_v40 = vmax.f32 %v4573_v35, 0.0  ;;  %v4649_v41 = vmax.f32 %v4616_v36, 0.0  ;;  %v7687_v61 = vld [vmem:[%s9576_s10 + $0x698] sm:$0xff]   ;;  %v7694_v3 = vld [vmem:[%s9576_s10 + $0x628] sm:$0xff]   ;;  %v7696_v4 = vld [vmem:[%s9576_s10 + $0x670] sm:$0xff]  }
0x1224   : > { %v9274_v42 = vpack.c.bf16 %v4646_v34, %v4630_v31  ;;  %v9276_v43 = vpack.c.bf16 %v4648_v28, %v4632_v33  ;;  %v7695_v9 = vld [vmem:[%s9576_s10 + $0x6a8] sm:$0xff]   ;;  %v7697_v10 = vld [vmem:[%s9576_s10 + $0x6f0] sm:$0xff]   ;;  %v7700_v15 = vld [vmem:[%s9576_s10 + $0x678] sm:$0xff]  }
0x1225   : > { %v9278_v2 = vpack.c.bf16 %v4647_v40, %v4631_v38  ;;  %v9280_v44 = vpack.c.bf16 %v4649_v41, %v4633_v39  ;;  %7137 = vmatpush3.bf16.msra.mxu0 %v7662_v24  ;;  %7159 = vmatpush3.bf16.msra.mxu1 %v7663_v25  ;;  %v7698_v1 = vld [vmem:[%s9576_s10 + $0x630] sm:$0xff]   ;;  %v7701_v16 = vld [vmem:[%s9576_s10 + $0x6f8] sm:$0xff]   ;;  %v7704_v20 = vld [vmem:[%s9576_s10 + $0x740] sm:$0xff]  }
0x1226   : > { %7138 = vmatprep.subr.bf16.mxu0 %v7664_v37  ;;  %7160 = vmatprep.subr.bf16.mxu1 %v7665_v32  ;;  %v7699_v11 = vld [vmem:[%s9576_s10 + $0x6b0] sm:$0xff]   ;;  %v7702_v6 = vld [vmem:[%s9576_s10 + $0x638] sm:$0xff]   ;;  %v7705_v21 = vld [vmem:[%s9576_s10 + $0x7c0] sm:$0xff]  }
0x1227   : > { %v7703_v19 = vld [vmem:[%s9576_s10 + $0x6b8] sm:$0xff]   ;;  %v7706_v27 = vld [vmem:[%s9576_s10 + $0x700] sm:$0xff]   ;;  %v7708_v35 = vld [vmem:[%s9576_s10 + $0x748] sm:$0xff]  }
0x1228   : > { %v7707_v29 = vld [vmem:[%s9576_s10 + $0x780] sm:$0xff]   ;;  %v7709_v36 = vld [vmem:[%s9576_s10 + $0x7c8] sm:$0xff]   ;;  %v7714_v31 = vld [vmem:[%s9576_s10 + $0x710] sm:$0xff]  }
0x1229   : > { %7139 = vmatpush3.bf16.msra.mxu0 %v7666_v49  ;;  %7161 = vmatpush3.bf16.msra.mxu1 %v7667_v50  ;;  %v7710_v24 = vld [vmem:[%s9576_s10 + $0x708] sm:$0xff]   ;;  %v7715_v33 = vld [vmem:[%s9576_s10 + $0x790] sm:$0xff]   ;;  %v7716_v34 = vld [vmem:[%s9576_s10 + $0x758] sm:$0xff]  }
0x122a   : > { %7140 = vmatprep.subr.bf16.mxu0 %v7668_v51  ;;  %7162 = vmatprep.subr.bf16.mxu1 %v7669_v48  ;;  %v7711_v25 = vld [vmem:[%s9576_s10 + $0x788] sm:$0xff]   ;;  %v7717_v28 = vld [vmem:[%s9576_s10 + $0x7d8] sm:$0xff]   ;;  %v7720_v38 = vld [vmem:[%s9576_s10 + $0x760] sm:$0xff]  }
0x122b   : > { %v7718_v37 = vld [vmem:[%s9576_s10 + $0x718] sm:$0xff]   ;;  %v7721_v39 = vld [vmem:[%s9576_s10 + $0x7e0] sm:$0xff]   ;;  %v7726_v49 = vld [vmem:[%s9576_s10 + $0x728] sm:$0xff]  }
0x122c   : > { %v7719_v32 = vld [vmem:[%s9576_s10 + $0x798] sm:$0xff]   ;;  %v7722_v40 = vld [vmem:[%s9576_s10 + $0x720] sm:$0xff]   ;;  %v7727_v50 = vld [vmem:[%s9576_s10 + $0x7a8] sm:$0xff]  }
0x122d   : > { %7141 = vmatpush3.bf16.msra.mxu0 %v7670_v54  ;;  %7163 = vmatpush3.bf16.msra.mxu1 %v7671_v55  ;;  %v7723_v41 = vld [vmem:[%s9576_s10 + $0x7a0] sm:$0xff]   ;;  %v7728_v51 = vld [vmem:[%s9576_s10 + $0x770] sm:$0xff]  }
0x122e   : > { %7170 = vmatprep.subr.bf16.mxu0 %v7672_v13  ;;  %7192 = vmatprep.subr.bf16.mxu1 %v7673_v57  ;;  %v7729_v48 = vld [vmem:[%s9576_s10 + $0x7f0] sm:$0xff]   ;;  %v7732_v13 = vld [vmem:[%s9576_s10 + $0x778] sm:$0xff]  }
0x122f   : > { %v7730_v54 = vld [vmem:[%s9576_s10 + $0x730] sm:$0xff]   ;;  %v7733_v57 = vld [vmem:[%s9576_s10 + $0x7f8] sm:$0xff]  }
0x1230   : > { %5814 = vmatmul.mubr.bf16.vlgmr.msra.gmra.mrb[92].mxu0 %v9206_v30  ;;  %5855 = vmatmul.mubr.bf16.vlgmr.msra.gmra.mrb[92].mxu1 %v9208_v7  ;;  %v7680_v30 = vld [vmem:[%s9576_s10 + $0x650] sm:$0xff]  }
0x1231   : > { %7171 = vmatpush3.bf16.msra.mxu0 %v7674_v12  ;;  %5895 = vmatprep.mubr.bf16.mxu0 %v9246_v0  ;;  %v7681_v7 = vld [vmem:[%s9576_s10 + $0x6d0] sm:$0xff]   ;;  %v7688_v0 = vld [vmem:[%s9576_s10 + $0x660] sm:$0xff]   ;;  %v7734_v12 = vld [vmem:[%s9576_s10 + $0x738] sm:$0xff]  }
0x1232   : > { %7193 = vmatpush3.bf16.msra.mxu1 %v7675_v58  ;;  %5936 = vmatprep.mubr.bf16.mxu1 %v9248_v23  ;;  %v7689_v23 = vld [vmem:[%s9576_s10 + $0x6e0] sm:$0xff]   ;;  %v7731_v55 = vld [vmem:[%s9576_s10 + $0x7b0] sm:$0xff]   ;;  %v7735_v58 = vld [vmem:[%s9576_s10 + $0x7b8] sm:$0xff]  }
0x1233   : > { %7172 = vmatprep.subr.bf16.mxu0 %v7676_v56  ;;  %7194 = vmatprep.subr.bf16.mxu1 %v7677_v14 }
0x1235   : > { %7173 = vmatpush3.bf16.msra.mxu0 %v7678_v22  ;;  %v6724_v22 = vld [vmem:[%s9577_s11 + $0x1] ss:$0 sm:$0xff] }
0x1236   : > { %7195 = vmatpush3.bf16.msra.mxu1 %v7679_v26  ;;  %7174 = vmatprep.subr.bf16.mxu0 %v7680_v30 }
0x1237   : > { %7196 = vmatprep.subr.bf16.mxu1 %v7681_v7 }
0x1239   : > { %7175 = vmatpush3.bf16.msra.mxu0 %v7682_v17 }
0x123a   : > { %7197 = vmatpush3.bf16.msra.mxu1 %v7683_v59  ;;  %7176 = vmatprep.subr.bf16.mxu0 %v7684_v60 }
0x123b   : > { %7198 = vmatprep.subr.bf16.mxu1 %v7685_v52 }
0x123d   : > { %7177 = vmatpush3.bf16.msra.mxu0 %v7686_v53 }
0x123e   : > { %7199 = vmatpush3.bf16.msra.mxu1 %v7687_v61  ;;  %7178 = vmatprep.subr.bf16.mxu0 %v7688_v0 }
0x123f   : > { %7200 = vmatprep.subr.bf16.mxu1 %v7689_v23 }
0x1241   : > { %7179 = vmatpush3.bf16.msra.mxu0 %v7690_v46 }
0x1242   : > { %7201 = vmatpush3.bf16.msra.mxu1 %v7691_v62  ;;  %7180 = vmatprep.subr.bf16.mxu0 %v7692_v8 }
0x1243   : > { %7202 = vmatprep.subr.bf16.mxu1 %v7693_v5 }
0x1245   : > { %7181 = vmatpush3.bf16.msra.mxu0 %v7694_v3 }
0x1246   : > { %7203 = vmatpush3.bf16.msra.mxu1 %v7695_v9  ;;  %7182 = vmatprep.subr.bf16.mxu0 %v7696_v4 }
0x1247   : > { %7204 = vmatprep.subr.bf16.mxu1 %v7697_v10 }
0x1249   : > { %7183 = vmatpush3.bf16.msra.mxu0 %v7698_v1 }
0x124a   : > { %7205 = vmatpush3.bf16.msra.mxu1 %v7699_v11  ;;  %7184 = vmatprep.subr.bf16.mxu0 %v7700_v15 }
0x124b   : > { %7206 = vmatprep.subr.bf16.mxu1 %v7701_v16 }
0x124d   : > { %7185 = vmatpush3.bf16.msra.mxu0 %v7702_v6 }
0x124e   : > { %7207 = vmatpush3.bf16.msra.mxu1 %v7703_v19  ;;  %7214 = vmatprep.subr.bf16.mxu0 %v7704_v20 }
0x124f   : > { %7236 = vmatprep.subr.bf16.mxu1 %v7705_v21 }
0x1250   : > { %5896 = vmatmul.mubr.bf16.vlgmr.msra.gmra.mrb[96].mxu0 %v9242_v63  ;;  %v7712_v63 = vld [vmem:[%s9576_s10 + $0x750] sm:$0xff]  }
0x1251   : > { %5937 = vmatmul.mubr.bf16.vlgmr.msra.gmra.mrb[96].mxu1 %v9244_v18  ;;  %7215 = vmatpush3.bf16.msra.mxu0 %v7706_v27  ;;  %v7713_v18 = vld [vmem:[%s9576_s10 + $0x7d0] sm:$0xff]  }
0x1252   : > { %5977 = vmatprep.mubr.bf16.mxu0 %v9278_v2  ;;  %7237 = vmatpush3.bf16.msra.mxu1 %v7707_v29  ;;  %v7724_v2 = vld [vmem:[%s9576_s10 + $0x768] sm:$0xff]  }
0x1253   : > { %6018 = vmatprep.mubr.bf16.mxu1 %v9280_v44  ;;  %7216 = vmatprep.subr.bf16.mxu0 %v7708_v35  ;;  %v7725_v44 = vld [vmem:[%s9576_s10 + $0x7e8] sm:$0xff]  }
0x1254   : > { %7238 = vmatprep.subr.bf16.mxu1 %v7709_v36 }
0x1255   : > { %7217 = vmatpush3.bf16.msra.mxu0 %v7710_v24 }
0x1256   : > { %7239 = vmatpush3.bf16.msra.mxu1 %v7711_v25  ;;  %7218 = vmatprep.subr.bf16.mxu0 %v7712_v63 }
0x1257   : > { %7240 = vmatprep.subr.bf16.mxu1 %v7713_v18 }
0x1259   : > { %7219 = vmatpush3.bf16.msra.mxu0 %v7714_v31 }
0x125a   : > { %7241 = vmatpush3.bf16.msra.mxu1 %v7715_v33  ;;  %7220 = vmatprep.subr.bf16.mxu0 %v7716_v34 }
0x125b   : > { %7242 = vmatprep.subr.bf16.mxu1 %v7717_v28 }
0x125d   : > { %7221 = vmatpush3.bf16.msra.mxu0 %v7718_v37 }
0x125e   : > { %7243 = vmatpush3.bf16.msra.mxu1 %v7719_v32  ;;  %7222 = vmatprep.subr.bf16.mxu0 %v7720_v38 }
0x125f   : > { %7244 = vmatprep.subr.bf16.mxu1 %v7721_v39 }
0x1261   : > { %7223 = vmatpush3.bf16.msra.mxu0 %v7722_v40 }
0x1262   : > { %7245 = vmatpush3.bf16.msra.mxu1 %v7723_v41  ;;  %7224 = vmatprep.subr.bf16.mxu0 %v7724_v2 }
0x1263   : > { %7246 = vmatprep.subr.bf16.mxu1 %v7725_v44 }
0x1265   : > { %7225 = vmatpush3.bf16.msra.mxu0 %v7726_v49 }
0x1266   : > { %7247 = vmatpush3.bf16.msra.mxu1 %v7727_v50  ;;  %7226 = vmatprep.subr.bf16.mxu0 %v7728_v51 }
0x1267   : > { %7248 = vmatprep.subr.bf16.mxu1 %v7729_v48 }
0x1269   : > { %7227 = vmatpush3.bf16.msra.mxu0 %v7730_v54 }
0x126a   : > { %7249 = vmatpush3.bf16.msra.mxu1 %v7731_v55  ;;  %7228 = vmatprep.subr.bf16.mxu0 %v7732_v13 }
0x126b   : > { %7250 = vmatprep.subr.bf16.mxu1 %v7733_v57 }
0x126d   : > { %7229 = vmatpush3.bf16.msra.mxu0 %v7734_v12 }
0x126e   : > { %7251 = vmatpush3.bf16.msra.mxu1 %v7735_v58 }
0x1270   : > { %5978 = vmatmul.mubr.bf16.vlgmr.msra.gmra.mrb[100].mxu0 %v9274_v42 }
0x1271   : > { %6019 = vmatmul.mubr.bf16.vlgmr.msra.gmra.mrb[100].mxu1 %v9276_v43 }
0x12e3   : > { %v7098_v56 = vpop.f32.mrb[88].mxu0  ;;  %v7120_v14 = vpop.f32.mrb[88].mxu1 }
0x12e4   : > { %v7099_v26 = vpop.f32.mrb[89].mxu0  ;;  %v7121_v30 = vpop.f32.mrb[89].mxu1 }
0x12e5   : > { %v7100_v7 = vadd.f32 %v7099_v26, %v7098_v56  ;;  %v7122_v17 = vadd.f32 %v7121_v30, %v7120_v14  ;;  %v7101_v59 = vpop.f32.mrb[90].mxu0  ;;  %v7123_v60 = vpop.f32.mrb[90].mxu1 }
0x12e6   : > { %v7102_v52 = vpop.f32.mrb[91].mxu0  ;;  %v7124_v53 = vpop.f32.mrb[91].mxu1 }
0x12e7   : > { %v5734_v61 = vadd.f32 %v7100_v7, %v6724_v22  ;;  %v7103_v0 = vadd.f32 %v7102_v52, %v7101_v59  ;;  %v7125_v23 = vadd.f32 %v7124_v53, %v7123_v60 }
0x12e9   : > { %v5775_v42 = vadd.f32 %v7122_v17, %v5734_v61  ;;  %v5737_v46 = vadd.f32 %v7103_v0, %v6724_v22 }
0x12eb   : > { %v5778_v43 = vadd.f32 %v7125_v23, %v5737_v46 }
0x1303   : > { %v7142_v62 = vpop.f32.mrb[92].mxu0  ;;  %v7164_v8 = vpop.f32.mrb[92].mxu1 }
0x1304   : > { %v7143_v5 = vpop.f32.mrb[93].mxu0  ;;  %v7165_v3 = vpop.f32.mrb[93].mxu1 }
0x1305   : > { %v7144_v9 = vadd.f32 %v7143_v5, %v7142_v62  ;;  %v7166_v4 = vadd.f32 %v7165_v3, %v7164_v8  ;;  %v7145_v10 = vpop.f32.mrb[94].mxu0  ;;  %v7167_v1 = vpop.f32.mrb[94].mxu1 }
0x1306   : > { %v7146_v11 = vpop.f32.mrb[95].mxu0  ;;  %v7168_v15 = vpop.f32.mrb[95].mxu1 }
0x1307   : > { %v5816_v16 = vadd.f32 %v7144_v9, %v5775_v42  ;;  %v7147_v6 = vadd.f32 %v7146_v11, %v7145_v10  ;;  %v7169_v19 = vadd.f32 %v7168_v15, %v7167_v1  ;;  %v6856_v11 = vld [vmem:[%s9579_s13 + $0x1] ss:$0 sm:$0xff] }
0x1309   : > { %v5857_v20 = vadd.f32 %v7166_v4, %v5816_v16  ;;  %v5819_v21 = vadd.f32 %v7147_v6, %v5778_v43  ;;  %v6855_v4 = vld [vmem:[%s9578_s12 + $0x1] ss:$0 sm:$0xff] }
0x130b   : > { %v5860_v27 = vadd.f32 %v7169_v19, %v5819_v21 }
0x1323   : > { %v7186_v29 = vpop.f32.mrb[96].mxu0 }
0x1324   : > { %v7208_v35 = vpop.f32.mrb[96].mxu1  ;;  %v7187_v36 = vpop.f32.mrb[97].mxu0 }
0x1325   : > { %v7188_v24 = vadd.f32 %v7187_v36, %v7186_v29  ;;  %v7209_v25 = vpop.f32.mrb[97].mxu1  ;;  %v7189_v63 = vpop.f32.mrb[98].mxu0 }
0x1326   : > { %v7210_v18 = vadd.f32 %v7209_v25, %v7208_v35  ;;  %v7211_v31 = vpop.f32.mrb[98].mxu1  ;;  %v7190_v33 = vpop.f32.mrb[99].mxu0 }
0x1327   : > { %v5898_v34 = vadd.f32 %v7188_v24, %v5857_v20  ;;  %v7191_v28 = vadd.f32 %v7190_v33, %v7189_v63  ;;  %v7212_v37 = vpop.f32.mrb[99].mxu1 }
0x1328   : > { %v7213_v32 = vadd.f32 %v7212_v37, %v7211_v31 }
0x1329   : > { %v5939_v38 = vadd.f32 %v7210_v18, %v5898_v34  ;;  %v5901_v39 = vadd.f32 %v7191_v28, %v5860_v27 }
0x132b   : > { %v5942_v40 = vadd.f32 %v7213_v32, %v5901_v39 }
0x1343   : > { %v7230_v41 = vpop.f32.mrb[100].mxu0 }
0x1344   : > { %v7252_v2 = vpop.f32.mrb[100].mxu1  ;;  %v7231_v44 = vpop.f32.mrb[101].mxu0 }
0x1345   : > { %v7232_v49 = vadd.f32 %v7231_v44, %v7230_v41  ;;  %v7253_v50 = vpop.f32.mrb[101].mxu1  ;;  %v7233_v51 = vpop.f32.mrb[102].mxu0 }
0x1346   : > { %v7254_v48 = vadd.f32 %v7253_v50, %v7252_v2  ;;  %v7255_v54 = vpop.f32.mrb[102].mxu1  ;;  %v7234_v55 = vpop.f32.mrb[103].mxu0 }
0x1347   : > { %v5980_v13 = vadd.f32 %v7232_v49, %v5939_v38  ;;  %v7235_v57 = vadd.f32 %v7234_v55, %v7233_v51  ;;  %v7256_v12 = vpop.f32.mrb[103].mxu1 }
0x1348   : > { %v7257_v58 = vadd.f32 %v7256_v12, %v7255_v54 }
0x1349   : > { %v6021_v56 = vadd.f32 %v7254_v48, %v5980_v13  ;;  %v5983_v14 = vadd.f32 %v7235_v57, %v5942_v40 }
0x134b   : > { %v6024_v22 = vadd.f32 %v7257_v58, %v5983_v14  ;;  %v6027_v26 = vadd.f32 %v6021_v56, %v8978_v45 }
0x134d   : > { %v6033_v30 = vsel %vm512_vm1, %v6027_v26, 0.0  ;;  %v6028_v7 = vadd.f32 %v6024_v22, %v8980_v47 }
0x134e   : > { %6034 = vadd.xlane.f32.xlu1 %v6033_v30 }
0x134f   : > { %v6036_v17 = vsel %vm512_vm1, %v6028_v7, 0.0 }
0x1350   : > { %6037 = vadd.xlane.f32.xlu0 %v6036_v17 }
0x13db   : > { %v6035_v59 = vpop.xlane.xlu1 %6034 }
0x13dc   : > { %v6039_v60 = vmul.f32 0.03125, %v6035_v59 }
0x13dd   : > { %v6038_v52 = vpop.xlane.xlu0 %6037 }
0x13de   : > { %v6041_v53 = vsub.f32 %v6027_v26, %v6039_v60  ;;  %v6040_v61 = vmul.f32 0.03125, %v6038_v52 }
0x13e0   : > { %v6042_v0 = vsub.f32 %v6028_v7, %v6040_v61  ;;  %v6043_v23 = vmul.f32 %v6041_v53, %v6041_v53 }
0x13e2   : > { %v6045_v42 = vsel %vm512_vm1, %v6043_v23, 0.0  ;;  %v6044_v46 = vmul.f32 %v6042_v0, %v6042_v0 }
0x13e3   : > { %6046 = vadd.xlane.f32.xlu1 %v6045_v42 }
0x13e4   : > { %v6048_v45 = vsel %vm512_vm1, %v6044_v46, 0.0 }
0x13e5   : > { %6049 = vadd.xlane.f32.xlu0 %v6048_v45 }
0x1470   : > { %v6047_v43 = vpop.xlane.xlu1 %6046 }
0x1471   : > { %v6051_v47 = vmul.f32 0.03125, %v6047_v43 }
0x1472   : > { %v6050_v62 = vpop.xlane.xlu0 %6049 }
0x1473   : > { %v6053_v8 = vadd.f32 1e-05, %v6051_v47  ;;  %v6052_v5 = vmul.f32 0.03125, %v6050_v62 }
0x1475   : > { %7812 = vrsqrt.f32 %v6053_v8  ;;  %v6054_v3 = vadd.f32 1e-05, %v6052_v5 }
0x1477   : > { %7814 = vrsqrt.f32 %v6054_v3 }
0x147f   : > { %v7813_v9 = vpop.eup %7812 }
0x1480   : > { %v6057_v10 = vmul.f32 %v7813_v9, %v6041_v53 }
0x1481   : > { %v7815_v1 = vpop.eup %7814 }
0x1482   : > { %v6065_v15 = vmul.f32 %v6855_v4, %v6057_v10  ;;  %v6058_v16 = vmul.f32 %v7815_v1, %v6042_v0 }
0x1484   : > { %v6073_v6 = vadd.f32 %v6856_v11, %v6065_v15  ;;  %v6066_v19 = vmul.f32 %v6855_v4, %v6058_v16 }
0x1486   : > { %v6074_v20 = vadd.f32 %v6856_v11, %v6066_v19  ;;  %v6075_v21 = vsel %vm512_vm1, %v6073_v6, 0.0 }
0x1488   : > { %v6076_v27 = vsel %vm512_vm1, %v6074_v20, 0.0 }
0x1489   : > { %v6077_v29 = vadd.f32 %v6076_v27, %v6075_v21 }
0x148b   : > { %v6078_v35 = vrot.slane %v6077_v29, 4 }
0x148d   : > { %v6079_v36 = vadd.f32 %v6078_v35, %v6077_v29 }
0x148f   : > { %v6080_v24 = vrot.slane %v6079_v36, 2 }
0x1491   : > { %v6081_v25 = vadd.f32 %v6080_v24, %v6079_v36 }
0x1493   : > { %v6082_v63 = vrot.slane %v6081_v25, 1 }
0x1495   : > { %v6083_v18 = vadd.f32 %v6082_v63, %v6081_v25 }
0x1497   : > { %6085 = vst.msk [vmem:[%s474_s26] sm:$0x1] %vm6084_vm5, %v6083_v18 }
0x1498   : > { %7839 = shalt.err (!%p7836_p3)
}
0x1499   : > { %s7840_s1 = scalar_lea.hbm %s9524_s15, 16  ;;  %s7844_s18 = scalar_lea.hbm %s9580_s14, 32 }
0x149a   : > { %p7841_p4 = scmp.ne.s32.totalorder %s9524_s15, %s7840_s1  ;;  %p7845_p9 = scmp.lt.u32.totalorder %s9524_s15, %s9580_s14 }
0x149b   : > { %p7846_p10 = scmp.lt.u32.totalorder %s7844_s18, %s7840_s1  ;;  %p7848_p12 = scmp.lt.u32.totalorder %s7840_s1, %s9524_s15 }
0x149c   : > { %p7842_p7 = pnand %p7841_p4, %p8021_p5 }
0x149d   : > { %p7847_p11 = por %p7846_p10, %p7845_p9 }
0x149e   : > { %p7843_p8 = pneg %p7842_p7 }
0x149f   : > { %p7849_p13 = por %p7848_p12, %p7847_p11 }
0x14a1   : > { %p7850_p0 = pnand %p7849_p13, %p7843_p8 }
0x14a3   : > { %7853 = shalt.err (!%p7850_p0)
}
0x14a4   : > { %7386 = dma.vmem_to_hbm [thread:$0]  (%p8021_p5), %s9526_s20, 16, %s9524_s15, %s6087_s0  }
0x14a5 PF: > { %p7392_p1 = scmp.ge.s32.totalorder %s7888_s16, 2  ;;  %s6111_s22 = sand.u32 1, %s7876_s29  }
0x14a6   : > { %s6112_s21 = scalar_lea.sflag [#allocation3], %s6111_s22 }
0x14a7   : > { %p7389_p2 = pnand %p7392_p1, %p8025_p6 }
0x14a9   : > { %7871 = dma.done.wait (!%p7389_p2), %s6112_s21, 16  }
0x14aa   : > { %7873 = vsyncadd (!%p7389_p2), %s6112_s21, 4294967280  ;;  %s9618_s25 = sld [smem:[#allocation5_spill]]  ;;  %s9619_s15 = sld [smem:[#allocation6_spill]] }
0x14ab   : > { %p24_p3 = scmp.ge.s32.totalorder %s8008_s19, 4   ;;  %s9620_s29 = smov %s7880_s30 }
0x14ac   : > { %s9622_s16 = smov %s8008_s19 }
0x14ad   :  { %26 = sbr.rel (!%p24_p3) target bundleno = 6 (0x6), region = 126 }
0x14b0   : > { %s9621_s30 = smov %s9618_s25 }
0x14b4   :  { %6116 = vsyncpa [#allocation3], 1 }
0x14b5   :  { %6118 = vsyncpa [#allocation3 + $0x1], 1 }

</bundles_post_ra>
